<compile_context>
chip_gen: v6e
topology: v6e:2x2x1
jax: 0.10.0
libtpu: 0.0.40
codegen_flags: <defaults>
</compile_context>

<pallas_src>
import functools

import jax
import jax.numpy as jnp
from jax.experimental import pallas as pl
from jax.experimental.pallas import tpu as pltpu


# ------------------------------ Pallas kernels ------------------------------

def _lstm_dir_kernel(x_ref, len_ref, w_ih_ref, w_hh_ref, b_ref, h_ref, *,
                     tmax, hdim, bidir):
    """Full LSTM direction (input projection + T-step recurrence) in ONE call.

    Grid axis 0 = direction (size 1 for stRNN, 2 for the bidirectional ingRNN,
    marked "parallel" so v7x can shard the two independent recurrences across
    its TensorCores).  Direction index 1 (bidir only) runs the time axis
    reversed.

    x_ref    : (B, T, D)   f32  full block (shared by both directions)
    len_ref  : (B, 1)      i32  sequence lengths
    w_ih_ref : (1, D, 4H)  bf16 input weights for this direction (transposed)
    w_hh_ref : (1, H, 4H)  bf16 recurrent weights for this direction
    b_ref    : (1, 1, 4H)  f32  b_ih + b_hh folded
    h_ref    : (1, B, H)   f32  final hidden state (== PyTorch h_n)

    Gate column order is [i, f, o, g]: one sigmoid over [:, :3H] and one tanh
    over [:, 3H:].
    """
    batch = x_ref.shape[0]
    gdim = 4 * hdim

    # One lane-dense MXU matmul for every timestep's input projection.
    x2d = x_ref[...].reshape(batch * tmax, -1).astype(jnp.bfloat16)
    gx_all = jnp.dot(x2d, w_ih_ref[0], preferred_element_type=jnp.float32)
    gx_all = (gx_all + b_ref[0]).reshape(batch, tmax, gdim)

    lens = len_ref[...]                                   # (B, 1) int32
    rev = (pl.program_id(0) == 1) if bidir else None

    h = jnp.zeros((batch, hdim), jnp.float32)
    c = jnp.zeros((batch, hdim), jnp.float32)
    # T is small and static -> fully static slicing; state stays in vregs/VMEM.
    for t in range(tmax):
        if bidir:
            gx = jnp.where(rev, gx_all[:, tmax - 1 - t, :], gx_all[:, t, :])
            tt = jnp.where(rev, jnp.int32(tmax - 1 - t), jnp.int32(t))
        else:
            gx = gx_all[:, t, :]
            tt = jnp.int32(t)
        gates = gx + jnp.dot(h.astype(jnp.bfloat16), w_hh_ref[0],
                             preferred_element_type=jnp.float32)
        sig = jax.nn.sigmoid(gates[:, :3 * hdim])          # i, f, o contiguous
        i_g = sig[:, 0 * hdim:1 * hdim]
        f_g = sig[:, 1 * hdim:2 * hdim]
        o_g = sig[:, 2 * hdim:3 * hdim]
        g_g = jnp.tanh(gates[:, 3 * hdim:])
        c_new = f_g * c + i_g * g_g
        h_new = o_g * jnp.tanh(c_new)
        valid = tt < lens                                   # packed-seq freeze
        c = jnp.where(valid, c_new, c)
        h = jnp.where(valid, h_new, h)
    h_ref[0] = h


def _recipe_embed_kernel(st_ref, ingf_ref, ingb_ref,
                         w_st_ref, w_f_ref, w_b_ref, b_ref, o_ref):
    """Fused cat([st, ing_fwd, ing_bwd], 1) @ W + b -> tanh (concat never hits HBM)."""
    acc = jnp.dot(st_ref[...].astype(jnp.bfloat16), w_st_ref[...],
                  preferred_element_type=jnp.float32)
    acc += jnp.dot(ingf_ref[...].astype(jnp.bfloat16), w_f_ref[...],
                   preferred_element_type=jnp.float32)
    acc += jnp.dot(ingb_ref[...].astype(jnp.bfloat16), w_b_ref[...],
                   preferred_element_type=jnp.float32)
    o_ref[...] = jnp.tanh(acc + b_ref[...])


# -------------------------------- wrappers ----------------------------------

def lstm_final_hidden(x, lengths, w_ih_t, w_hh_t, bias):
    """Run num_dirs LSTM directions; returns (num_dirs, B, H) final hiddens."""
    ndir, dim, gdim = w_ih_t.shape
    hdim = gdim // 4
    batch, tmax, _ = x.shape
    lens = lengths.reshape(batch, 1).astype(jnp.int32)
    kern = functools.partial(_lstm_dir_kernel, tmax=tmax, hdim=hdim,
                             bidir=(ndir == 2))
    return pl.pallas_call(
        kern,
        out_shape=jax.ShapeDtypeStruct((ndir, batch, hdim), jnp.float32),
        grid=(ndir,),
        in_specs=[
            pl.BlockSpec((batch, tmax, dim), lambda d: (0, 0, 0)),
            pl.BlockSpec((batch, 1), lambda d: (0, 0)),
            pl.BlockSpec((1, dim, gdim), lambda d: (d, 0, 0)),
            pl.BlockSpec((1, hdim, gdim), lambda d: (d, 0, 0)),
            pl.BlockSpec((1, 1, gdim), lambda d: (d, 0, 0)),
        ],
        out_specs=pl.BlockSpec((1, batch, hdim), lambda d: (d, 0, 0)),
        compiler_params=pltpu.CompilerParams(
            dimension_semantics=("parallel",)),
    )(x, lens, w_ih_t, w_hh_t, bias)


def recipe_embedding(st_h, ing_f, ing_b, w_st, w_f, w_b, bias):
    batch = st_h.shape[0]
    edim = w_st.shape[1]

    def full(shape):
        return pl.BlockSpec(shape, lambda i, _s=shape: (0,) * len(_s))

    return pl.pallas_call(
        _recipe_embed_kernel,
        out_shape=jax.ShapeDtypeStruct((batch, edim), jnp.float32),
        grid=(1,),
        in_specs=[full(st_h.shape), full(ing_f.shape), full(ing_b.shape),
                  full(w_st.shape), full(w_f.shape), full(w_b.shape),
                  full(bias.shape)],
        out_specs=full((batch, edim)),
        compiler_params=pltpu.CompilerParams(
            dimension_semantics=("arbitrary",)),
    )(st_h, ing_f, ing_b, w_st, w_f, w_b, bias)


# ------------------------- module-equivalent forward -------------------------

def st_rnn_forward(y1, y2, p):
    """stRNN: unidirectional LSTM; output at t=len-1 == final hidden state."""
    return lstm_final_hidden(y1, y2, p["w_ih_t"], p["w_hh_t"], p["bias"])[0]


def ing_rnn_forward(z1, z2, p):
    """ingRNN: embedding lookup + bidirectional LSTM -> (h_fwd, h_bwd)."""
    # TODO(synk): embedding lookup kept as XLA gather (data-dependent HBM gather).
    x = jnp.take(p["emb"], z1, axis=0)
    h = lstm_final_hidden(x, z2, p["w_ih_t"], p["w_hh_t"], p["bias"])
    return h[0], h[1]


def text_embedding_forward(params, y1, y2, z1, z2, ingrs_emb=None):
    """TextEmbedding.forward: cat([stRNN(y1,y2), ingRNN(z1,z2)], 1) -> Linear -> Tanh."""
    st = st_rnn_forward(y1, y2, params["st"])
    if ingrs_emb is None:
        ing_f, ing_b = ing_rnn_forward(z1, z2, params["ing"])
    else:
        hdim = params["ing"]["w_hh_t"].shape[1]
        ing_f, ing_b = ingrs_emb[:, :hdim], ingrs_emb[:, hdim:]
    return recipe_embedding(st, ing_f, ing_b,
                            params["emb_w_st"], params["emb_w_f"],
                            params["emb_w_b"], params["emb_b"])


# --------------------------------- params ------------------------------------

def init_params(key, *, st_dim, srnn_dim, ingr_w2v_dim, irnn_dim, emb_dim, vocab):
    keys = iter(jax.random.split(key, 6))

    def lstm_params(k, d, h, ndir):
        k1, k2, k3, k4 = jax.random.split(k, 4)
        s = 1.0 / (h ** 0.5)
        # Gate column order [i, f, o, g]; weights bf16 (MXU-native), bias f32.
        # TODO(synk): permute PyTorch's [i, f, g, o] gate columns when importing real weights.
        return {
            "w_ih_t": jax.random.uniform(k1, (ndir, d, 4 * h), jnp.float32,
                                         -s, s).astype(jnp.bfloat16),
            "w_hh_t": jax.random.uniform(k2, (ndir, h, 4 * h), jnp.float32,
                                         -s, s).astype(jnp.bfloat16),
            "bias": (jax.random.uniform(k3, (ndir, 1, 4 * h), jnp.float32, -s, s)
                     + jax.random.uniform(k4, (ndir, 1, 4 * h), jnp.float32, -s, s)),
        }

    emb_tbl = 0.1 * jax.random.normal(next(keys), (vocab, ingr_w2v_dim), jnp.float32)
    emb_tbl = emb_tbl.at[0].set(0.0)            # nn.Embedding padding_idx=0
    st = lstm_params(next(keys), st_dim, srnn_dim, 1)
    ing = lstm_params(next(keys), ingr_w2v_dim, irnn_dim, 2)
    ing["emb"] = emb_tbl
    # Final Linear(srnn + 2*irnn -> emb) weight stored pre-split per input
    # block so the concat can be fused into the matmul kernel.
    w_full = 0.1 * jax.random.normal(next(keys),
                                     (srnn_dim + 2 * irnn_dim, emb_dim),
                                     jnp.float32)
    return {
        "st": st,
        "ing": ing,
        "emb_w_st": w_full[:srnn_dim].astype(jnp.bfloat16),
        "emb_w_f": w_full[srnn_dim:srnn_dim + irnn_dim].astype(jnp.bfloat16),
        "emb_w_b": w_full[srnn_dim + irnn_dim:].astype(jnp.bfloat16),
        "emb_b": jnp.zeros((1, emb_dim), jnp.float32),
    }


# --------------------------- pure-JAX reference -------------------------------

def _ref_lstm_dir(x, lengths, w_ih, w_hh, bias, reverse):
    batch, tmax, dim = x.shape
    hdim = w_hh.shape[0]
    gx_all = jnp.dot(x.reshape(batch * tmax, dim).astype(jnp.bfloat16), w_ih,
                     preferred_element_type=jnp.float32) + bias
    gx_all = gx_all.reshape(batch, tmax, 4 * hdim)
    h = jnp.zeros((batch, hdim), jnp.float32)
    c = jnp.zeros((batch, hdim), jnp.float32)
    order = range(tmax - 1, -1, -1) if reverse else range(tmax)
    for t in order:
        gates = gx_all[:, t, :] + jnp.dot(h.astype(jnp.bfloat16), w_hh,
                                          preferred_element_type=jnp.float32)
        i_g = jax.nn.sigmoid(gates[:, :hdim])
        f_g = jax.nn.sigmoid(gates[:, hdim:2 * hdim])
        o_g = jax.nn.sigmoid(gates[:, 2 * hdim:3 * hdim])
        g_g = jnp.tanh(gates[:, 3 * hdim:])
        c_new = f_g * c + i_g * g_g
        h_new = o_g * jnp.tanh(c_new)
        m = (t < lengths)[:, None]
        c = jnp.where(m, c_new, c)
        h = jnp.where(m, h_new, h)
    return h


def _ref_forward(params, y1, y2, z1, z2):
    p_st, p_ing = params["st"], params["ing"]
    st = _ref_lstm_dir(y1, y2, p_st["w_ih_t"][0], p_st["w_hh_t"][0],
                       p_st["bias"][0], False)
    x = jnp.take(p_ing["emb"], z1, axis=0)
    hf = _ref_lstm_dir(x, z2, p_ing["w_ih_t"][0], p_ing["w_hh_t"][0],
                       p_ing["bias"][0], False)
    hb = _ref_lstm_dir(x, z2, p_ing["w_ih_t"][1], p_ing["w_hh_t"][1],
                       p_ing["bias"][1], True)
    acc = (jnp.dot(st.astype(jnp.bfloat16), params["emb_w_st"],
                   preferred_element_type=jnp.float32)
           + jnp.dot(hf.astype(jnp.bfloat16), params["emb_w_f"],
                     preferred_element_type=jnp.float32)
           + jnp.dot(hb.astype(jnp.bfloat16), params["emb_w_b"],
                     preferred_element_type=jnp.float32)
           + params["emb_b"])
    return jnp.tanh(acc)


# ----------------------------------- main -------------------------------------

if __name__ == "__main__":
    B = 2
    T_ST, ST_DIM, SRNN_DIM = 8, 32, 32        # instruction sequence / stRNN
    T_ING, INGR_DIM, IRNN_DIM = 8, 32, 32     # ingredient tokens / ingRNN
    EMB_DIM = 128                             # lane-dense final embedding
    VOCAB = 64

    key = jax.random.PRNGKey(0)
    kp, ky, kz, kl1, kl2 = jax.random.split(key, 5)
    params = init_params(kp, st_dim=ST_DIM, srnn_dim=SRNN_DIM,
                         ingr_w2v_dim=INGR_DIM, irnn_dim=IRNN_DIM,
                         emb_dim=EMB_DIM, vocab=VOCAB)

    y1 = jax.random.normal(ky, (B, T_ST, ST_DIM), jnp.float32)   # skip-thought feats
    y2 = jax.random.randint(kl1, (B,), 1, T_ST + 1)              # their lengths
    z1 = jax.random.randint(kz, (B, T_ING), 1, VOCAB)            # ingredient ids
    z2 = jax.random.randint(kl2, (B,), 1, T_ING + 1)             # their lengths

    fwd = jax.jit(text_embedding_forward)
    out = jax.block_until_ready(fwd(params, y1, y2, z1, z2))
    assert out.shape == (B, EMB_DIM), out.shape
    assert bool(jnp.all(jnp.isfinite(out)))
    assert bool(jnp.all(jnp.abs(out) <= 1.0))        # tanh output range

    ref = _ref_forward(params, y1, y2, z1, z2)
    max_err = float(jnp.max(jnp.abs(out - ref)))
    assert max_err < 5e-3, max_err
    print("KERNEL_OK")
</pallas_src>

<mosaic_0001>
module attributes {stable_mosaic.version = 11 : i64} {
  func.func @_lstm_dir_kernel(%arg0: i32, %arg1: memref<2x8x32xf32, #tpu.memory_space<vmem>>, %arg2: memref<2x1xi32, #tpu.memory_space<vmem>>, %arg3: memref<1x32x128xbf16, #tpu.memory_space<vmem>>, %arg4: memref<1x32x128xbf16, #tpu.memory_space<vmem>>, %arg5: memref<1x1x128xf32, #tpu.memory_space<vmem>>, %arg6: memref<1x2x32xf32, #tpu.memory_space<vmem>>) attributes {dimension_semantics = [#tpu.dimension_semantics<parallel>], iteration_bounds = array<i64: 1>, scalar_prefetch = 0 : i64, scratch_operands = 0 : i64, tpu.core_type = #tpu.core_type<tc>, window_params = [{pipeline_mode = #tpu.pipeline_mode<synchronous>, transform_indices = @transform_0, window_bounds = array<i64: 2, 8, 32>}, {pipeline_mode = #tpu.pipeline_mode<synchronous>, transform_indices = @transform_1, window_bounds = array<i64: 2, 1>}, {transform_indices = @transform_2, window_bounds = array<i64: 1, 32, 128>}, {transform_indices = @transform_3, window_bounds = array<i64: 1, 32, 128>}, {transform_indices = @transform_4, window_bounds = array<i64: 1, 1, 128>}, {transform_indices = @transform_5, window_bounds = array<i64: 1, 2, 32>}]} {
    %c0 = arith.constant 0 : index
    %c0_0 = arith.constant 0 : index
    %c0_1 = arith.constant 0 : index
    %0 = vector.load %arg1[%c0, %c0_0, %c0_1] : memref<2x8x32xf32, #tpu.memory_space<vmem>>, vector<2x8x32xf32>
    %1 = vector.shape_cast %0 : vector<2x8x32xf32> to vector<16x32xf32>
    %2 = arith.truncf %1 : vector<16x32xf32> to vector<16x32xbf16>
    %c0_2 = arith.constant 0 : index
    %c0_3 = arith.constant 0 : index
    %c0_4 = arith.constant 0 : index
    %3 = vector.load %arg3[%c0_2, %c0_3, %c0_4] : memref<1x32x128xbf16, #tpu.memory_space<vmem>>, vector<1x32x128xbf16>
    %4 = vector.shape_cast %3 : vector<1x32x128xbf16> to vector<32x128xbf16>
    %cst = arith.constant dense<0.000000e+00> : vector<16x128xf32>
    %5 = tpu.matmul %2, %4, %cst {dimension_numbers = #tpu.dot_dimension_numbers<[1], [0], [0], [1], [0, 0, 1, 1], [], []>} : vector<16x32xbf16>, vector<32x128xbf16>, vector<16x128xf32> -> vector<16x128xf32>
    %c0_5 = arith.constant 0 : index
    %c0_6 = arith.constant 0 : index
    %c0_7 = arith.constant 0 : index
    %6 = vector.load %arg5[%c0_5, %c0_6, %c0_7] : memref<1x1x128xf32, #tpu.memory_space<vmem>>, vector<1x1x128xf32>
    %7 = vector.shape_cast %6 : vector<1x1x128xf32> to vector<1x128xf32>
    %8 = vector.broadcast %7 : vector<1x128xf32> to vector<16x128xf32>
    %9 = arith.addf %5, %8 : vector<16x128xf32>
    %10 = vector.shape_cast %9 : vector<16x128xf32> to vector<2x8x128xf32>
    %c0_8 = arith.constant 0 : index
    %c0_9 = arith.constant 0 : index
    %11 = vector.load %arg2[%c0_8, %c0_9] : memref<2x1xi32, #tpu.memory_space<vmem>>, vector<2x1xi32>
    %cst_10 = arith.constant 0.000000e+00 : f32
    %12 = vector.broadcast %cst_10 : f32 to vector<2x32xf32>
    %cst_11 = arith.constant 0.000000e+00 : f32
    %13 = vector.broadcast %cst_11 : f32 to vector<2x32xf32>
    %14 = vector.extract_strided_slice %10 {offsets = [0, 0, 0], sizes = [2, 1, 128], strides = [1, 1, 1]} : vector<2x8x128xf32> to vector<2x1x128xf32>
    %15 = vector.shape_cast %14 : vector<2x1x128xf32> to vector<2x128xf32>
    %16 = arith.truncf %12 : vector<2x32xf32> to vector<2x32xbf16>
    %c0_12 = arith.constant 0 : index
    %c0_13 = arith.constant 0 : index
    %c0_14 = arith.constant 0 : index
    %17 = vector.load %arg4[%c0_12, %c0_13, %c0_14] : memref<1x32x128xbf16, #tpu.memory_space<vmem>>, vector<1x32x128xbf16>
    %18 = vector.shape_cast %17 : vector<1x32x128xbf16> to vector<32x128xbf16>
    %cst_15 = arith.constant dense<0.000000e+00> : vector<2x128xf32>
    %19 = tpu.matmul %16, %18, %cst_15 {dimension_numbers = #tpu.dot_dimension_numbers<[1], [0], [0], [1], [0, 0, 1, 1], [], []>} : vector<2x32xbf16>, vector<32x128xbf16>, vector<2x128xf32> -> vector<2x128xf32>
    %20 = arith.addf %15, %19 : vector<2x128xf32>
    %21 = vector.extract_strided_slice %20 {offsets = [0, 0], sizes = [2, 96], strides = [1, 1]} : vector<2x128xf32> to vector<2x96xf32>
    %22 = arith.negf %21 : vector<2x96xf32>
    %23 = math.exp %22 : vector<2x96xf32>
    %cst_16 = arith.constant 1.000000e+00 : f32
    %24 = vector.broadcast %cst_16 : f32 to vector<2x96xf32>
    %25 = arith.addf %24, %23 : vector<2x96xf32>
    %26 = arith.divf %24, %25 : vector<2x96xf32>
    %27 = vector.extract_strided_slice %26 {offsets = [0, 0], sizes = [2, 32], strides = [1, 1]} : vector<2x96xf32> to vector<2x32xf32>
    %28 = vector.extract_strided_slice %26 {offsets = [0, 32], sizes = [2, 32], strides = [1, 1]} : vector<2x96xf32> to vector<2x32xf32>
    %29 = vector.extract_strided_slice %26 {offsets = [0, 64], sizes = [2, 32], strides = [1, 1]} : vector<2x96xf32> to vector<2x32xf32>
    %30 = vector.extract_strided_slice %20 {offsets = [0, 96], sizes = [2, 32], strides = [1, 1]} : vector<2x128xf32> to vector<2x32xf32>
    %31 = math.tanh %30 : vector<2x32xf32>
    %32 = arith.mulf %28, %13 : vector<2x32xf32>
    %33 = arith.mulf %27, %31 : vector<2x32xf32>
    %34 = arith.addf %32, %33 : vector<2x32xf32>
    %35 = math.tanh %34 : vector<2x32xf32>
    %36 = arith.mulf %29, %35 : vector<2x32xf32>
    %c0_i32 = arith.constant 0 : i32
    %37 = vector.broadcast %c0_i32 : i32 to vector<2x1xi32>
    %38 = arith.cmpi slt, %37, %11 : vector<2x1xi32>
    %39 = vector.shape_cast %38 : vector<2x1xi1> to vector<2x1xi1>
    %40 = vector.broadcast %39 : vector<2x1xi1> to vector<2x32xi1>
    %41 = arith.select %40, %34, %13 : vector<2x32xi1>, vector<2x32xf32>
    %42 = vector.shape_cast %38 : vector<2x1xi1> to vector<2x1xi1>
    %43 = vector.broadcast %42 : vector<2x1xi1> to vector<2x32xi1>
    %44 = arith.select %43, %36, %12 : vector<2x32xi1>, vector<2x32xf32>
    %45 = vector.extract_strided_slice %10 {offsets = [0, 1, 0], sizes = [2, 1, 128], strides = [1, 1, 1]} : vector<2x8x128xf32> to vector<2x1x128xf32>
    %46 = vector.shape_cast %45 : vector<2x1x128xf32> to vector<2x128xf32>
    %47 = arith.truncf %44 : vector<2x32xf32> to vector<2x32xbf16>
    %c0_17 = arith.constant 0 : index
    %c0_18 = arith.constant 0 : index
    %c0_19 = arith.constant 0 : index
    %48 = vector.load %arg4[%c0_17, %c0_18, %c0_19] : memref<1x32x128xbf16, #tpu.memory_space<vmem>>, vector<1x32x128xbf16>
    %49 = vector.shape_cast %48 : vector<1x32x128xbf16> to vector<32x128xbf16>
    %cst_20 = arith.constant dense<0.000000e+00> : vector<2x128xf32>
    %50 = tpu.matmul %47, %49, %cst_20 {dimension_numbers = #tpu.dot_dimension_numbers<[1], [0], [0], [1], [0, 0, 1, 1], [], []>} : vector<2x32xbf16>, vector<32x128xbf16>, vector<2x128xf32> -> vector<2x128xf32>
    %51 = arith.addf %46, %50 : vector<2x128xf32>
    %52 = vector.extract_strided_slice %51 {offsets = [0, 0], sizes = [2, 96], strides = [1, 1]} : vector<2x128xf32> to vector<2x96xf32>
    %53 = arith.negf %52 : vector<2x96xf32>
    %54 = math.exp %53 : vector<2x96xf32>
    %cst_21 = arith.constant 1.000000e+00 : f32
    %55 = vector.broadcast %cst_21 : f32 to vector<2x96xf32>
    %56 = arith.addf %55, %54 : vector<2x96xf32>
    %57 = arith.divf %55, %56 : vector<2x96xf32>
    %58 = vector.extract_strided_slice %57 {offsets = [0, 0], sizes = [2, 32], strides = [1, 1]} : vector<2x96xf32> to vector<2x32xf32>
    %59 = vector.extract_strided_slice %57 {offsets = [0, 32], sizes = [2, 32], strides = [1, 1]} : vector<2x96xf32> to vector<2x32xf32>
    %60 = vector.extract_strided_slice %57 {offsets = [0, 64], sizes = [2, 32], strides = [1, 1]} : vector<2x96xf32> to vector<2x32xf32>
    %61 = vector.extract_strided_slice %51 {offsets = [0, 96], sizes = [2, 32], strides = [1, 1]} : vector<2x128xf32> to vector<2x32xf32>
    %62 = math.tanh %61 : vector<2x32xf32>
    %63 = arith.mulf %59, %41 : vector<2x32xf32>
    %64 = arith.mulf %58, %62 : vector<2x32xf32>
    %65 = arith.addf %63, %64 : vector<2x32xf32>
    %66 = math.tanh %65 : vector<2x32xf32>
    %67 = arith.mulf %60, %66 : vector<2x32xf32>
    %c1_i32 = arith.constant 1 : i32
    %68 = vector.broadcast %c1_i32 : i32 to vector<2x1xi32>
    %69 = arith.cmpi slt, %68, %11 : vector<2x1xi32>
    %70 = vector.shape_cast %69 : vector<2x1xi1> to vector<2x1xi1>
    %71 = vector.broadcast %70 : vector<2x1xi1> to vector<2x32xi1>
    %72 = arith.select %71, %65, %41 : vector<2x32xi1>, vector<2x32xf32>
    %73 = vector.shape_cast %69 : vector<2x1xi1> to vector<2x1xi1>
    %74 = vector.broadcast %73 : vector<2x1xi1> to vector<2x32xi1>
    %75 = arith.select %74, %67, %44 : vector<2x32xi1>, vector<2x32xf32>
    %76 = vector.extract_strided_slice %10 {offsets = [0, 2, 0], sizes = [2, 1, 128], strides = [1, 1, 1]} : vector<2x8x128xf32> to vector<2x1x128xf32>
    %77 = vector.shape_cast %76 : vector<2x1x128xf32> to vector<2x128xf32>
    %78 = arith.truncf %75 : vector<2x32xf32> to vector<2x32xbf16>
    %c0_22 = arith.constant 0 : index
    %c0_23 = arith.constant 0 : index
    %c0_24 = arith.constant 0 : index
    %79 = vector.load %arg4[%c0_22, %c0_23, %c0_24] : memref<1x32x128xbf16, #tpu.memory_space<vmem>>, vector<1x32x128xbf16>
    %80 = vector.shape_cast %79 : vector<1x32x128xbf16> to vector<32x128xbf16>
    %cst_25 = arith.constant dense<0.000000e+00> : vector<2x128xf32>
    %81 = tpu.matmul %78, %80, %cst_25 {dimension_numbers = #tpu.dot_dimension_numbers<[1], [0], [0], [1], [0, 0, 1, 1], [], []>} : vector<2x32xbf16>, vector<32x128xbf16>, vector<2x128xf32> -> vector<2x128xf32>
    %82 = arith.addf %77, %81 : vector<2x128xf32>
    %83 = vector.extract_strided_slice %82 {offsets = [0, 0], sizes = [2, 96], strides = [1, 1]} : vector<2x128xf32> to vector<2x96xf32>
    %84 = arith.negf %83 : vector<2x96xf32>
    %85 = math.exp %84 : vector<2x96xf32>
    %cst_26 = arith.constant 1.000000e+00 : f32
    %86 = vector.broadcast %cst_26 : f32 to vector<2x96xf32>
    %87 = arith.addf %86, %85 : vector<2x96xf32>
    %88 = arith.divf %86, %87 : vector<2x96xf32>
    %89 = vector.extract_strided_slice %88 {offsets = [0, 0], sizes = [2, 32], strides = [1, 1]} : vector<2x96xf32> to vector<2x32xf32>
    %90 = vector.extract_strided_slice %88 {offsets = [0, 32], sizes = [2, 32], strides = [1, 1]} : vector<2x96xf32> to vector<2x32xf32>
    %91 = vector.extract_strided_slice %88 {offsets = [0, 64], sizes = [2, 32], strides = [1, 1]} : vector<2x96xf32> to vector<2x32xf32>
    %92 = vector.extract_strided_slice %82 {offsets = [0, 96], sizes = [2, 32], strides = [1, 1]} : vector<2x128xf32> to vector<2x32xf32>
    %93 = math.tanh %92 : vector<2x32xf32>
    %94 = arith.mulf %90, %72 : vector<2x32xf32>
    %95 = arith.mulf %89, %93 : vector<2x32xf32>
    %96 = arith.addf %94, %95 : vector<2x32xf32>
    %97 = math.tanh %96 : vector<2x32xf32>
    %98 = arith.mulf %91, %97 : vector<2x32xf32>
    %c2_i32 = arith.constant 2 : i32
    %99 = vector.broadcast %c2_i32 : i32 to vector<2x1xi32>
    %100 = arith.cmpi slt, %99, %11 : vector<2x1xi32>
    %101 = vector.shape_cast %100 : vector<2x1xi1> to vector<2x1xi1>
    %102 = vector.broadcast %101 : vector<2x1xi1> to vector<2x32xi1>
    %103 = arith.select %102, %96, %72 : vector<2x32xi1>, vector<2x32xf32>
    %104 = vector.shape_cast %100 : vector<2x1xi1> to vector<2x1xi1>
    %105 = vector.broadcast %104 : vector<2x1xi1> to vector<2x32xi1>
    %106 = arith.select %105, %98, %75 : vector<2x32xi1>, vector<2x32xf32>
    %107 = vector.extract_strided_slice %10 {offsets = [0, 3, 0], sizes = [2, 1, 128], strides = [1, 1, 1]} : vector<2x8x128xf32> to vector<2x1x128xf32>
    %108 = vector.shape_cast %107 : vector<2x1x128xf32> to vector<2x128xf32>
    %109 = arith.truncf %106 : vector<2x32xf32> to vector<2x32xbf16>
    %c0_27 = arith.constant 0 : index
    %c0_28 = arith.constant 0 : index
    %c0_29 = arith.constant 0 : index
    %110 = vector.load %arg4[%c0_27, %c0_28, %c0_29] : memref<1x32x128xbf16, #tpu.memory_space<vmem>>, vector<1x32x128xbf16>
    %111 = vector.shape_cast %110 : vector<1x32x128xbf16> to vector<32x128xbf16>
    %cst_30 = arith.constant dense<0.000000e+00> : vector<2x128xf32>
    %112 = tpu.matmul %109, %111, %cst_30 {dimension_numbers = #tpu.dot_dimension_numbers<[1], [0], [0], [1], [0, 0, 1, 1], [], []>} : vector<2x32xbf16>, vector<32x128xbf16>, vector<2x128xf32> -> vector<2x128xf32>
    %113 = arith.addf %108, %112 : vector<2x128xf32>
    %114 = vector.extract_strided_slice %113 {offsets = [0, 0], sizes = [2, 96], strides = [1, 1]} : vector<2x128xf32> to vector<2x96xf32>
    %115 = arith.negf %114 : vector<2x96xf32>
    %116 = math.exp %115 : vector<2x96xf32>
    %cst_31 = arith.constant 1.000000e+00 : f32
    %117 = vector.broadcast %cst_31 : f32 to vector<2x96xf32>
    %118 = arith.addf %117, %116 : vector<2x96xf32>
    %119 = arith.divf %117, %118 : vector<2x96xf32>
    %120 = vector.extract_strided_slice %119 {offsets = [0, 0], sizes = [2, 32], strides = [1, 1]} : vector<2x96xf32> to vector<2x32xf32>
    %121 = vector.extract_strided_slice %119 {offsets = [0, 32], sizes = [2, 32], strides = [1, 1]} : vector<2x96xf32> to vector<2x32xf32>
    %122 = vector.extract_strided_slice %119 {offsets = [0, 64], sizes = [2, 32], strides = [1, 1]} : vector<2x96xf32> to vector<2x32xf32>
    %123 = vector.extract_strided_slice %113 {offsets = [0, 96], sizes = [2, 32], strides = [1, 1]} : vector<2x128xf32> to vector<2x32xf32>
    %124 = math.tanh %123 : vector<2x32xf32>
    %125 = arith.mulf %121, %103 : vector<2x32xf32>
    %126 = arith.mulf %120, %124 : vector<2x32xf32>
    %127 = arith.addf %125, %126 : vector<2x32xf32>
    %128 = math.tanh %127 : vector<2x32xf32>
    %129 = arith.mulf %122, %128 : vector<2x32xf32>
    %c3_i32 = arith.constant 3 : i32
    %130 = vector.broadcast %c3_i32 : i32 to vector<2x1xi32>
    %131 = arith.cmpi slt, %130, %11 : vector<2x1xi32>
    %132 = vector.shape_cast %131 : vector<2x1xi1> to vector<2x1xi1>
    %133 = vector.broadcast %132 : vector<2x1xi1> to vector<2x32xi1>
    %134 = arith.select %133, %127, %103 : vector<2x32xi1>, vector<2x32xf32>
    %135 = vector.shape_cast %131 : vector<2x1xi1> to vector<2x1xi1>
    %136 = vector.broadcast %135 : vector<2x1xi1> to vector<2x32xi1>
    %137 = arith.select %136, %129, %106 : vector<2x32xi1>, vector<2x32xf32>
    %138 = vector.extract_strided_slice %10 {offsets = [0, 4, 0], sizes = [2, 1, 128], strides = [1, 1, 1]} : vector<2x8x128xf32> to vector<2x1x128xf32>
    %139 = vector.shape_cast %138 : vector<2x1x128xf32> to vector<2x128xf32>
    %140 = arith.truncf %137 : vector<2x32xf32> to vector<2x32xbf16>
    %c0_32 = arith.constant 0 : index
    %c0_33 = arith.constant 0 : index
    %c0_34 = arith.constant 0 : index
    %141 = vector.load %arg4[%c0_32, %c0_33, %c0_34] : memref<1x32x128xbf16, #tpu.memory_space<vmem>>, vector<1x32x128xbf16>
    %142 = vector.shape_cast %141 : vector<1x32x128xbf16> to vector<32x128xbf16>
    %cst_35 = arith.constant dense<0.000000e+00> : vector<2x128xf32>
    %143 = tpu.matmul %140, %142, %cst_35 {dimension_numbers = #tpu.dot_dimension_numbers<[1], [0], [0], [1], [0, 0, 1, 1], [], []>} : vector<2x32xbf16>, vector<32x128xbf16>, vector<2x128xf32> -> vector<2x128xf32>
    %144 = arith.addf %139, %143 : vector<2x128xf32>
    %145 = vector.extract_strided_slice %144 {offsets = [0, 0], sizes = [2, 96], strides = [1, 1]} : vector<2x128xf32> to vector<2x96xf32>
    %146 = arith.negf %145 : vector<2x96xf32>
    %147 = math.exp %146 : vector<2x96xf32>
    %cst_36 = arith.constant 1.000000e+00 : f32
    %148 = vector.broadcast %cst_36 : f32 to vector<2x96xf32>
    %149 = arith.addf %148, %147 : vector<2x96xf32>
    %150 = arith.divf %148, %149 : vector<2x96xf32>
    %151 = vector.extract_strided_slice %150 {offsets = [0, 0], sizes = [2, 32], strides = [1, 1]} : vector<2x96xf32> to vector<2x32xf32>
    %152 = vector.extract_strided_slice %150 {offsets = [0, 32], sizes = [2, 32], strides = [1, 1]} : vector<2x96xf32> to vector<2x32xf32>
    %153 = vector.extract_strided_slice %150 {offsets = [0, 64], sizes = [2, 32], strides = [1, 1]} : vector<2x96xf32> to vector<2x32xf32>
    %154 = vector.extract_strided_slice %144 {offsets = [0, 96], sizes = [2, 32], strides = [1, 1]} : vector<2x128xf32> to vector<2x32xf32>
    %155 = math.tanh %154 : vector<2x32xf32>
    %156 = arith.mulf %152, %134 : vector<2x32xf32>
    %157 = arith.mulf %151, %155 : vector<2x32xf32>
    %158 = arith.addf %156, %157 : vector<2x32xf32>
    %159 = math.tanh %158 : vector<2x32xf32>
    %160 = arith.mulf %153, %159 : vector<2x32xf32>
    %c4_i32 = arith.constant 4 : i32
    %161 = vector.broadcast %c4_i32 : i32 to vector<2x1xi32>
    %162 = arith.cmpi slt, %161, %11 : vector<2x1xi32>
    %163 = vector.shape_cast %162 : vector<2x1xi1> to vector<2x1xi1>
    %164 = vector.broadcast %163 : vector<2x1xi1> to vector<2x32xi1>
    %165 = arith.select %164, %158, %134 : vector<2x32xi1>, vector<2x32xf32>
    %166 = vector.shape_cast %162 : vector<2x1xi1> to vector<2x1xi1>
    %167 = vector.broadcast %166 : vector<2x1xi1> to vector<2x32xi1>
    %168 = arith.select %167, %160, %137 : vector<2x32xi1>, vector<2x32xf32>
    %169 = vector.extract_strided_slice %10 {offsets = [0, 5, 0], sizes = [2, 1, 128], strides = [1, 1, 1]} : vector<2x8x128xf32> to vector<2x1x128xf32>
    %170 = vector.shape_cast %169 : vector<2x1x128xf32> to vector<2x128xf32>
    %171 = arith.truncf %168 : vector<2x32xf32> to vector<2x32xbf16>
    %c0_37 = arith.constant 0 : index
    %c0_38 = arith.constant 0 : index
    %c0_39 = arith.constant 0 : index
    %172 = vector.load %arg4[%c0_37, %c0_38, %c0_39] : memref<1x32x128xbf16, #tpu.memory_space<vmem>>, vector<1x32x128xbf16>
    %173 = vector.shape_cast %172 : vector<1x32x128xbf16> to vector<32x128xbf16>
    %cst_40 = arith.constant dense<0.000000e+00> : vector<2x128xf32>
    %174 = tpu.matmul %171, %173, %cst_40 {dimension_numbers = #tpu.dot_dimension_numbers<[1], [0], [0], [1], [0, 0, 1, 1], [], []>} : vector<2x32xbf16>, vector<32x128xbf16>, vector<2x128xf32> -> vector<2x128xf32>
    %175 = arith.addf %170, %174 : vector<2x128xf32>
    %176 = vector.extract_strided_slice %175 {offsets = [0, 0], sizes = [2, 96], strides = [1, 1]} : vector<2x128xf32> to vector<2x96xf32>
    %177 = arith.negf %176 : vector<2x96xf32>
    %178 = math.exp %177 : vector<2x96xf32>
    %cst_41 = arith.constant 1.000000e+00 : f32
    %179 = vector.broadcast %cst_41 : f32 to vector<2x96xf32>
    %180 = arith.addf %179, %178 : vector<2x96xf32>
    %181 = arith.divf %179, %180 : vector<2x96xf32>
    %182 = vector.extract_strided_slice %181 {offsets = [0, 0], sizes = [2, 32], strides = [1, 1]} : vector<2x96xf32> to vector<2x32xf32>
    %183 = vector.extract_strided_slice %181 {offsets = [0, 32], sizes = [2, 32], strides = [1, 1]} : vector<2x96xf32> to vector<2x32xf32>
    %184 = vector.extract_strided_slice %181 {offsets = [0, 64], sizes = [2, 32], strides = [1, 1]} : vector<2x96xf32> to vector<2x32xf32>
    %185 = vector.extract_strided_slice %175 {offsets = [0, 96], sizes = [2, 32], strides = [1, 1]} : vector<2x128xf32> to vector<2x32xf32>
    %186 = math.tanh %185 : vector<2x32xf32>
    %187 = arith.mulf %183, %165 : vector<2x32xf32>
    %188 = arith.mulf %182, %186 : vector<2x32xf32>
    %189 = arith.addf %187, %188 : vector<2x32xf32>
    %190 = math.tanh %189 : vector<2x32xf32>
    %191 = arith.mulf %184, %190 : vector<2x32xf32>
    %c5_i32 = arith.constant 5 : i32
    %192 = vector.broadcast %c5_i32 : i32 to vector<2x1xi32>
    %193 = arith.cmpi slt, %192, %11 : vector<2x1xi32>
    %194 = vector.shape_cast %193 : vector<2x1xi1> to vector<2x1xi1>
    %195 = vector.broadcast %194 : vector<2x1xi1> to vector<2x32xi1>
    %196 = arith.select %195, %189, %165 : vector<2x32xi1>, vector<2x32xf32>
    %197 = vector.shape_cast %193 : vector<2x1xi1> to vector<2x1xi1>
    %198 = vector.broadcast %197 : vector<2x1xi1> to vector<2x32xi1>
    %199 = arith.select %198, %191, %168 : vector<2x32xi1>, vector<2x32xf32>
    %200 = vector.extract_strided_slice %10 {offsets = [0, 6, 0], sizes = [2, 1, 128], strides = [1, 1, 1]} : vector<2x8x128xf32> to vector<2x1x128xf32>
    %201 = vector.shape_cast %200 : vector<2x1x128xf32> to vector<2x128xf32>
    %202 = arith.truncf %199 : vector<2x32xf32> to vector<2x32xbf16>
    %c0_42 = arith.constant 0 : index
    %c0_43 = arith.constant 0 : index
    %c0_44 = arith.constant 0 : index
    %203 = vector.load %arg4[%c0_42, %c0_43, %c0_44] : memref<1x32x128xbf16, #tpu.memory_space<vmem>>, vector<1x32x128xbf16>
    %204 = vector.shape_cast %203 : vector<1x32x128xbf16> to vector<32x128xbf16>
    %cst_45 = arith.constant dense<0.000000e+00> : vector<2x128xf32>
    %205 = tpu.matmul %202, %204, %cst_45 {dimension_numbers = #tpu.dot_dimension_numbers<[1], [0], [0], [1], [0, 0, 1, 1], [], []>} : vector<2x32xbf16>, vector<32x128xbf16>, vector<2x128xf32> -> vector<2x128xf32>
    %206 = arith.addf %201, %205 : vector<2x128xf32>
    %207 = vector.extract_strided_slice %206 {offsets = [0, 0], sizes = [2, 96], strides = [1, 1]} : vector<2x128xf32> to vector<2x96xf32>
    %208 = arith.negf %207 : vector<2x96xf32>
    %209 = math.exp %208 : vector<2x96xf32>
    %cst_46 = arith.constant 1.000000e+00 : f32
    %210 = vector.broadcast %cst_46 : f32 to vector<2x96xf32>
    %211 = arith.addf %210, %209 : vector<2x96xf32>
    %212 = arith.divf %210, %211 : vector<2x96xf32>
    %213 = vector.extract_strided_slice %212 {offsets = [0, 0], sizes = [2, 32], strides = [1, 1]} : vector<2x96xf32> to vector<2x32xf32>
    %214 = vector.extract_strided_slice %212 {offsets = [0, 32], sizes = [2, 32], strides = [1, 1]} : vector<2x96xf32> to vector<2x32xf32>
    %215 = vector.extract_strided_slice %212 {offsets = [0, 64], sizes = [2, 32], strides = [1, 1]} : vector<2x96xf32> to vector<2x32xf32>
    %216 = vector.extract_strided_slice %206 {offsets = [0, 96], sizes = [2, 32], strides = [1, 1]} : vector<2x128xf32> to vector<2x32xf32>
    %217 = math.tanh %216 : vector<2x32xf32>
    %218 = arith.mulf %214, %196 : vector<2x32xf32>
    %219 = arith.mulf %213, %217 : vector<2x32xf32>
    %220 = arith.addf %218, %219 : vector<2x32xf32>
    %221 = math.tanh %220 : vector<2x32xf32>
    %222 = arith.mulf %215, %221 : vector<2x32xf32>
    %c6_i32 = arith.constant 6 : i32
    %223 = vector.broadcast %c6_i32 : i32 to vector<2x1xi32>
    %224 = arith.cmpi slt, %223, %11 : vector<2x1xi32>
    %225 = vector.shape_cast %224 : vector<2x1xi1> to vector<2x1xi1>
    %226 = vector.broadcast %225 : vector<2x1xi1> to vector<2x32xi1>
    %227 = arith.select %226, %220, %196 : vector<2x32xi1>, vector<2x32xf32>
    %228 = vector.shape_cast %224 : vector<2x1xi1> to vector<2x1xi1>
    %229 = vector.broadcast %228 : vector<2x1xi1> to vector<2x32xi1>
    %230 = arith.select %229, %222, %199 : vector<2x32xi1>, vector<2x32xf32>
    %231 = vector.extract_strided_slice %10 {offsets = [0, 7, 0], sizes = [2, 1, 128], strides = [1, 1, 1]} : vector<2x8x128xf32> to vector<2x1x128xf32>
    %232 = vector.shape_cast %231 : vector<2x1x128xf32> to vector<2x128xf32>
    %233 = arith.truncf %230 : vector<2x32xf32> to vector<2x32xbf16>
    %c0_47 = arith.constant 0 : index
    %c0_48 = arith.constant 0 : index
    %c0_49 = arith.constant 0 : index
    %234 = vector.load %arg4[%c0_47, %c0_48, %c0_49] : memref<1x32x128xbf16, #tpu.memory_space<vmem>>, vector<1x32x128xbf16>
    %235 = vector.shape_cast %234 : vector<1x32x128xbf16> to vector<32x128xbf16>
    %cst_50 = arith.constant dense<0.000000e+00> : vector<2x128xf32>
    %236 = tpu.matmul %233, %235, %cst_50 {dimension_numbers = #tpu.dot_dimension_numbers<[1], [0], [0], [1], [0, 0, 1, 1], [], []>} : vector<2x32xbf16>, vector<32x128xbf16>, vector<2x128xf32> -> vector<2x128xf32>
    %237 = arith.addf %232, %236 : vector<2x128xf32>
    %238 = vector.extract_strided_slice %237 {offsets = [0, 0], sizes = [2, 96], strides = [1, 1]} : vector<2x128xf32> to vector<2x96xf32>
    %239 = arith.negf %238 : vector<2x96xf32>
    %240 = math.exp %239 : vector<2x96xf32>
    %cst_51 = arith.constant 1.000000e+00 : f32
    %241 = vector.broadcast %cst_51 : f32 to vector<2x96xf32>
    %242 = arith.addf %241, %240 : vector<2x96xf32>
    %243 = arith.divf %241, %242 : vector<2x96xf32>
    %244 = vector.extract_strided_slice %243 {offsets = [0, 0], sizes = [2, 32], strides = [1, 1]} : vector<2x96xf32> to vector<2x32xf32>
    %245 = vector.extract_strided_slice %243 {offsets = [0, 32], sizes = [2, 32], strides = [1, 1]} : vector<2x96xf32> to vector<2x32xf32>
    %246 = vector.extract_strided_slice %243 {offsets = [0, 64], sizes = [2, 32], strides = [1, 1]} : vector<2x96xf32> to vector<2x32xf32>
    %247 = vector.extract_strided_slice %237 {offsets = [0, 96], sizes = [2, 32], strides = [1, 1]} : vector<2x128xf32> to vector<2x32xf32>
    %248 = math.tanh %247 : vector<2x32xf32>
    %249 = arith.mulf %245, %227 : vector<2x32xf32>
    %250 = arith.mulf %244, %248 : vector<2x32xf32>
    %251 = arith.addf %249, %250 : vector<2x32xf32>
    %252 = math.tanh %251 : vector<2x32xf32>
    %253 = arith.mulf %246, %252 : vector<2x32xf32>
    %c7_i32 = arith.constant 7 : i32
    %254 = vector.broadcast %c7_i32 : i32 to vector<2x1xi32>
    %255 = arith.cmpi slt, %254, %11 : vector<2x1xi32>
    %256 = vector.shape_cast %255 : vector<2x1xi1> to vector<2x1xi1>
    %257 = vector.broadcast %256 : vector<2x1xi1> to vector<2x32xi1>
    %258 = arith.select %257, %253, %230 : vector<2x32xi1>, vector<2x32xf32>
    %c0_52 = arith.constant 0 : index
    %c0_53 = arith.constant 0 : index
    %c0_54 = arith.constant 0 : index
    %259 = vector.load %arg6[%c0_52, %c0_53, %c0_54] : memref<1x2x32xf32, #tpu.memory_space<vmem>>, vector<1x2x32xf32>
    %260 = vector.shape_cast %259 : vector<1x2x32xf32> to vector<2x32xf32>
    %261 = vector.shape_cast %258 : vector<2x32xf32> to vector<1x2x32xf32>
    tpu.vector_store %arg6[%c0_52, %c0_53, %c0_54], %261 {strides = array<i32>} : memref<1x2x32xf32, #tpu.memory_space<vmem>>, vector<1x2x32xf32>,
    return
  }
  func.func @transform_0(%arg0: i32) -> (i32, i32, i32) {
    %c0_i32 = arith.constant 0 : i32
    %c0_i32_0 = arith.constant 0 : i32
    %c0_i32_1 = arith.constant 0 : i32
    %c0_i32_2 = arith.constant 0 : i32
    return %c0_i32, %c0_i32_0, %c0_i32_1 : i32, i32, i32
  }
  func.func @transform_1(%arg0: i32) -> (i32, i32) {
    %c0_i32 = arith.constant 0 : i32
    %c0_i32_0 = arith.constant 0 : i32
    %c0_i32_1 = arith.constant 0 : i32
    return %c0_i32, %c0_i32_0 : i32, i32
  }
  func.func @transform_2(%arg0: i32) -> (i32, i32, i32) {
    %c0_i32 = arith.constant 0 : i32
    %c0_i32_0 = arith.constant 0 : i32
    %c0_i32_1 = arith.constant 0 : i32
    return %arg0, %c0_i32, %c0_i32_0 : i32, i32, i32
  }
  func.func @transform_3(%arg0: i32) -> (i32, i32, i32) {
    %c0_i32 = arith.constant 0 : i32
    %c0_i32_0 = arith.constant 0 : i32
    %c0_i32_1 = arith.constant 0 : i32
    return %arg0, %c0_i32, %c0_i32_0 : i32, i32, i32
  }
  func.func @transform_4(%arg0: i32) -> (i32, i32, i32) {
    %c0_i32 = arith.constant 0 : i32
    %c0_i32_0 = arith.constant 0 : i32
    %c0_i32_1 = arith.constant 0 : i32
    return %arg0, %c0_i32, %c0_i32_0 : i32, i32, i32
  }
  func.func @transform_5(%arg0: i32) -> (i32, i32, i32) {
    %c0_i32 = arith.constant 0 : i32
    %c0_i32_0 = arith.constant 0 : i32
    %c0_i32_1 = arith.constant 0 : i32
    return %arg0, %c0_i32, %c0_i32_0 : i32, i32, i32
  }
}

module attributes {stable_mosaic.version = 11 : i64} {
  func.func @_recipe_embed_kernel(%arg0: i32, %arg1: memref<2x32xf32, #tpu.memory_space<vmem>>, %arg2: memref<2x32xf32, #tpu.memory_space<vmem>>, %arg3: memref<2x32xf32, #tpu.memory_space<vmem>>, %arg4: memref<32x128xbf16, #tpu.memory_space<vmem>>, %arg5: memref<32x128xbf16, #tpu.memory_space<vmem>>, %arg6: memref<32x128xbf16, #tpu.memory_space<vmem>>, %arg7: memref<1x128xf32, #tpu.memory_space<vmem>>, %arg8: memref<2x128xf32, #tpu.memory_space<vmem>>) attributes {dimension_semantics = [#tpu.dimension_semantics<arbitrary>], iteration_bounds = array<i64: 1>, scalar_prefetch = 0 : i64, scratch_operands = 0 : i64, tpu.core_type = #tpu.core_type<tc>, window_params = [{pipeline_mode = #tpu.pipeline_mode<synchronous>, transform_indices = @transform_0, window_bounds = array<i64: 2, 32>}, {pipeline_mode = #tpu.pipeline_mode<synchronous>, transform_indices = @transform_1, window_bounds = array<i64: 2, 32>}, {pipeline_mode = #tpu.pipeline_mode<synchronous>, transform_indices = @transform_2, window_bounds = array<i64: 2, 32>}, {pipeline_mode = #tpu.pipeline_mode<synchronous>, transform_indices = @transform_3, window_bounds = array<i64: 32, 128>}, {pipeline_mode = #tpu.pipeline_mode<synchronous>, transform_indices = @transform_4, window_bounds = array<i64: 32, 128>}, {pipeline_mode = #tpu.pipeline_mode<synchronous>, transform_indices = @transform_5, window_bounds = array<i64: 32, 128>}, {pipeline_mode = #tpu.pipeline_mode<synchronous>, transform_indices = @transform_6, window_bounds = array<i64: 1, 128>}, {pipeline_mode = #tpu.pipeline_mode<synchronous>, transform_indices = @transform_7, window_bounds = array<i64: 2, 128>}]} {
    %c0 = arith.constant 0 : index
    %c0_0 = arith.constant 0 : index
    %0 = vector.load %arg1[%c0, %c0_0] : memref<2x32xf32, #tpu.memory_space<vmem>>, vector<2x32xf32>
    %1 = arith.truncf %0 : vector<2x32xf32> to vector<2x32xbf16>
    %c0_1 = arith.constant 0 : index
    %c0_2 = arith.constant 0 : index
    %2 = vector.load %arg4[%c0_1, %c0_2] : memref<32x128xbf16, #tpu.memory_space<vmem>>, vector<32x128xbf16>
    %cst = arith.constant dense<0.000000e+00> : vector<2x128xf32>
    %3 = tpu.matmul %1, %2, %cst {dimension_numbers = #tpu.dot_dimension_numbers<[1], [0], [0], [1], [0, 0, 1, 1], [], []>} : vector<2x32xbf16>, vector<32x128xbf16>, vector<2x128xf32> -> vector<2x128xf32>
    %c0_3 = arith.constant 0 : index
    %c0_4 = arith.constant 0 : index
    %4 = vector.load %arg2[%c0_3, %c0_4] : memref<2x32xf32, #tpu.memory_space<vmem>>, vector<2x32xf32>
    %5 = arith.truncf %4 : vector<2x32xf32> to vector<2x32xbf16>
    %c0_5 = arith.constant 0 : index
    %c0_6 = arith.constant 0 : index
    %6 = vector.load %arg5[%c0_5, %c0_6] : memref<32x128xbf16, #tpu.memory_space<vmem>>, vector<32x128xbf16>
    %cst_7 = arith.constant dense<0.000000e+00> : vector<2x128xf32>
    %7 = tpu.matmul %5, %6, %cst_7 {dimension_numbers = #tpu.dot_dimension_numbers<[1], [0], [0], [1], [0, 0, 1, 1], [], []>} : vector<2x32xbf16>, vector<32x128xbf16>, vector<2x128xf32> -> vector<2x128xf32>
    %8 = arith.addf %3, %7 : vector<2x128xf32>
    %c0_8 = arith.constant 0 : index
    %c0_9 = arith.constant 0 : index
    %9 = vector.load %arg3[%c0_8, %c0_9] : memref<2x32xf32, #tpu.memory_space<vmem>>, vector<2x32xf32>
    %10 = arith.truncf %9 : vector<2x32xf32> to vector<2x32xbf16>
    %c0_10 = arith.constant 0 : index
    %c0_11 = arith.constant 0 : index
    %11 = vector.load %arg6[%c0_10, %c0_11] : memref<32x128xbf16, #tpu.memory_space<vmem>>, vector<32x128xbf16>
    %cst_12 = arith.constant dense<0.000000e+00> : vector<2x128xf32>
    %12 = tpu.matmul %10, %11, %cst_12 {dimension_numbers = #tpu.dot_dimension_numbers<[1], [0], [0], [1], [0, 0, 1, 1], [], []>} : vector<2x32xbf16>, vector<32x128xbf16>, vector<2x128xf32> -> vector<2x128xf32>
    %13 = arith.addf %8, %12 : vector<2x128xf32>
    %c0_13 = arith.constant 0 : index
    %c0_14 = arith.constant 0 : index
    %14 = vector.load %arg7[%c0_13, %c0_14] : memref<1x128xf32, #tpu.memory_space<vmem>>, vector<1x128xf32>
    %15 = vector.broadcast %14 : vector<1x128xf32> to vector<2x128xf32>
    %16 = arith.addf %13, %15 : vector<2x128xf32>
    %17 = math.tanh %16 : vector<2x128xf32>
    %c0_15 = arith.constant 0 : index
    %c0_16 = arith.constant 0 : index
    %18 = vector.load %arg8[%c0_15, %c0_16] : memref<2x128xf32, #tpu.memory_space<vmem>>, vector<2x128xf32>
    tpu.vector_store %arg8[%c0_15, %c0_16], %17 {strides = array<i32>} : memref<2x128xf32, #tpu.memory_space<vmem>>, vector<2x128xf32>,
    return
  }
  func.func @transform_0(%arg0: i32) -> (i32, i32) {
    %c0_i32 = arith.constant 0 : i32
    %c0_i32_0 = arith.constant 0 : i32
    %c0_i32_1 = arith.constant 0 : i32
    return %c0_i32, %c0_i32_0 : i32, i32
  }
  func.func @transform_1(%arg0: i32) -> (i32, i32) {
    %c0_i32 = arith.constant 0 : i32
    %c0_i32_0 = arith.constant 0 : i32
    %c0_i32_1 = arith.constant 0 : i32
    return %c0_i32, %c0_i32_0 : i32, i32
  }
  func.func @transform_2(%arg0: i32) -> (i32, i32) {
    %c0_i32 = arith.constant 0 : i32
    %c0_i32_0 = arith.constant 0 : i32
    %c0_i32_1 = arith.constant 0 : i32
    return %c0_i32, %c0_i32_0 : i32, i32
  }
  func.func @transform_3(%arg0: i32) -> (i32, i32) {
    %c0_i32 = arith.constant 0 : i32
    %c0_i32_0 = arith.constant 0 : i32
    %c0_i32_1 = arith.constant 0 : i32
    return %c0_i32, %c0_i32_0 : i32, i32
  }
  func.func @transform_4(%arg0: i32) -> (i32, i32) {
    %c0_i32 = arith.constant 0 : i32
    %c0_i32_0 = arith.constant 0 : i32
    %c0_i32_1 = arith.constant 0 : i32
    return %c0_i32, %c0_i32_0 : i32, i32
  }
  func.func @transform_5(%arg0: i32) -> (i32, i32) {
    %c0_i32 = arith.constant 0 : i32
    %c0_i32_0 = arith.constant 0 : i32
    %c0_i32_1 = arith.constant 0 : i32
    return %c0_i32, %c0_i32_0 : i32, i32
  }
  func.func @transform_6(%arg0: i32) -> (i32, i32) {
    %c0_i32 = arith.constant 0 : i32
    %c0_i32_0 = arith.constant 0 : i32
    %c0_i32_1 = arith.constant 0 : i32
    return %c0_i32, %c0_i32_0 : i32, i32
  }
  func.func @transform_7(%arg0: i32) -> (i32, i32) {
    %c0_i32 = arith.constant 0 : i32
    %c0_i32_0 = arith.constant 0 : i32
    %c0_i32_1 = arith.constant 0 : i32
    return %c0_i32, %c0_i32_0 : i32, i32
  }
}

module attributes {stable_mosaic.version = 11 : i64} {
  func.func @_lstm_dir_kernel(%arg0: i32, %arg1: memref<2x8x32xf32, #tpu.memory_space<vmem>>, %arg2: memref<2x1xi32, #tpu.memory_space<vmem>>, %arg3: memref<1x32x128xbf16, #tpu.memory_space<vmem>>, %arg4: memref<1x32x128xbf16, #tpu.memory_space<vmem>>, %arg5: memref<1x1x128xf32, #tpu.memory_space<vmem>>, %arg6: memref<1x2x32xf32, #tpu.memory_space<vmem>>) attributes {dimension_semantics = [#tpu.dimension_semantics<parallel>], iteration_bounds = array<i64: 2>, scalar_prefetch = 0 : i64, scratch_operands = 0 : i64, tpu.core_type = #tpu.core_type<tc>, window_params = [{pipeline_mode = #tpu.pipeline_mode<synchronous>, transform_indices = @transform_0, window_bounds = array<i64: 2, 8, 32>}, {pipeline_mode = #tpu.pipeline_mode<synchronous>, transform_indices = @transform_1, window_bounds = array<i64: 2, 1>}, {transform_indices = @transform_2, window_bounds = array<i64: 1, 32, 128>}, {transform_indices = @transform_3, window_bounds = array<i64: 1, 32, 128>}, {transform_indices = @transform_4, window_bounds = array<i64: 1, 1, 128>}, {transform_indices = @transform_5, window_bounds = array<i64: 1, 2, 32>}]} {
    %c0 = arith.constant 0 : index
    %c0_0 = arith.constant 0 : index
    %c0_1 = arith.constant 0 : index
    %0 = vector.load %arg1[%c0, %c0_0, %c0_1] : memref<2x8x32xf32, #tpu.memory_space<vmem>>, vector<2x8x32xf32>
    %1 = vector.shape_cast %0 : vector<2x8x32xf32> to vector<16x32xf32>
    %2 = arith.truncf %1 : vector<16x32xf32> to vector<16x32xbf16>
    %c0_2 = arith.constant 0 : index
    %c0_3 = arith.constant 0 : index
    %c0_4 = arith.constant 0 : index
    %3 = vector.load %arg3[%c0_2, %c0_3, %c0_4] : memref<1x32x128xbf16, #tpu.memory_space<vmem>>, vector<1x32x128xbf16>
    %4 = vector.shape_cast %3 : vector<1x32x128xbf16> to vector<32x128xbf16>
    %cst = arith.constant dense<0.000000e+00> : vector<16x128xf32>
    %5 = tpu.matmul %2, %4, %cst {dimension_numbers = #tpu.dot_dimension_numbers<[1], [0], [0], [1], [0, 0, 1, 1], [], []>} : vector<16x32xbf16>, vector<32x128xbf16>, vector<16x128xf32> -> vector<16x128xf32>
    %c0_5 = arith.constant 0 : index
    %c0_6 = arith.constant 0 : index
    %c0_7 = arith.constant 0 : index
    %6 = vector.load %arg5[%c0_5, %c0_6, %c0_7] : memref<1x1x128xf32, #tpu.memory_space<vmem>>, vector<1x1x128xf32>
    %7 = vector.shape_cast %6 : vector<1x1x128xf32> to vector<1x128xf32>
    %8 = vector.broadcast %7 : vector<1x128xf32> to vector<16x128xf32>
    %9 = arith.addf %5, %8 : vector<16x128xf32>
    %10 = vector.shape_cast %9 : vector<16x128xf32> to vector<2x8x128xf32>
    %c0_8 = arith.constant 0 : index
    %c0_9 = arith.constant 0 : index
    %11 = vector.load %arg2[%c0_8, %c0_9] : memref<2x1xi32, #tpu.memory_space<vmem>>, vector<2x1xi32>
    %c1_i32 = arith.constant 1 : i32
    %12 = arith.cmpi eq, %arg0, %c1_i32 : i32
    %cst_10 = arith.constant 0.000000e+00 : f32
    %13 = vector.broadcast %cst_10 : f32 to vector<2x32xf32>
    %cst_11 = arith.constant 0.000000e+00 : f32
    %14 = vector.broadcast %cst_11 : f32 to vector<2x32xf32>
    %15 = vector.extract_strided_slice %10 {offsets = [0, 7, 0], sizes = [2, 1, 128], strides = [1, 1, 1]} : vector<2x8x128xf32> to vector<2x1x128xf32>
    %16 = vector.shape_cast %15 : vector<2x1x128xf32> to vector<2x128xf32>
    %17 = vector.extract_strided_slice %10 {offsets = [0, 0, 0], sizes = [2, 1, 128], strides = [1, 1, 1]} : vector<2x8x128xf32> to vector<2x1x128xf32>
    %18 = vector.shape_cast %17 : vector<2x1x128xf32> to vector<2x128xf32>
    %19 = arith.select %12, %16, %18 : vector<2x128xf32>
    %c7_i32 = arith.constant 7 : i32
    %c0_i32 = arith.constant 0 : i32
    %20 = arith.select %12, %c7_i32, %c0_i32 : i32
    %21 = arith.truncf %13 : vector<2x32xf32> to vector<2x32xbf16>
    %c0_12 = arith.constant 0 : index
    %c0_13 = arith.constant 0 : index
    %c0_14 = arith.constant 0 : index
    %22 = vector.load %arg4[%c0_12, %c0_13, %c0_14] : memref<1x32x128xbf16, #tpu.memory_space<vmem>>, vector<1x32x128xbf16>
    %23 = vector.shape_cast %22 : vector<1x32x128xbf16> to vector<32x128xbf16>
    %cst_15 = arith.constant dense<0.000000e+00> : vector<2x128xf32>
    %24 = tpu.matmul %21, %23, %cst_15 {dimension_numbers = #tpu.dot_dimension_numbers<[1], [0], [0], [1], [0, 0, 1, 1], [], []>} : vector<2x32xbf16>, vector<32x128xbf16>, vector<2x128xf32> -> vector<2x128xf32>
    %25 = arith.addf %19, %24 : vector<2x128xf32>
    %26 = vector.extract_strided_slice %25 {offsets = [0, 0], sizes = [2, 96], strides = [1, 1]} : vector<2x128xf32> to vector<2x96xf32>
    %27 = arith.negf %26 : vector<2x96xf32>
    %28 = math.exp %27 : vector<2x96xf32>
    %cst_16 = arith.constant 1.000000e+00 : f32
    %29 = vector.broadcast %cst_16 : f32 to vector<2x96xf32>
    %30 = arith.addf %29, %28 : vector<2x96xf32>
    %31 = arith.divf %29, %30 : vector<2x96xf32>
    %32 = vector.extract_strided_slice %31 {offsets = [0, 0], sizes = [2, 32], strides = [1, 1]} : vector<2x96xf32> to vector<2x32xf32>
    %33 = vector.extract_strided_slice %31 {offsets = [0, 32], sizes = [2, 32], strides = [1, 1]} : vector<2x96xf32> to vector<2x32xf32>
    %34 = vector.extract_strided_slice %31 {offsets = [0, 64], sizes = [2, 32], strides = [1, 1]} : vector<2x96xf32> to vector<2x32xf32>
    %35 = vector.extract_strided_slice %25 {offsets = [0, 96], sizes = [2, 32], strides = [1, 1]} : vector<2x128xf32> to vector<2x32xf32>
    %36 = math.tanh %35 : vector<2x32xf32>
    %37 = arith.mulf %33, %14 : vector<2x32xf32>
    %38 = arith.mulf %32, %36 : vector<2x32xf32>
    %39 = arith.addf %37, %38 : vector<2x32xf32>
    %40 = math.tanh %39 : vector<2x32xf32>
    %41 = arith.mulf %34, %40 : vector<2x32xf32>
    %42 = vector.broadcast %20 : i32 to vector<2x1xi32>
    %43 = arith.cmpi slt, %42, %11 : vector<2x1xi32>
    %44 = vector.shape_cast %43 : vector<2x1xi1> to vector<2x1xi1>
    %45 = vector.broadcast %44 : vector<2x1xi1> to vector<2x32xi1>
    %46 = arith.select %45, %39, %14 : vector<2x32xi1>, vector<2x32xf32>
    %47 = vector.shape_cast %43 : vector<2x1xi1> to vector<2x1xi1>
    %48 = vector.broadcast %47 : vector<2x1xi1> to vector<2x32xi1>
    %49 = arith.select %48, %41, %13 : vector<2x32xi1>, vector<2x32xf32>
    %50 = vector.extract_strided_slice %10 {offsets = [0, 6, 0], sizes = [2, 1, 128], strides = [1, 1, 1]} : vector<2x8x128xf32> to vector<2x1x128xf32>
    %51 = vector.shape_cast %50 : vector<2x1x128xf32> to vector<2x128xf32>
    %52 = vector.extract_strided_slice %10 {offsets = [0, 1, 0], sizes = [2, 1, 128], strides = [1, 1, 1]} : vector<2x8x128xf32> to vector<2x1x128xf32>
    %53 = vector.shape_cast %52 : vector<2x1x128xf32> to vector<2x128xf32>
    %54 = arith.select %12, %51, %53 : vector<2x128xf32>
    %c6_i32 = arith.constant 6 : i32
    %c1_i32_17 = arith.constant 1 : i32
    %55 = arith.select %12, %c6_i32, %c1_i32_17 : i32
    %56 = arith.truncf %49 : vector<2x32xf32> to vector<2x32xbf16>
    %c0_18 = arith.constant 0 : index
    %c0_19 = arith.constant 0 : index
    %c0_20 = arith.constant 0 : index
    %57 = vector.load %arg4[%c0_18, %c0_19, %c0_20] : memref<1x32x128xbf16, #tpu.memory_space<vmem>>, vector<1x32x128xbf16>
    %58 = vector.shape_cast %57 : vector<1x32x128xbf16> to vector<32x128xbf16>
    %cst_21 = arith.constant dense<0.000000e+00> : vector<2x128xf32>
    %59 = tpu.matmul %56, %58, %cst_21 {dimension_numbers = #tpu.dot_dimension_numbers<[1], [0], [0], [1], [0, 0, 1, 1], [], []>} : vector<2x32xbf16>, vector<32x128xbf16>, vector<2x128xf32> -> vector<2x128xf32>
    %60 = arith.addf %54, %59 : vector<2x128xf32>
    %61 = vector.extract_strided_slice %60 {offsets = [0, 0], sizes = [2, 96], strides = [1, 1]} : vector<2x128xf32> to vector<2x96xf32>
    %62 = arith.negf %61 : vector<2x96xf32>
    %63 = math.exp %62 : vector<2x96xf32>
    %cst_22 = arith.constant 1.000000e+00 : f32
    %64 = vector.broadcast %cst_22 : f32 to vector<2x96xf32>
    %65 = arith.addf %64, %63 : vector<2x96xf32>
    %66 = arith.divf %64, %65 : vector<2x96xf32>
    %67 = vector.extract_strided_slice %66 {offsets = [0, 0], sizes = [2, 32], strides = [1, 1]} : vector<2x96xf32> to vector<2x32xf32>
    %68 = vector.extract_strided_slice %66 {offsets = [0, 32], sizes = [2, 32], strides = [1, 1]} : vector<2x96xf32> to vector<2x32xf32>
    %69 = vector.extract_strided_slice %66 {offsets = [0, 64], sizes = [2, 32], strides = [1, 1]} : vector<2x96xf32> to vector<2x32xf32>
    %70 = vector.extract_strided_slice %60 {offsets = [0, 96], sizes = [2, 32], strides = [1, 1]} : vector<2x128xf32> to vector<2x32xf32>
    %71 = math.tanh %70 : vector<2x32xf32>
    %72 = arith.mulf %68, %46 : vector<2x32xf32>
    %73 = arith.mulf %67, %71 : vector<2x32xf32>
    %74 = arith.addf %72, %73 : vector<2x32xf32>
    %75 = math.tanh %74 : vector<2x32xf32>
    %76 = arith.mulf %69, %75 : vector<2x32xf32>
    %77 = vector.broadcast %55 : i32 to vector<2x1xi32>
    %78 = arith.cmpi slt, %77, %11 : vector<2x1xi32>
    %79 = vector.shape_cast %78 : vector<2x1xi1> to vector<2x1xi1>
    %80 = vector.broadcast %79 : vector<2x1xi1> to vector<2x32xi1>
    %81 = arith.select %80, %74, %46 : vector<2x32xi1>, vector<2x32xf32>
    %82 = vector.shape_cast %78 : vector<2x1xi1> to vector<2x1xi1>
    %83 = vector.broadcast %82 : vector<2x1xi1> to vector<2x32xi1>
    %84 = arith.select %83, %76, %49 : vector<2x32xi1>, vector<2x32xf32>
    %85 = vector.extract_strided_slice %10 {offsets = [0, 5, 0], sizes = [2, 1, 128], strides = [1, 1, 1]} : vector<2x8x128xf32> to vector<2x1x128xf32>
    %86 = vector.shape_cast %85 : vector<2x1x128xf32> to vector<2x128xf32>
    %87 = vector.extract_strided_slice %10 {offsets = [0, 2, 0], sizes = [2, 1, 128], strides = [1, 1, 1]} : vector<2x8x128xf32> to vector<2x1x128xf32>
    %88 = vector.shape_cast %87 : vector<2x1x128xf32> to vector<2x128xf32>
    %89 = arith.select %12, %86, %88 : vector<2x128xf32>
    %c5_i32 = arith.constant 5 : i32
    %c2_i32 = arith.constant 2 : i32
    %90 = arith.select %12, %c5_i32, %c2_i32 : i32
    %91 = arith.truncf %84 : vector<2x32xf32> to vector<2x32xbf16>
    %c0_23 = arith.constant 0 : index
    %c0_24 = arith.constant 0 : index
    %c0_25 = arith.constant 0 : index
    %92 = vector.load %arg4[%c0_23, %c0_24, %c0_25] : memref<1x32x128xbf16, #tpu.memory_space<vmem>>, vector<1x32x128xbf16>
    %93 = vector.shape_cast %92 : vector<1x32x128xbf16> to vector<32x128xbf16>
    %cst_26 = arith.constant dense<0.000000e+00> : vector<2x128xf32>
    %94 = tpu.matmul %91, %93, %cst_26 {dimension_numbers = #tpu.dot_dimension_numbers<[1], [0], [0], [1], [0, 0, 1, 1], [], []>} : vector<2x32xbf16>, vector<32x128xbf16>, vector<2x128xf32> -> vector<2x128xf32>
    %95 = arith.addf %89, %94 : vector<2x128xf32>
    %96 = vector.extract_strided_slice %95 {offsets = [0, 0], sizes = [2, 96], strides = [1, 1]} : vector<2x128xf32> to vector<2x96xf32>
    %97 = arith.negf %96 : vector<2x96xf32>
    %98 = math.exp %97 : vector<2x96xf32>
    %cst_27 = arith.constant 1.000000e+00 : f32
    %99 = vector.broadcast %cst_27 : f32 to vector<2x96xf32>
    %100 = arith.addf %99, %98 : vector<2x96xf32>
    %101 = arith.divf %99, %100 : vector<2x96xf32>
    %102 = vector.extract_strided_slice %101 {offsets = [0, 0], sizes = [2, 32], strides = [1, 1]} : vector<2x96xf32> to vector<2x32xf32>
    %103 = vector.extract_strided_slice %101 {offsets = [0, 32], sizes = [2, 32], strides = [1, 1]} : vector<2x96xf32> to vector<2x32xf32>
    %104 = vector.extract_strided_slice %101 {offsets = [0, 64], sizes = [2, 32], strides = [1, 1]} : vector<2x96xf32> to vector<2x32xf32>
    %105 = vector.extract_strided_slice %95 {offsets = [0, 96], sizes = [2, 32], strides = [1, 1]} : vector<2x128xf32> to vector<2x32xf32>
    %106 = math.tanh %105 : vector<2x32xf32>
    %107 = arith.mulf %103, %81 : vector<2x32xf32>
    %108 = arith.mulf %102, %106 : vector<2x32xf32>
    %109 = arith.addf %107, %108 : vector<2x32xf32>
    %110 = math.tanh %109 : vector<2x32xf32>
    %111 = arith.mulf %104, %110 : vector<2x32xf32>
    %112 = vector.broadcast %90 : i32 to vector<2x1xi32>
    %113 = arith.cmpi slt, %112, %11 : vector<2x1xi32>
    %114 = vector.shape_cast %113 : vector<2x1xi1> to vector<2x1xi1>
    %115 = vector.broadcast %114 : vector<2x1xi1> to vector<2x32xi1>
    %116 = arith.select %115, %109, %81 : vector<2x32xi1>, vector<2x32xf32>
    %117 = vector.shape_cast %113 : vector<2x1xi1> to vector<2x1xi1>
    %118 = vector.broadcast %117 : vector<2x1xi1> to vector<2x32xi1>
    %119 = arith.select %118, %111, %84 : vector<2x32xi1>, vector<2x32xf32>
    %120 = vector.extract_strided_slice %10 {offsets = [0, 4, 0], sizes = [2, 1, 128], strides = [1, 1, 1]} : vector<2x8x128xf32> to vector<2x1x128xf32>
    %121 = vector.shape_cast %120 : vector<2x1x128xf32> to vector<2x128xf32>
    %122 = vector.extract_strided_slice %10 {offsets = [0, 3, 0], sizes = [2, 1, 128], strides = [1, 1, 1]} : vector<2x8x128xf32> to vector<2x1x128xf32>
    %123 = vector.shape_cast %122 : vector<2x1x128xf32> to vector<2x128xf32>
    %124 = arith.select %12, %121, %123 : vector<2x128xf32>
    %c4_i32 = arith.constant 4 : i32
    %c3_i32 = arith.constant 3 : i32
    %125 = arith.select %12, %c4_i32, %c3_i32 : i32
    %126 = arith.truncf %119 : vector<2x32xf32> to vector<2x32xbf16>
    %c0_28 = arith.constant 0 : index
    %c0_29 = arith.constant 0 : index
    %c0_30 = arith.constant 0 : index
    %127 = vector.load %arg4[%c0_28, %c0_29, %c0_30] : memref<1x32x128xbf16, #tpu.memory_space<vmem>>, vector<1x32x128xbf16>
    %128 = vector.shape_cast %127 : vector<1x32x128xbf16> to vector<32x128xbf16>
    %cst_31 = arith.constant dense<0.000000e+00> : vector<2x128xf32>
    %129 = tpu.matmul %126, %128, %cst_31 {dimension_numbers = #tpu.dot_dimension_numbers<[1], [0], [0], [1], [0, 0, 1, 1], [], []>} : vector<2x32xbf16>, vector<32x128xbf16>, vector<2x128xf32> -> vector<2x128xf32>
    %130 = arith.addf %124, %129 : vector<2x128xf32>
    %131 = vector.extract_strided_slice %130 {offsets = [0, 0], sizes = [2, 96], strides = [1, 1]} : vector<2x128xf32> to vector<2x96xf32>
    %132 = arith.negf %131 : vector<2x96xf32>
    %133 = math.exp %132 : vector<2x96xf32>
    %cst_32 = arith.constant 1.000000e+00 : f32
    %134 = vector.broadcast %cst_32 : f32 to vector<2x96xf32>
    %135 = arith.addf %134, %133 : vector<2x96xf32>
    %136 = arith.divf %134, %135 : vector<2x96xf32>
    %137 = vector.extract_strided_slice %136 {offsets = [0, 0], sizes = [2, 32], strides = [1, 1]} : vector<2x96xf32> to vector<2x32xf32>
    %138 = vector.extract_strided_slice %136 {offsets = [0, 32], sizes = [2, 32], strides = [1, 1]} : vector<2x96xf32> to vector<2x32xf32>
    %139 = vector.extract_strided_slice %136 {offsets = [0, 64], sizes = [2, 32], strides = [1, 1]} : vector<2x96xf32> to vector<2x32xf32>
    %140 = vector.extract_strided_slice %130 {offsets = [0, 96], sizes = [2, 32], strides = [1, 1]} : vector<2x128xf32> to vector<2x32xf32>
    %141 = math.tanh %140 : vector<2x32xf32>
    %142 = arith.mulf %138, %116 : vector<2x32xf32>
    %143 = arith.mulf %137, %141 : vector<2x32xf32>
    %144 = arith.addf %142, %143 : vector<2x32xf32>
    %145 = math.tanh %144 : vector<2x32xf32>
    %146 = arith.mulf %139, %145 : vector<2x32xf32>
    %147 = vector.broadcast %125 : i32 to vector<2x1xi32>
    %148 = arith.cmpi slt, %147, %11 : vector<2x1xi32>
    %149 = vector.shape_cast %148 : vector<2x1xi1> to vector<2x1xi1>
    %150 = vector.broadcast %149 : vector<2x1xi1> to vector<2x32xi1>
    %151 = arith.select %150, %144, %116 : vector<2x32xi1>, vector<2x32xf32>
    %152 = vector.shape_cast %148 : vector<2x1xi1> to vector<2x1xi1>
    %153 = vector.broadcast %152 : vector<2x1xi1> to vector<2x32xi1>
    %154 = arith.select %153, %146, %119 : vector<2x32xi1>, vector<2x32xf32>
    %155 = vector.extract_strided_slice %10 {offsets = [0, 3, 0], sizes = [2, 1, 128], strides = [1, 1, 1]} : vector<2x8x128xf32> to vector<2x1x128xf32>
    %156 = vector.shape_cast %155 : vector<2x1x128xf32> to vector<2x128xf32>
    %157 = vector.extract_strided_slice %10 {offsets = [0, 4, 0], sizes = [2, 1, 128], strides = [1, 1, 1]} : vector<2x8x128xf32> to vector<2x1x128xf32>
    %158 = vector.shape_cast %157 : vector<2x1x128xf32> to vector<2x128xf32>
    %159 = arith.select %12, %156, %158 : vector<2x128xf32>
    %c3_i32_33 = arith.constant 3 : i32
    %c4_i32_34 = arith.constant 4 : i32
    %160 = arith.select %12, %c3_i32_33, %c4_i32_34 : i32
    %161 = arith.truncf %154 : vector<2x32xf32> to vector<2x32xbf16>
    %c0_35 = arith.constant 0 : index
    %c0_36 = arith.constant 0 : index
    %c0_37 = arith.constant 0 : index
    %162 = vector.load %arg4[%c0_35, %c0_36, %c0_37] : memref<1x32x128xbf16, #tpu.memory_space<vmem>>, vector<1x32x128xbf16>
    %163 = vector.shape_cast %162 : vector<1x32x128xbf16> to vector<32x128xbf16>
    %cst_38 = arith.constant dense<0.000000e+00> : vector<2x128xf32>
    %164 = tpu.matmul %161, %163, %cst_38 {dimension_numbers = #tpu.dot_dimension_numbers<[1], [0], [0], [1], [0, 0, 1, 1], [], []>} : vector<2x32xbf16>, vector<32x128xbf16>, vector<2x128xf32> -> vector<2x128xf32>
    %165 = arith.addf %159, %164 : vector<2x128xf32>
    %166 = vector.extract_strided_slice %165 {offsets = [0, 0], sizes = [2, 96], strides = [1, 1]} : vector<2x128xf32> to vector<2x96xf32>
    %167 = arith.negf %166 : vector<2x96xf32>
    %168 = math.exp %167 : vector<2x96xf32>
    %cst_39 = arith.constant 1.000000e+00 : f32
    %169 = vector.broadcast %cst_39 : f32 to vector<2x96xf32>
    %170 = arith.addf %169, %168 : vector<2x96xf32>
    %171 = arith.divf %169, %170 : vector<2x96xf32>
    %172 = vector.extract_strided_slice %171 {offsets = [0, 0], sizes = [2, 32], strides = [1, 1]} : vector<2x96xf32> to vector<2x32xf32>
    %173 = vector.extract_strided_slice %171 {offsets = [0, 32], sizes = [2, 32], strides = [1, 1]} : vector<2x96xf32> to vector<2x32xf32>
    %174 = vector.extract_strided_slice %171 {offsets = [0, 64], sizes = [2, 32], strides = [1, 1]} : vector<2x96xf32> to vector<2x32xf32>
    %175 = vector.extract_strided_slice %165 {offsets = [0, 96], sizes = [2, 32], strides = [1, 1]} : vector<2x128xf32> to vector<2x32xf32>
    %176 = math.tanh %175 : vector<2x32xf32>
    %177 = arith.mulf %173, %151 : vector<2x32xf32>
    %178 = arith.mulf %172, %176 : vector<2x32xf32>
    %179 = arith.addf %177, %178 : vector<2x32xf32>
    %180 = math.tanh %179 : vector<2x32xf32>
    %181 = arith.mulf %174, %180 : vector<2x32xf32>
    %182 = vector.broadcast %160 : i32 to vector<2x1xi32>
    %183 = arith.cmpi slt, %182, %11 : vector<2x1xi32>
    %184 = vector.shape_cast %183 : vector<2x1xi1> to vector<2x1xi1>
    %185 = vector.broadcast %184 : vector<2x1xi1> to vector<2x32xi1>
    %186 = arith.select %185, %179, %151 : vector<2x32xi1>, vector<2x32xf32>
    %187 = vector.shape_cast %183 : vector<2x1xi1> to vector<2x1xi1>
    %188 = vector.broadcast %187 : vector<2x1xi1> to vector<2x32xi1>
    %189 = arith.select %188, %181, %154 : vector<2x32xi1>, vector<2x32xf32>
    %190 = vector.extract_strided_slice %10 {offsets = [0, 2, 0], sizes = [2, 1, 128], strides = [1, 1, 1]} : vector<2x8x128xf32> to vector<2x1x128xf32>
    %191 = vector.shape_cast %190 : vector<2x1x128xf32> to vector<2x128xf32>
    %192 = vector.extract_strided_slice %10 {offsets = [0, 5, 0], sizes = [2, 1, 128], strides = [1, 1, 1]} : vector<2x8x128xf32> to vector<2x1x128xf32>
    %193 = vector.shape_cast %192 : vector<2x1x128xf32> to vector<2x128xf32>
    %194 = arith.select %12, %191, %193 : vector<2x128xf32>
    %c2_i32_40 = arith.constant 2 : i32
    %c5_i32_41 = arith.constant 5 : i32
    %195 = arith.select %12, %c2_i32_40, %c5_i32_41 : i32
    %196 = arith.truncf %189 : vector<2x32xf32> to vector<2x32xbf16>
    %c0_42 = arith.constant 0 : index
    %c0_43 = arith.constant 0 : index
    %c0_44 = arith.constant 0 : index
    %197 = vector.load %arg4[%c0_42, %c0_43, %c0_44] : memref<1x32x128xbf16, #tpu.memory_space<vmem>>, vector<1x32x128xbf16>
    %198 = vector.shape_cast %197 : vector<1x32x128xbf16> to vector<32x128xbf16>
    %cst_45 = arith.constant dense<0.000000e+00> : vector<2x128xf32>
    %199 = tpu.matmul %196, %198, %cst_45 {dimension_numbers = #tpu.dot_dimension_numbers<[1], [0], [0], [1], [0, 0, 1, 1], [], []>} : vector<2x32xbf16>, vector<32x128xbf16>, vector<2x128xf32> -> vector<2x128xf32>
    %200 = arith.addf %194, %199 : vector<2x128xf32>
    %201 = vector.extract_strided_slice %200 {offsets = [0, 0], sizes = [2, 96], strides = [1, 1]} : vector<2x128xf32> to vector<2x96xf32>
    %202 = arith.negf %201 : vector<2x96xf32>
    %203 = math.exp %202 : vector<2x96xf32>
    %cst_46 = arith.constant 1.000000e+00 : f32
    %204 = vector.broadcast %cst_46 : f32 to vector<2x96xf32>
    %205 = arith.addf %204, %203 : vector<2x96xf32>
    %206 = arith.divf %204, %205 : vector<2x96xf32>
    %207 = vector.extract_strided_slice %206 {offsets = [0, 0], sizes = [2, 32], strides = [1, 1]} : vector<2x96xf32> to vector<2x32xf32>
    %208 = vector.extract_strided_slice %206 {offsets = [0, 32], sizes = [2, 32], strides = [1, 1]} : vector<2x96xf32> to vector<2x32xf32>
    %209 = vector.extract_strided_slice %206 {offsets = [0, 64], sizes = [2, 32], strides = [1, 1]} : vector<2x96xf32> to vector<2x32xf32>
    %210 = vector.extract_strided_slice %200 {offsets = [0, 96], sizes = [2, 32], strides = [1, 1]} : vector<2x128xf32> to vector<2x32xf32>
    %211 = math.tanh %210 : vector<2x32xf32>
    %212 = arith.mulf %208, %186 : vector<2x32xf32>
    %213 = arith.mulf %207, %211 : vector<2x32xf32>
    %214 = arith.addf %212, %213 : vector<2x32xf32>
    %215 = math.tanh %214 : vector<2x32xf32>
    %216 = arith.mulf %209, %215 : vector<2x32xf32>
    %217 = vector.broadcast %195 : i32 to vector<2x1xi32>
    %218 = arith.cmpi slt, %217, %11 : vector<2x1xi32>
    %219 = vector.shape_cast %218 : vector<2x1xi1> to vector<2x1xi1>
    %220 = vector.broadcast %219 : vector<2x1xi1> to vector<2x32xi1>
    %221 = arith.select %220, %214, %186 : vector<2x32xi1>, vector<2x32xf32>
    %222 = vector.shape_cast %218 : vector<2x1xi1> to vector<2x1xi1>
    %223 = vector.broadcast %222 : vector<2x1xi1> to vector<2x32xi1>
    %224 = arith.select %223, %216, %189 : vector<2x32xi1>, vector<2x32xf32>
    %225 = vector.extract_strided_slice %10 {offsets = [0, 1, 0], sizes = [2, 1, 128], strides = [1, 1, 1]} : vector<2x8x128xf32> to vector<2x1x128xf32>
    %226 = vector.shape_cast %225 : vector<2x1x128xf32> to vector<2x128xf32>
    %227 = vector.extract_strided_slice %10 {offsets = [0, 6, 0], sizes = [2, 1, 128], strides = [1, 1, 1]} : vector<2x8x128xf32> to vector<2x1x128xf32>
    %228 = vector.shape_cast %227 : vector<2x1x128xf32> to vector<2x128xf32>
    %229 = arith.select %12, %226, %228 : vector<2x128xf32>
    %c1_i32_47 = arith.constant 1 : i32
    %c6_i32_48 = arith.constant 6 : i32
    %230 = arith.select %12, %c1_i32_47, %c6_i32_48 : i32
    %231 = arith.truncf %224 : vector<2x32xf32> to vector<2x32xbf16>
    %c0_49 = arith.constant 0 : index
    %c0_50 = arith.constant 0 : index
    %c0_51 = arith.constant 0 : index
    %232 = vector.load %arg4[%c0_49, %c0_50, %c0_51] : memref<1x32x128xbf16, #tpu.memory_space<vmem>>, vector<1x32x128xbf16>
    %233 = vector.shape_cast %232 : vector<1x32x128xbf16> to vector<32x128xbf16>
    %cst_52 = arith.constant dense<0.000000e+00> : vector<2x128xf32>
    %234 = tpu.matmul %231, %233, %cst_52 {dimension_numbers = #tpu.dot_dimension_numbers<[1], [0], [0], [1], [0, 0, 1, 1], [], []>} : vector<2x32xbf16>, vector<32x128xbf16>, vector<2x128xf32> -> vector<2x128xf32>
    %235 = arith.addf %229, %234 : vector<2x128xf32>
    %236 = vector.extract_strided_slice %235 {offsets = [0, 0], sizes = [2, 96], strides = [1, 1]} : vector<2x128xf32> to vector<2x96xf32>
    %237 = arith.negf %236 : vector<2x96xf32>
    %238 = math.exp %237 : vector<2x96xf32>
    %cst_53 = arith.constant 1.000000e+00 : f32
    %239 = vector.broadcast %cst_53 : f32 to vector<2x96xf32>
    %240 = arith.addf %239, %238 : vector<2x96xf32>
    %241 = arith.divf %239, %240 : vector<2x96xf32>
    %242 = vector.extract_strided_slice %241 {offsets = [0, 0], sizes = [2, 32], strides = [1, 1]} : vector<2x96xf32> to vector<2x32xf32>
    %243 = vector.extract_strided_slice %241 {offsets = [0, 32], sizes = [2, 32], strides = [1, 1]} : vector<2x96xf32> to vector<2x32xf32>
    %244 = vector.extract_strided_slice %241 {offsets = [0, 64], sizes = [2, 32], strides = [1, 1]} : vector<2x96xf32> to vector<2x32xf32>
    %245 = vector.extract_strided_slice %235 {offsets = [0, 96], sizes = [2, 32], strides = [1, 1]} : vector<2x128xf32> to vector<2x32xf32>
    %246 = math.tanh %245 : vector<2x32xf32>
    %247 = arith.mulf %243, %221 : vector<2x32xf32>
    %248 = arith.mulf %242, %246 : vector<2x32xf32>
    %249 = arith.addf %247, %248 : vector<2x32xf32>
    %250 = math.tanh %249 : vector<2x32xf32>
    %251 = arith.mulf %244, %250 : vector<2x32xf32>
    %252 = vector.broadcast %230 : i32 to vector<2x1xi32>
    %253 = arith.cmpi slt, %252, %11 : vector<2x1xi32>
    %254 = vector.shape_cast %253 : vector<2x1xi1> to vector<2x1xi1>
    %255 = vector.broadcast %254 : vector<2x1xi1> to vector<2x32xi1>
    %256 = arith.select %255, %249, %221 : vector<2x32xi1>, vector<2x32xf32>
    %257 = vector.shape_cast %253 : vector<2x1xi1> to vector<2x1xi1>
    %258 = vector.broadcast %257 : vector<2x1xi1> to vector<2x32xi1>
    %259 = arith.select %258, %251, %224 : vector<2x32xi1>, vector<2x32xf32>
    %260 = vector.extract_strided_slice %10 {offsets = [0, 0, 0], sizes = [2, 1, 128], strides = [1, 1, 1]} : vector<2x8x128xf32> to vector<2x1x128xf32>
    %261 = vector.shape_cast %260 : vector<2x1x128xf32> to vector<2x128xf32>
    %262 = vector.extract_strided_slice %10 {offsets = [0, 7, 0], sizes = [2, 1, 128], strides = [1, 1, 1]} : vector<2x8x128xf32> to vector<2x1x128xf32>
    %263 = vector.shape_cast %262 : vector<2x1x128xf32> to vector<2x128xf32>
    %264 = arith.select %12, %261, %263 : vector<2x128xf32>
    %c0_i32_54 = arith.constant 0 : i32
    %c7_i32_55 = arith.constant 7 : i32
    %265 = arith.select %12, %c0_i32_54, %c7_i32_55 : i32
    %266 = arith.truncf %259 : vector<2x32xf32> to vector<2x32xbf16>
    %c0_56 = arith.constant 0 : index
    %c0_57 = arith.constant 0 : index
    %c0_58 = arith.constant 0 : index
    %267 = vector.load %arg4[%c0_56, %c0_57, %c0_58] : memref<1x32x128xbf16, #tpu.memory_space<vmem>>, vector<1x32x128xbf16>
    %268 = vector.shape_cast %267 : vector<1x32x128xbf16> to vector<32x128xbf16>
    %cst_59 = arith.constant dense<0.000000e+00> : vector<2x128xf32>
    %269 = tpu.matmul %266, %268, %cst_59 {dimension_numbers = #tpu.dot_dimension_numbers<[1], [0], [0], [1], [0, 0, 1, 1], [], []>} : vector<2x32xbf16>, vector<32x128xbf16>, vector<2x128xf32> -> vector<2x128xf32>
    %270 = arith.addf %264, %269 : vector<2x128xf32>
    %271 = vector.extract_strided_slice %270 {offsets = [0, 0], sizes = [2, 96], strides = [1, 1]} : vector<2x128xf32> to vector<2x96xf32>
    %272 = arith.negf %271 : vector<2x96xf32>
    %273 = math.exp %272 : vector<2x96xf32>
    %cst_60 = arith.constant 1.000000e+00 : f32
    %274 = vector.broadcast %cst_60 : f32 to vector<2x96xf32>
    %275 = arith.addf %274, %273 : vector<2x96xf32>
    %276 = arith.divf %274, %275 : vector<2x96xf32>
    %277 = vector.extract_strided_slice %276 {offsets = [0, 0], sizes = [2, 32], strides = [1, 1]} : vector<2x96xf32> to vector<2x32xf32>
    %278 = vector.extract_strided_slice %276 {offsets = [0, 32], sizes = [2, 32], strides = [1, 1]} : vector<2x96xf32> to vector<2x32xf32>
    %279 = vector.extract_strided_slice %276 {offsets = [0, 64], sizes = [2, 32], strides = [1, 1]} : vector<2x96xf32> to vector<2x32xf32>
    %280 = vector.extract_strided_slice %270 {offsets = [0, 96], sizes = [2, 32], strides = [1, 1]} : vector<2x128xf32> to vector<2x32xf32>
    %281 = math.tanh %280 : vector<2x32xf32>
    %282 = arith.mulf %278, %256 : vector<2x32xf32>
    %283 = arith.mulf %277, %281 : vector<2x32xf32>
    %284 = arith.addf %282, %283 : vector<2x32xf32>
    %285 = math.tanh %284 : vector<2x32xf32>
    %286 = arith.mulf %279, %285 : vector<2x32xf32>
    %287 = vector.broadcast %265 : i32 to vector<2x1xi32>
    %288 = arith.cmpi slt, %287, %11 : vector<2x1xi32>
    %289 = vector.shape_cast %288 : vector<2x1xi1> to vector<2x1xi1>
    %290 = vector.broadcast %289 : vector<2x1xi1> to vector<2x32xi1>
    %291 = arith.select %290, %286, %259 : vector<2x32xi1>, vector<2x32xf32>
    %c0_61 = arith.constant 0 : index
    %c0_62 = arith.constant 0 : index
    %c0_63 = arith.constant 0 : index
    %292 = vector.load %arg6[%c0_61, %c0_62, %c0_63] : memref<1x2x32xf32, #tpu.memory_space<vmem>>, vector<1x2x32xf32>
    %293 = vector.shape_cast %292 : vector<1x2x32xf32> to vector<2x32xf32>
    %294 = vector.shape_cast %291 : vector<2x32xf32> to vector<1x2x32xf32>
    tpu.vector_store %arg6[%c0_61, %c0_62, %c0_63], %294 {strides = array<i32>} : memref<1x2x32xf32, #tpu.memory_space<vmem>>, vector<1x2x32xf32>,
    return
  }
  func.func @transform_0(%arg0: i32) -> (i32, i32, i32) {
    %c0_i32 = arith.constant 0 : i32
    %c0_i32_0 = arith.constant 0 : i32
    %c0_i32_1 = arith.constant 0 : i32
    %c0_i32_2 = arith.constant 0 : i32
    return %c0_i32, %c0_i32_0, %c0_i32_1 : i32, i32, i32
  }
  func.func @transform_1(%arg0: i32) -> (i32, i32) {
    %c0_i32 = arith.constant 0 : i32
    %c0_i32_0 = arith.constant 0 : i32
    %c0_i32_1 = arith.constant 0 : i32
    return %c0_i32, %c0_i32_0 : i32, i32
  }
  func.func @transform_2(%arg0: i32) -> (i32, i32, i32) {
    %c0_i32 = arith.constant 0 : i32
    %c0_i32_0 = arith.constant 0 : i32
    %c0_i32_1 = arith.constant 0 : i32
    return %arg0, %c0_i32, %c0_i32_0 : i32, i32, i32
  }
  func.func @transform_3(%arg0: i32) -> (i32, i32, i32) {
    %c0_i32 = arith.constant 0 : i32
    %c0_i32_0 = arith.constant 0 : i32
    %c0_i32_1 = arith.constant 0 : i32
    return %arg0, %c0_i32, %c0_i32_0 : i32, i32, i32
  }
  func.func @transform_4(%arg0: i32) -> (i32, i32, i32) {
    %c0_i32 = arith.constant 0 : i32
    %c0_i32_0 = arith.constant 0 : i32
    %c0_i32_1 = arith.constant 0 : i32
    return %arg0, %c0_i32, %c0_i32_0 : i32, i32, i32
  }
  func.func @transform_5(%arg0: i32) -> (i32, i32, i32) {
    %c0_i32 = arith.constant 0 : i32
    %c0_i32_0 = arith.constant 0 : i32
    %c0_i32_1 = arith.constant 0 : i32
    return %arg0, %c0_i32, %c0_i32_0 : i32, i32, i32
  }
}

</mosaic_0001>

<bundles_post_ra>
// kernel: text_embedding_forward.5
= control target key start
LH: loop header
LB: loop body
LE: loop exit
PB: predicated region body
PF: predicated region fallthrough
CT: control target
= control target key end

     0   :  { %v313_v1 = vmov 0.0   ;;  %vm314_vm0 = vmmov 0   ;;  %vm52_vm1 = vcmask 261120   ;;  %s392_s0 = inlined_call_operand.vmem [shape: f32[2,32], index: 0, kind: input, shape index: {}]   ;;  %s393_s1 = inlined_call_operand.vmem [shape: f32[2,32], index: 1, kind: input, shape index: {}]   ;;  %s394_s2 = inlined_call_operand.vmem [shape: f32[2,32], index: 2, kind: input, shape index: {}]   ;;  %s395_s3 = inlined_call_operand.vmem [shape: bf16[32,128], index: 3, kind: input, shape index: {}]   ;;  %s396_s4 = inlined_call_operand.vmem [shape: bf16[32,128], index: 4, kind: input, shape index: {}]   ;;  %s397_s5 = inlined_call_operand.vmem [shape: bf16[32,128], index: 5, kind: input, shape index: {}]   ;;  %s398_s6 = inlined_call_operand.vmem [shape: f32[1,128], index: 6, kind: input, shape index: {}]   ;;  %s399_s7 = inlined_call_operand.hbm [shape: f32[2,128], index: 7, kind: output, shape index: {}]  }
   0x1   :  { %v283_v0 = vld [vmem:[%s396_s4 + $0x8] sm:$0xff]   ;;  %256 = vmatprep.subr.bf16.mxu0 %v313_v1  ;;  %264 = vmatprep.subr.bf16.mxu1 %v313_v1  ;;  %v285_v3 = vld [vmem:[%s396_s4] sm:$0xff]  }
   0x2   :  { %v284_v2 = vld [vmem:[%s395_s3 + $0x8] sm:$0xff]   ;;  %257 = vmatpush3.bf16.msra.mxu0 %v283_v0  ;;  %260 = vmatprep.mubr.msk.bf16.mxu0 %vm314_vm0, %v313_v1  ;;  %v286_v4 = vld [vmem:[%s395_s3] sm:$0xff]  }
   0x3   :  { %265 = vmatpush3.bf16.msra.mxu1 %v284_v2  ;;  %258 = vmatprep.subr.bf16.mxu0 %v313_v1  ;;  %v34_v5 = vld [vmem:[%s393_s1] sm:$0x3]  ;;  %v287_v9 = vld [vmem:[%s397_s5 + $0x8] sm:$0xff]  }
   0x4   :  { %266 = vmatprep.subr.bf16.mxu1 %v313_v1  ;;  %268 = vmatprep.mubr.msk.bf16.mxu1 %vm314_vm0, %v313_v1  ;;  %v28_v6 = vld [vmem:[%s392_s0] sm:$0x3]  ;;  %v35_v7 = vpack.c.bf16 %v34_v5, %v34_v5 }
   0x5   :  { %v29_v8 = vpack.c.bf16 %v28_v6, %v28_v6 }
   0x6   :  { %259 = vmatpush3.bf16.msra.mxu0 %v285_v3 }
   0x7   :  { %267 = vmatpush3.bf16.msra.mxu1 %v286_v4  ;;  %272 = vmatprep.subr.bf16.mxu0 %v313_v1 }
   0x8   :  { %12 = vsyncpa [#allocation3], 0  ;;  %v288_v10 = vld [vmem:[%s397_s5] sm:$0xff]  }
   0x9   :  { %261 = vmatmul.mubr.msk.bf16.vlgmr.msra.gmra.mxu0 %vm52_vm1, %v35_v7  ;;  %v151_v11 = vld [vmem:[%s394_s2] sm:$0x3]  ;;  %s315_s2 = smov [#allocation2]  }
   0xa   :  { %269 = vmatmul.mubr.msk.bf16.vlgmr.msra.gmra.mxu1 %vm52_vm1, %v29_v8  ;;  %273 = vmatpush3.bf16.msra.mxu0 %v287_v9  ;;  %v152_v12 = vpack.c.bf16 %v151_v11, %v151_v11  ;;  %v246_v23 = vld [vmem:[%s398_s6] ss:$0 sm:$0xff]  ;;  %s229_s16 = sshll.u32 %s315_s2, 4  ;;  %s230_s16 = int_to_ptr.vmem [resolvable:$true] %s229_s16 }
   0xb   :  { %274 = vmatprep.subr.bf16.mxu0 %v313_v1  ;;  %276 = vmatprep.mubr.msk.bf16.mxu0 %vm314_vm0, %v313_v1  ;;  %s291_s17 = scalar_lea.vmem %s230_s16, 32  ;;  %p296_p1 = scmp.lt.s32.totalorder %s230_s16, %s230_s16 }
   0xc   :  { %p292_p0 = scmp.ne.s32.totalorder %s230_s16, %s291_s17  ;;  %p297_p2 = scmp.lt.s32.totalorder %s291_s17, %s291_s17 }
   0xe   :  { %275 = vmatpush3.bf16.msra.mxu0 %v288_v10  ;;  %p298_p3 = por %p297_p2, %p296_p1 }
  0x10   :  { %p299_p4 = pnand %p298_p3, %p292_p0 }
  0x11   :  { %277 = vmatmul.mubr.msk.bf16.vlgmr.msra.gmra.mxu0 %vm52_vm1, %v152_v12 }
  0xc9   :  { %v90_v13 = vpop.f32.mrf.mxu0 }
  0xca   :  { %v145_v14 = vpop.f32.mrf.mxu1 }
  0xcb   :  { %v262_v15 = vpop.f32.mrf.mxu0  ;;  %v146_v20 = vadd.f32 %v145_v14, %v90_v13 }
  0xcc   :  { %v270_v16 = vpop.f32.mrf.mxu1 }
  0xcd   :  { %v93_v17 = vpop.f32.mrf.mxu0 }
  0xce   :  { %v148_v18 = vpop.f32.mrf.mxu1 }
  0xcf   :  { %v263_v19 = vpop.f32.mrf.mxu0 }
  0xd0   :  { %v271_v21 = vpop.f32.mrf.mxu1 }
  0xd1   :  { %v206_v22 = vpop.f32.mrf.mxu0 }
  0xd2   :  { %v212_v24 = vadd.f32 %v206_v22, %v146_v20 }
  0xd3   :  { %v278_v25 = vpop.f32.mrf.mxu0 }
  0xd4   :  { %v220_v26 = vadd.f32 %v246_v23, %v212_v24 }
  0xd5   :  { %v209_v27 = vpop.f32.mrf.mxu0 }
  0xd6   :  { %289 = vtanh.f32 %v220_v26 }
  0xd7   :  { %v279_v28 = vpop.f32.mrf.mxu0 }
  0xe3   :  { %v290_v29 = vpop.eup %289 }
  0xe4   :  { %222 = vst [vmem:[#allocation2] sm:$0x3] %v290_v29 }
  0xe5   :  { %302 = shalt.err (!%p299_p4)
}
  0xe6   :  { %232 = dma.vmem_to_hbm [thread:$0]  %s230_s16, 32, %s399_s7, [#allocation3]  }
  0xe7   :  { %311 = dma.done.wait [#allocation3], 32  }
  0xe8   :  { %312 = vsyncadd [#allocation3], 4294967264 }
  0xe9   :  { %236 = vsyncpa [#allocation3], 1 }

// kernel: text_embedding_forward.3
= control target key start
LH: loop header
LB: loop body
LE: loop exit
PB: predicated region body
PF: predicated region fallthrough
CT: control target
= control target key end

     0   :  { %v1415_v0 = vmov 0.0   ;;  %vm1416_vm0 = vmmov 0   ;;  %v1417_v4 = vmov 0   ;;  %vm47_vm1 = vcmask 261120   ;;  %s1418_s29 = smov 32   ;;  %s1419_s6 = smov 64   ;;  %s1756_s2 = inlined_call_operand.vmem [shape: bf16[1,32,128], index: 2, kind: input, shape index: {}]   ;;  %s1757_s3 = inlined_call_operand.vmem [shape: bf16[1,32,128], index: 3, kind: input, shape index: {}]   ;;  %s1758_s0 = inlined_call_operand.vmem [shape: f32[2,8,32], index: 0, kind: input, shape index: {}]   ;;  %s1759_s4 = inlined_call_operand.vmem [shape: f32[1,1,128], index: 4, kind: input, shape index: {}]   ;;  %s1760_s1 = inlined_call_operand.vmem [shape: s32[2,1], index: 1, kind: input, shape index: {}]   ;;  %s1761_s5 = inlined_call_operand.vmem [shape: f32[1,2,32], index: 5, kind: output, shape index: {}]  }
   0x1   :  { %1202 = vmatprep.subr.bf16.mxu0 %v1415_v0  ;;  %1210 = vmatprep.subr.bf16.mxu1 %v1415_v0  ;;  %v1282_v1 = vld [vmem:[%s1756_s2 + $0x8] sm:$0xff]   ;;  %v1284_v3 = vld [vmem:[%s1756_s2] sm:$0xff]   ;;  %vm215_vm2 = vcmask 1041409   ;;  %s1420_s7 = smov 96  }
   0x2   :  { %v1459_v2 = vld [vmem:[%s1757_s3 + $0x8] sm:$0xff]   ;;  %1206 = vmatprep.mubr.msk.bf16.mxu0 %vm1416_vm0, %v1415_v0  ;;  %1214 = vmatprep.mubr.msk.bf16.mxu1 %vm1416_vm0, %v1415_v0  ;;  %v1474_v5 = vld [vmem:[%s1757_s3] sm:$0xff]  }
   0x3   :  { %1203 = vmatpush3.bf16.msra.mxu0 %v1282_v1  ;;  %1280 = vset.pattern.permute.xlu0 %v1417_v4  ;;  %v21_v6 = vld [vmem:[%s1758_s0] sm:$0xff]  ;;  %v22_v7 = vld [vmem:[%s1758_s0 + $0x8] sm:$0xff] }
   0x4   :  { %1211 = vmatpush3.bf16.msra.mxu1 %v1459_v2  ;;  %1204 = vmatprep.subr.bf16.mxu0 %v1415_v0  ;;  %v23_v8 = vpack.c.bf16 %v22_v7, %v21_v6  ;;  %v1146_v11 = vld [vmem:[%s1759_s4] ss:$0 sm:$0xff] }
   0x5   :  { %1212 = vmatprep.subr.bf16.mxu1 %v1415_v0  ;;  %1281 = vset.pattern.permute.xlu1 %v1417_v4  ;;  %v1518_v45 = vld [vmem:[%s1760_s1] sm:$0x3] }
   0x6   :  { %vm206_vm3 = vcmp.gt.s32.totalorder %v1518_v45, 0  ;;  %vm335_vm5 = vcmp.gt.s32.totalorder %v1518_v45, 1  ;;  %vm465_vm7 = vcmp.gt.s32.totalorder %v1518_v45, 2  ;;  %vm597_vm9 = vcmp.gt.s32.totalorder %v1518_v45, 3 }
   0x7   :  { %1205 = vmatpush3.bf16.msra.mxu0 %v1284_v3  ;;  %v207_v47 = vsel %vm206_vm3, 1, %v1417_v4  ;;  %vm729_vm11 = vcmp.gt.s32.totalorder %v1518_v45, 4  ;;  %vm861_vm13 = vcmp.gt.s32.totalorder %v1518_v45, 5  ;;  %vm993_vm15 = vcmp.gt.s32.totalorder %v1518_v45, 6 }
   0x8   :  { %1213 = vmatpush3.bf16.msra.mxu1 %v1474_v5  ;;  %1218 = vmatprep.subr.bf16.mxu0 %v1415_v0  ;;  %vm1140_vm3 = vcmask 254976  }
   0x9   :  { %1226 = vmatprep.subr.bf16.mxu1 %v1415_v0 }
   0xa   :  { %1207 = vmatmul.mubr.msk.bf16.vlgmr.msra.gmra.mxu0 %vm47_vm1, %v23_v8 }
   0xb   :  { %1215 = vmatmul.mubr.bf16.vlgmr.msra.gmra.mxu1 %v1417_v4  ;;  %1219 = vmatpush3.bf16.msra.mxu0 %v1459_v2 }
   0xc   :  { %1220 = vmatprep.subr.bf16.mxu0 %v1415_v0  ;;  %1222 = vmatprep.mubr.msk.bf16.mxu0 %vm1416_vm0, %v1415_v0 }
   0xd   :  { %1227 = vmatpush3.bf16.msra.mxu1 %v1459_v2  ;;  %1230 = vmatprep.mubr.msk.bf16.mxu1 %vm1416_vm0, %v1415_v0 }
   0xe   :  { %1228 = vmatprep.subr.bf16.mxu1 %v1415_v0 }
   0xf   :  { %1221 = vmatpush3.bf16.msra.mxu0 %v1474_v5 }
  0x10   :  { %1234 = vmatprep.subr.bf16.mxu0 %v1415_v0 }
  0x11   :  { %1229 = vmatpush3.bf16.msra.mxu1 %v1474_v5 }
  0x12   :  { %1242 = vmatprep.subr.bf16.mxu1 %v1415_v0 }
  0xca   :  { %v85_v9 = vpop.f32.mrf.mxu0 }
  0xcb   :  { %v146_v10 = vpop.f32.mrf.mxu1  ;;  %v1504_v16 = vadd.f32 %v1146_v11, %v85_v9 }
  0xcc   :  { %v1208_v12 = vpop.f32.mrf.mxu0  ;;  %v153_v13 = vrot.slane %v146_v10, 1 }
  0xcd   :  { %v1216_v14 = vpop.f32.mrf.mxu1  ;;  %v156_v22 = vadd.f32 %v146_v10, %v1504_v16 }
  0xce   :  { %v88_v15 = vpop.f32.mrf.mxu0 }
  0xcf   :  { %v1506_v17 = vadd.f32 %v1146_v11, %v88_v15  ;;  %v149_v18 = vpop.f32.mrf.mxu1  ;;  %v1152_v26 = vmul.f32 -1.442695, %v156_v22 }
  0xd0   :  { %v1209_v19 = vpop.f32.mrf.mxu0 }
  0xd1   :  { %v1217_v20 = vpop.f32.mrf.mxu1  ;;  %v157_v21 = vadd.f32 %v153_v13, %v1506_v17 }
  0xd3   :  { %1286 = vtanh.f32 %v157_v21  ;;  %v1153_v25 = vmul.f32 -1.442695, %v157_v21 }
  0xd4   :  { %1288 = vtanh.f32 %v156_v22 }
  0xd5   :  { %1290 = vpow2.f32 %v1153_v25 }
  0xd6   :  { %1292 = vpow2.f32 %v1152_v26 }
  0xe0   :  { %v1287_v23 = vpop.eup %1286 }
  0xe1   :  { %178 = vrot.lane.b32.xlu0 %v1287_v23, %s1418_s29  ;;  %v1289_v24 = vpop.eup %1288 }
  0xe2   :  { %v1291_v27 = vpop.eup %1290 }
  0xe3   :  { %v165_v28 = vadd.f32 1.0, %v1291_v27  ;;  %v1293_v29 = vpop.eup %1292 }
  0xe4   :  { %v164_v30 = vadd.f32 1.0, %v1293_v29 }
  0xe5   :  { %176 = vrot.lane.b32.xlu0 %v1289_v24, %s1418_s29  ;;  %1294 = vrcp.f32 %v165_v28 }
  0xe6   :  { %1296 = vrcp.f32 %v164_v30 }
  0xf2   :  { %v1295_v31 = vpop.eup %1294 }
  0xf3   :  { %v1297_v34 = vpop.eup %1296  ;;  %v173_v37 = vmul.f32 0.0, %v1295_v31 }
  0xf4   :  { %v172_v40 = vmul.f32 0.0, %v1297_v34 }
 0x153   :  { %v179_v32 = vpop.permute.xlu0 %178 }
 0x154   :  { %v183_v33 = vmul.f32 %v1295_v31, %v179_v32 }
 0x156   :  { %188 = vrot.lane.b32.xlu1 %v183_v33, %s1418_s29 }
 0x157   :  { %v177_v35 = vpop.permute.xlu0 %176 }
 0x158   :  { %v182_v36 = vmul.f32 %v1297_v34, %v177_v35  ;;  %v336_v35 = vsel %vm335_vm5, 1, %v1417_v4 }
 0x15a   :  { %186 = vrot.lane.b32.xlu1 %v182_v36, %s1418_s29 }
 0x1c8   :  { %v189_v38 = vpop.permute.xlu1 %188 }
 0x1c9   :  { %v193_v39 = vadd.f32 %v189_v38, %v173_v37 }
 0x1cb   :  { %1298 = vtanh.f32 %v193_v39  ;;  %v214_v42 = vrot.slane %v193_v39, 7 }
 0x1cc   :  { %v187_v41 = vpop.permute.xlu1 %186 }
 0x1cd   :  { %v192_v43 = vadd.f32 %v187_v41, %v172_v40 }
 0x1cf   :  { %1300 = vtanh.f32 %v192_v43  ;;  %v216_v44 = vsel %vm215_vm2, %v214_v42, %v192_v43 }
 0x1d8   :  { %v1299_v46 = vpop.eup %1298 }
 0x1d9   :  { %200 = vrot.lane.b32.xlu0 %v1299_v46, %s1418_s29 }
 0x1dc   :  { %v1301_v48 = vpop.eup %1300 }
 0x1dd   :  { %198 = vrot.lane.b32.xlu1 %v1301_v48, %s1418_s29  ;;  %209 = vperm.xlu0 %1280, %v207_v47  }
 0x24b   :  { %v201_v49 = vpop.permute.xlu0 %200 }
 0x24c   :  { %v205_v50 = vmul.f32 %v1295_v31, %v201_v49 }
 0x24e   :  { %v223_v52 = vrot.slane %v205_v50, 7 }
 0x24f   :  { %v199_v51 = vpop.permute.xlu1 %198 }
 0x250   :  { %v204_v53 = vmul.f32 %v1297_v34, %v199_v51 }
 0x252   :  { %v224_v54 = vsel %vm215_vm2, %v223_v52, %v204_v53 }
 0x253   :  { %225 = vrot.lane.b32.xlu1 %v224_v54, %s1419_s6 }
 0x257   :  { %217 = vrot.lane.b32.xlu1 %v216_v44, %s1420_s7 }
 0x258   :  { %v210_v55 = vpop.permute.xlu0 %209 }
 0x259   :  { %vm211_vm4 = vcmp.eq.s32.totalorder %v210_v55, 1 }
 0x2c5   :  { %v226_v56 = vpop.permute.xlu1 %225 }
 0x2c6   :  { %v1528_v57 = vsel %vm211_vm4, %v226_v56, 0.0 }
 0x2c7   :  { %v229_v58 = vpack.c.bf16 %v1528_v57, %v1528_v57 }
 0x2c9   :  { %1223 = vmatmul.mubr.msk.bf16.vlgmr.msra.gmra.mxu0 %vm47_vm1, %v229_v58  ;;  %v218_v7 = vpop.permute.xlu1 %217 }
 0x2ca   :  { %1235 = vmatpush3.bf16.msra.mxu0 %v1459_v2  ;;  %1238 = vmatprep.mubr.msk.bf16.mxu0 %vm1416_vm0, %v1415_v0  ;;  %v1543_v9 = vsel %vm211_vm4, %v218_v7, 0.0 }
 0x2cb   :  { %1236 = vmatprep.subr.bf16.mxu0 %v1415_v0  ;;  %v294_v10 = vrot.slane %v1543_v9, 7 }
 0x2ce   :  { %1237 = vmatpush3.bf16.msra.mxu0 %v1474_v5 }
 0x2cf   :  { %1250 = vmatprep.subr.bf16.mxu0 %v1415_v0 }
 0x389   :  { %v267_v59 = vpop.f32.mrf.mxu0 }
 0x38a   :  { %v274_v60 = vrot.slane %v267_v59, 7  ;;  %v278_v61 = vadd.f32 %v267_v59, %v1506_v17 }
 0x38b   :  { %v1224_v62 = vpop.f32.mrf.mxu0 }
 0x38c   :  { %v277_v63 = vadd.f32 %v274_v60, %v1504_v16  ;;  %1302 = vtanh.f32 %v278_v61  ;;  %v1156_v11 = vmul.f32 -1.442695, %v278_v61 }
 0x38d   :  { %v270_v1 = vpop.f32.mrf.mxu0 }
 0x38e   :  { %1304 = vtanh.f32 %v277_v63  ;;  %v1155_v12 = vmul.f32 -1.442695, %v277_v63 }
 0x38f   :  { %v1225_v3 = vpop.f32.mrf.mxu0  ;;  %1306 = vpow2.f32 %v1156_v11 }
 0x390   :  { %1308 = vpow2.f32 %v1155_v12 }
 0x399   :  { %v1303_v6 = vpop.eup %1302 }
 0x39a   :  { %307 = vrot.lane.b32.xlu1 %v1303_v6, %s1418_s29 }
 0x39b   :  { %v1305_v8 = vpop.eup %1304 }
 0x39c   :  { %305 = vrot.lane.b32.xlu0 %v1305_v8, %s1418_s29  ;;  %v1307_v13 = vpop.eup %1306 }
 0x39d   :  { %v1309_v14 = vpop.eup %1308  ;;  %v286_v15 = vadd.f32 1.0, %v1307_v13 }
 0x39e   :  { %297 = vrot.lane.b32.xlu1 %v1543_v9, %s1418_s29  ;;  %v285_v18 = vadd.f32 1.0, %v1309_v14 }
 0x39f   :  { %1310 = vrcp.f32 %v286_v15 }
 0x3a0   :  { %295 = vrot.lane.b32.xlu0 %v294_v10, %s1418_s29  ;;  %1312 = vrcp.f32 %v285_v18 }
 0x3ac   :  { %v1311_v19 = vpop.eup %1310 }
 0x3ad   :  { %v1313_v22 = vpop.eup %1312 }
 0x40c   :  { %v308_v20 = vpop.permute.xlu1 %307 }
 0x40d   :  { %v312_v21 = vmul.f32 %v1311_v19, %v308_v20 }
 0x40e   :  { %v306_v23 = vpop.permute.xlu0 %305 }
 0x40f   :  { %317 = vrot.lane.b32.xlu1 %v312_v21, %s1418_s29  ;;  %v311_v24 = vmul.f32 %v1313_v22, %v306_v23 }
 0x410   :  { %v298_v25 = vpop.permute.xlu1 %297 }
 0x411   :  { %315 = vrot.lane.b32.xlu0 %v311_v24, %s1418_s29  ;;  %v302_v26 = vmul.f32 %v1311_v19, %v298_v25 }
 0x412   :  { %v296_v27 = vpop.permute.xlu0 %295 }
 0x413   :  { %v301_v30 = vmul.f32 %v1313_v22, %v296_v27  ;;  %v466_v27 = vsel %vm465_vm7, 1, %v1417_v4 }
 0x481   :  { %v318_v28 = vpop.permute.xlu1 %317 }
 0x482   :  { %v322_v29 = vadd.f32 %v318_v28, %v302_v26 }
 0x483   :  { %v316_v31 = vpop.permute.xlu0 %315 }
 0x484   :  { %1314 = vtanh.f32 %v322_v29  ;;  %v321_v32 = vadd.f32 %v316_v31, %v301_v30 }
 0x486   :  { %1316 = vtanh.f32 %v321_v32  ;;  %v343_v36 = vrot.slane %v321_v32, 1 }
 0x488   :  { %v344_v37 = vsel %vm215_vm2, %v322_v29, %v343_v36 }
 0x491   :  { %v1315_v33 = vpop.eup %1314 }
 0x492   :  { %329 = vrot.lane.b32.xlu1 %v1315_v33, %s1418_s29 }
 0x493   :  { %v1317_v34 = vpop.eup %1316 }
 0x494   :  { %327 = vrot.lane.b32.xlu0 %v1317_v34, %s1418_s29 }
 0x498   :  { %338 = vperm.xlu0 %1280, %v336_v35  }
 0x49c   :  { %345 = vrot.lane.b32.xlu0 %v344_v37, %s1420_s7 }
 0x504   :  { %v330_v38 = vpop.permute.xlu1 %329 }
 0x505   :  { %v334_v41 = vmul.f32 %v1311_v19, %v330_v38 }
 0x506   :  { %v328_v39 = vpop.permute.xlu0 %327 }
 0x507   :  { %v333_v40 = vmul.f32 %v1313_v22, %v328_v39 }
 0x509   :  { %v351_v42 = vrot.slane %v333_v40, 1 }
 0x50b   :  { %v352_v43 = vsel %vm215_vm2, %v334_v41, %v351_v42 }
 0x50c   :  { %353 = vrot.lane.b32.xlu1 %v352_v43, %s1419_s6 }
 0x513   :  { %v339_v44 = vpop.permute.xlu0 %338 }
 0x514   :  { %vm340_vm6 = vcmp.eq.s32.totalorder %v339_v44, 1 }
 0x57e   :  { %v354_v46 = vpop.permute.xlu1 %353 }
 0x57f   :  { %v1562_v47 = vsel %vm340_vm6, %v354_v46, %v1528_v57  ;;  %v346_v57 = vpop.permute.xlu0 %345 }
 0x580   :  { %v357_v48 = vpack.c.bf16 %v1562_v47, %v1562_v47  ;;  %v1577_v59 = vsel %vm340_vm6, %v346_v57, %v1543_v9 }
 0x581   :  { %v423_v61 = vrot.slane %v1577_v59, 6  ;;  %v424_v62 = vrot.slane %v1577_v59, 7 }
 0x582   :  { %1231 = vmatmul.mubr.msk.bf16.vlgmr.msra.gmra.mxu1 %vm47_vm1, %v357_v48 }
 0x583   :  { %1243 = vmatpush3.bf16.msra.mxu1 %v1459_v2  ;;  %1246 = vmatprep.mubr.msk.bf16.mxu1 %vm1416_vm0, %v1415_v0 }
 0x584   :  { %1244 = vmatprep.subr.bf16.mxu1 %v1415_v0 }
 0x587   :  { %1245 = vmatpush3.bf16.msra.mxu1 %v1474_v5 }
 0x588   :  { %1258 = vmatprep.subr.bf16.mxu1 %v1415_v0 }
 0x642   :  { %v395_v49 = vpop.f32.mrf.mxu1 }
 0x643   :  { %v402_v50 = vrot.slane %v395_v49, 6  ;;  %v403_v51 = vrot.slane %v395_v49, 7 }
 0x644   :  { %v1232_v52 = vpop.f32.mrf.mxu1 }
 0x645   :  { %v406_v53 = vadd.f32 %v402_v50, %v1504_v16  ;;  %v407_v54 = vadd.f32 %v403_v51, %v1506_v17 }
 0x646   :  { %v398_v55 = vpop.f32.mrf.mxu1 }
 0x647   :  { %1318 = vtanh.f32 %v406_v53  ;;  %v1158_v63 = vmul.f32 -1.442695, %v406_v53  ;;  %v1159_v1 = vmul.f32 -1.442695, %v407_v54 }
 0x648   :  { %1320 = vtanh.f32 %v407_v54  ;;  %v1233_v56 = vpop.f32.mrf.mxu1 }
 0x649   :  { %1322 = vpow2.f32 %v1158_v63 }
 0x64a   :  { %1324 = vpow2.f32 %v1159_v1 }
 0x654   :  { %v1319_v58 = vpop.eup %1318 }
 0x655   :  { %v1321_v60 = vpop.eup %1320  ;;  %435 = vrot.lane.b32.xlu1 %v1319_v58, %s1418_s29 }
 0x656   :  { %437 = vrot.lane.b32.xlu0 %v1321_v60, %s1418_s29  ;;  %v1323_v3 = vpop.eup %1322 }
 0x657   :  { %v1325_v6 = vpop.eup %1324  ;;  %v414_v7 = vadd.f32 1.0, %v1323_v3 }
 0x658   :  { %v415_v8 = vadd.f32 1.0, %v1325_v6 }
 0x659   :  { %425 = vrot.lane.b32.xlu1 %v423_v61, %s1418_s29  ;;  %1326 = vrcp.f32 %v414_v7 }
 0x65a   :  { %427 = vrot.lane.b32.xlu0 %v424_v62, %s1418_s29  ;;  %1328 = vrcp.f32 %v415_v8 }
 0x666   :  { %v1327_v9 = vpop.eup %1326 }
 0x667   :  { %v1329_v11 = vpop.eup %1328 }
 0x6c7   :  { %v436_v10 = vpop.permute.xlu1 %435 }
 0x6c8   :  { %v441_v12 = vmul.f32 %v1327_v9, %v436_v10  ;;  %v438_v13 = vpop.permute.xlu0 %437 }
 0x6c9   :  { %v442_v14 = vmul.f32 %v1329_v11, %v438_v13 }
 0x6ca   :  { %445 = vrot.lane.b32.xlu1 %v441_v12, %s1418_s29 }
 0x6cb   :  { %447 = vrot.lane.b32.xlu0 %v442_v14, %s1418_s29  ;;  %v426_v15 = vpop.permute.xlu1 %425 }
 0x6cc   :  { %v428_v18 = vpop.permute.xlu0 %427  ;;  %v431_v19 = vmul.f32 %v1327_v9, %v426_v15 }
 0x6cd   :  { %v432_v20 = vmul.f32 %v1329_v11, %v428_v18 }
 0x73c   :  { %v446_v21 = vpop.permute.xlu1 %445 }
 0x73d   :  { %v451_v22 = vadd.f32 %v446_v21, %v431_v19  ;;  %v448_v23 = vpop.permute.xlu0 %447  ;;  %v598_v21 = vsel %vm597_vm9, 1, %v1417_v4 }
 0x73e   :  { %v452_v24 = vadd.f32 %v448_v23, %v432_v20 }
 0x73f   :  { %1330 = vtanh.f32 %v451_v22  ;;  %v473_v28 = vrot.slane %v451_v22, 2 }
 0x740   :  { %1332 = vtanh.f32 %v452_v24  ;;  %v474_v29 = vrot.slane %v452_v24, 1 }
 0x742   :  { %v475_v30 = vsel %vm215_vm2, %v474_v29, %v473_v28 }
 0x74c   :  { %v1331_v25 = vpop.eup %1330 }
 0x74d   :  { %v1333_v26 = vpop.eup %1332  ;;  %457 = vrot.lane.b32.xlu1 %v1331_v25, %s1418_s29 }
 0x74e   :  { %459 = vrot.lane.b32.xlu0 %v1333_v26, %s1418_s29 }
 0x751   :  { %468 = vperm.xlu1 %1281, %v466_v27  }
 0x755   :  { %476 = vrot.lane.b32.xlu1 %v475_v30, %s1420_s7 }
 0x7bf   :  { %v458_v31 = vpop.permute.xlu1 %457 }
 0x7c0   :  { %v463_v32 = vmul.f32 %v1327_v9, %v458_v31  ;;  %v460_v33 = vpop.permute.xlu0 %459 }
 0x7c1   :  { %v464_v34 = vmul.f32 %v1329_v11, %v460_v33 }
 0x7c2   :  { %v482_v35 = vrot.slane %v463_v32, 2 }
 0x7c3   :  { %v483_v36 = vrot.slane %v464_v34, 1 }
 0x7c5   :  { %v484_v37 = vsel %vm215_vm2, %v483_v36, %v482_v35 }
 0x7c6   :  { %485 = vrot.lane.b32.xlu0 %v484_v37, %s1419_s6 }
 0x7cc   :  { %v469_v38 = vpop.permute.xlu1 %468 }
 0x7cd   :  { %vm470_vm8 = vcmp.eq.s32.totalorder %v469_v38, 1 }
 0x7d0   :  { %v477_v51 = vpop.permute.xlu1 %476 }
 0x7d1   :  { %v1612_v53 = vsel %vm470_vm8, %v477_v51, %v1577_v59 }
 0x7d2   :  { %v555_v55 = vrot.slane %v1612_v53, 5  ;;  %v556_v56 = vrot.slane %v1612_v53, 6 }
 0x838   :  { %v486_v39 = vpop.permute.xlu0 %485 }
 0x839   :  { %v1597_v40 = vsel %vm470_vm8, %v486_v39, %v1562_v47 }
 0x83a   :  { %v489_v41 = vpack.c.bf16 %v1597_v40, %v1597_v40 }
 0x83c   :  { %1239 = vmatmul.mubr.msk.bf16.vlgmr.msra.gmra.mxu0 %vm47_vm1, %v489_v41 }
 0x83d   :  { %1251 = vmatpush3.bf16.msra.mxu0 %v1459_v2  ;;  %1254 = vmatprep.mubr.msk.bf16.mxu0 %vm1416_vm0, %v1415_v0 }
 0x83e   :  { %1252 = vmatprep.subr.bf16.mxu0 %v1415_v0 }
 0x841   :  { %1253 = vmatpush3.bf16.msra.mxu0 %v1474_v5 }
 0x842   :  { %1266 = vmatprep.subr.bf16.mxu0 %v1415_v0 }
 0x8fc   :  { %v527_v42 = vpop.f32.mrf.mxu0 }
 0x8fd   :  { %v534_v43 = vrot.slane %v527_v42, 5  ;;  %v535_v44 = vrot.slane %v527_v42, 6 }
 0x8fe   :  { %v1240_v46 = vpop.f32.mrf.mxu0 }
 0x8ff   :  { %v538_v47 = vadd.f32 %v534_v43, %v1504_v16  ;;  %v539_v48 = vadd.f32 %v535_v44, %v1506_v17 }
 0x900   :  { %v530_v49 = vpop.f32.mrf.mxu0 }
 0x901   :  { %1334 = vtanh.f32 %v538_v47  ;;  %v1161_v57 = vmul.f32 -1.442695, %v538_v47  ;;  %v1162_v58 = vmul.f32 -1.442695, %v539_v48 }
 0x902   :  { %1336 = vtanh.f32 %v539_v48  ;;  %v1241_v50 = vpop.f32.mrf.mxu0 }
 0x903   :  { %1338 = vpow2.f32 %v1161_v57 }
 0x904   :  { %1340 = vpow2.f32 %v1162_v58 }
 0x90e   :  { %v1335_v52 = vpop.eup %1334 }
 0x90f   :  { %v1337_v54 = vpop.eup %1336  ;;  %567 = vrot.lane.b32.xlu0 %v1335_v52, %s1418_s29 }
 0x910   :  { %569 = vrot.lane.b32.xlu1 %v1337_v54, %s1418_s29  ;;  %v1339_v60 = vpop.eup %1338 }
 0x911   :  { %v1341_v59 = vpop.eup %1340  ;;  %v546_v61 = vadd.f32 1.0, %v1339_v60 }
 0x912   :  { %v547_v62 = vadd.f32 1.0, %v1341_v59 }
 0x913   :  { %557 = vrot.lane.b32.xlu0 %v555_v55, %s1418_s29  ;;  %1342 = vrcp.f32 %v546_v61 }
 0x914   :  { %559 = vrot.lane.b32.xlu1 %v556_v56, %s1418_s29  ;;  %1344 = vrcp.f32 %v547_v62 }
 0x920   :  { %v1343_v63 = vpop.eup %1342 }
 0x921   :  { %v1345_v3 = vpop.eup %1344 }
 0x981   :  { %v568_v1 = vpop.permute.xlu0 %567 }
 0x982   :  { %v570_v6 = vpop.permute.xlu1 %569  ;;  %v573_v7 = vmul.f32 %v1343_v63, %v568_v1 }
 0x983   :  { %v574_v8 = vmul.f32 %v1345_v3, %v570_v6 }
 0x984   :  { %577 = vrot.lane.b32.xlu0 %v573_v7, %s1418_s29 }
 0x985   :  { %579 = vrot.lane.b32.xlu1 %v574_v8, %s1418_s29  ;;  %v558_v9 = vpop.permute.xlu0 %557 }
 0x986   :  { %v560_v10 = vpop.permute.xlu1 %559  ;;  %v563_v11 = vmul.f32 %v1343_v63, %v558_v9 }
 0x987   :  { %v564_v12 = vmul.f32 %v1345_v3, %v560_v10 }
 0x9f6   :  { %v578_v13 = vpop.permute.xlu0 %577 }
 0x9f7   :  { %v580_v14 = vpop.permute.xlu1 %579  ;;  %v583_v15 = vadd.f32 %v578_v13, %v563_v11  ;;  %v730_v13 = vsel %vm729_vm11, 1, %v1417_v4 }
 0x9f8   :  { %v584_v18 = vadd.f32 %v580_v14, %v564_v12 }
 0x9f9   :  { %1346 = vtanh.f32 %v583_v15  ;;  %v605_v23 = vrot.slane %v583_v15, 3 }
 0x9fa   :  { %1348 = vtanh.f32 %v584_v18  ;;  %v606_v22 = vrot.slane %v584_v18, 2 }
 0x9fc   :  { %v607_v24 = vsel %vm215_vm2, %v606_v22, %v605_v23 }
 0xa06   :  { %v1347_v19 = vpop.eup %1346 }
 0xa07   :  { %v1349_v20 = vpop.eup %1348  ;;  %589 = vrot.lane.b32.xlu0 %v1347_v19, %s1418_s29 }
 0xa08   :  { %591 = vrot.lane.b32.xlu1 %v1349_v20, %s1418_s29 }
 0xa0b   :  { %600 = vperm.xlu0 %1280, %v598_v21  }
 0xa0f   :  { %608 = vrot.lane.b32.xlu0 %v607_v24, %s1420_s7 }
 0xa79   :  { %v590_v25 = vpop.permute.xlu0 %589 }
 0xa7a   :  { %v592_v26 = vpop.permute.xlu1 %591  ;;  %v595_v27 = vmul.f32 %v1343_v63, %v590_v25 }
 0xa7b   :  { %v596_v28 = vmul.f32 %v1345_v3, %v592_v26 }
 0xa7c   :  { %v614_v29 = vrot.slane %v595_v27, 3 }
 0xa7d   :  { %v615_v30 = vrot.slane %v596_v28, 2 }
 0xa7f   :  { %v616_v31 = vsel %vm215_vm2, %v615_v30, %v614_v29 }
 0xa80   :  { %617 = vrot.lane.b32.xlu1 %v616_v31, %s1419_s6 }
 0xa86   :  { %v601_v32 = vpop.permute.xlu0 %600 }
 0xa87   :  { %vm602_vm10 = vcmp.eq.s32.totalorder %v601_v32, 1 }
 0xa8a   :  { %v609_v44 = vpop.permute.xlu0 %608 }
 0xa8b   :  { %v1646_v47 = vsel %vm602_vm10, %v609_v44, %v1612_v53 }
 0xa8c   :  { %v687_v49 = vrot.slane %v1646_v47, 4  ;;  %v688_v50 = vrot.slane %v1646_v47, 5 }
 0xaf2   :  { %v618_v33 = vpop.permute.xlu1 %617 }
 0xaf3   :  { %v1632_v34 = vsel %vm602_vm10, %v618_v33, %v1597_v40 }
 0xaf4   :  { %v621_v35 = vpack.c.bf16 %v1632_v34, %v1632_v34 }
 0xaf6   :  { %1247 = vmatmul.mubr.msk.bf16.vlgmr.msra.gmra.mxu1 %vm47_vm1, %v621_v35 }
 0xaf7   :  { %1259 = vmatpush3.bf16.msra.mxu1 %v1459_v2  ;;  %1262 = vmatprep.mubr.msk.bf16.mxu1 %vm1416_vm0, %v1415_v0 }
 0xaf8   :  { %1260 = vmatprep.subr.bf16.mxu1 %v1415_v0 }
 0xafb   :  { %1261 = vmatpush3.bf16.msra.mxu1 %v1474_v5 }
 0xbb6   :  { %v659_v36 = vpop.f32.mrf.mxu1 }
 0xbb7   :  { %v666_v37 = vrot.slane %v659_v36, 4  ;;  %v667_v38 = vrot.slane %v659_v36, 5 }
 0xbb8   :  { %v1248_v39 = vpop.f32.mrf.mxu1 }
 0xbb9   :  { %v670_v40 = vadd.f32 %v666_v37, %v1504_v16  ;;  %v671_v41 = vadd.f32 %v667_v38, %v1506_v17 }
 0xbba   :  { %v662_v42 = vpop.f32.mrf.mxu1 }
 0xbbb   :  { %1350 = vtanh.f32 %v670_v40  ;;  %v1164_v51 = vmul.f32 -1.442695, %v670_v40  ;;  %v1165_v52 = vmul.f32 -1.442695, %v671_v41 }
 0xbbc   :  { %1352 = vtanh.f32 %v671_v41  ;;  %v1249_v43 = vpop.f32.mrf.mxu1 }
 0xbbd   :  { %1354 = vpow2.f32 %v1164_v51 }
 0xbbe   :  { %1356 = vpow2.f32 %v1165_v52 }
 0xbc8   :  { %v1351_v46 = vpop.eup %1350 }
 0xbc9   :  { %v1353_v48 = vpop.eup %1352  ;;  %699 = vrot.lane.b32.xlu1 %v1351_v46, %s1418_s29 }
 0xbca   :  { %701 = vrot.lane.b32.xlu0 %v1353_v48, %s1418_s29  ;;  %v1355_v54 = vpop.eup %1354 }
 0xbcb   :  { %v1357_v53 = vpop.eup %1356  ;;  %v678_v55 = vadd.f32 1.0, %v1355_v54 }
 0xbcc   :  { %v679_v56 = vadd.f32 1.0, %v1357_v53 }
 0xbcd   :  { %689 = vrot.lane.b32.xlu1 %v687_v49, %s1418_s29  ;;  %1358 = vrcp.f32 %v678_v55 }
 0xbce   :  { %691 = vrot.lane.b32.xlu0 %v688_v50, %s1418_s29  ;;  %1360 = vrcp.f32 %v679_v56 }
 0xbda   :  { %v1359_v57 = vpop.eup %1358 }
 0xbdb   :  { %v1361_v60 = vpop.eup %1360 }
 0xc3b   :  { %v700_v58 = vpop.permute.xlu1 %699 }
 0xc3c   :  { %v705_v59 = vmul.f32 %v1359_v57, %v700_v58  ;;  %v702_v61 = vpop.permute.xlu0 %701 }
 0xc3d   :  { %v706_v62 = vmul.f32 %v1361_v60, %v702_v61 }
 0xc3e   :  { %709 = vrot.lane.b32.xlu1 %v705_v59, %s1418_s29 }
 0xc3f   :  { %711 = vrot.lane.b32.xlu0 %v706_v62, %s1418_s29  ;;  %v690_v63 = vpop.permute.xlu1 %689 }
 0xc40   :  { %v692_v1 = vpop.permute.xlu0 %691  ;;  %v695_v3 = vmul.f32 %v1359_v57, %v690_v63 }
 0xc41   :  { %v696_v6 = vmul.f32 %v1361_v60, %v692_v1  ;;  %v862_v1 = vsel %vm861_vm13, 1, %v1417_v4 }
 0xcb0   :  { %v710_v7 = vpop.permute.xlu1 %709 }
 0xcb1   :  { %v715_v8 = vadd.f32 %v710_v7, %v695_v3  ;;  %v712_v9 = vpop.permute.xlu0 %711 }
 0xcb2   :  { %v716_v10 = vadd.f32 %v712_v9, %v696_v6 }
 0xcb3   :  { %1362 = vtanh.f32 %v715_v8  ;;  %v737_v14 = vrot.slane %v715_v8, 4 }
 0xcb4   :  { %1364 = vtanh.f32 %v716_v10  ;;  %v738_v15 = vrot.slane %v716_v10, 3 }
 0xcb6   :  { %v739_v18 = vsel %vm215_vm2, %v738_v15, %v737_v14 }
 0xcc0   :  { %v1363_v11 = vpop.eup %1362 }
 0xcc1   :  { %v1365_v12 = vpop.eup %1364  ;;  %721 = vrot.lane.b32.xlu1 %v1363_v11, %s1418_s29 }
 0xcc2   :  { %723 = vrot.lane.b32.xlu0 %v1365_v12, %s1418_s29 }
 0xcc5   :  { %732 = vperm.xlu1 %1281, %v730_v13  }
 0xcc9   :  { %740 = vrot.lane.b32.xlu1 %v739_v18, %s1420_s7 }
 0xd33   :  { %v722_v19 = vpop.permute.xlu1 %721 }
 0xd34   :  { %v727_v20 = vmul.f32 %v1359_v57, %v722_v19  ;;  %v724_v21 = vpop.permute.xlu0 %723 }
 0xd35   :  { %v728_v22 = vmul.f32 %v1361_v60, %v724_v21 }
 0xd36   :  { %v746_v23 = vrot.slane %v727_v20, 4 }
 0xd37   :  { %v747_v24 = vrot.slane %v728_v22, 3 }
 0xd39   :  { %v748_v25 = vsel %vm215_vm2, %v747_v24, %v746_v23 }
 0xd3a   :  { %749 = vrot.lane.b32.xlu0 %v748_v25, %s1419_s6 }
 0xd40   :  { %v733_v26 = vpop.permute.xlu1 %732 }
 0xd41   :  { %vm734_vm12 = vcmp.eq.s32.totalorder %v733_v26, 1 }
 0xdac   :  { %v750_v27 = vpop.permute.xlu0 %749 }
 0xdad   :  { %v1666_v28 = vsel %vm734_vm12, %v750_v27, %v1632_v34 }
 0xdae   :  { %v753_v29 = vpack.c.bf16 %v1666_v28, %v1666_v28 }
 0xdb0   :  { %1255 = vmatmul.mubr.msk.bf16.vlgmr.msra.gmra.mxu0 %vm47_vm1, %v753_v29 }
 0xdb1   :  { %1267 = vmatpush3.bf16.msra.mxu0 %v1459_v2  ;;  %1270 = vmatprep.mubr.msk.bf16.mxu0 %vm1416_vm0, %v1415_v0  ;;  %v741_v2 = vpop.permute.xlu1 %740 }
 0xdb2   :  { %1268 = vmatprep.subr.bf16.mxu0 %v1415_v0  ;;  %v1680_v39 = vsel %vm734_vm12, %v741_v2, %v1646_v47 }
 0xdb3   :  { %v820_v40 = vrot.slane %v1680_v39, 4 }
 0xdb5   :  { %1269 = vmatpush3.bf16.msra.mxu0 %v1474_v5  ;;  %v819_v5 = vrot.slane %v1680_v39, 3 }
 0xe70   :  { %v791_v30 = vpop.f32.mrf.mxu0 }
 0xe71   :  { %v798_v31 = vrot.slane %v791_v30, 3  ;;  %v799_v32 = vrot.slane %v791_v30, 4 }
 0xe72   :  { %v1256_v33 = vpop.f32.mrf.mxu0 }
 0xe73   :  { %v802_v34 = vadd.f32 %v798_v31, %v1504_v16  ;;  %v803_v35 = vadd.f32 %v799_v32, %v1506_v17 }
 0xe74   :  { %v794_v36 = vpop.f32.mrf.mxu0 }
 0xe75   :  { %1366 = vtanh.f32 %v802_v34  ;;  %v1167_v41 = vmul.f32 -1.442695, %v802_v34  ;;  %v1168_v42 = vmul.f32 -1.442695, %v803_v35 }
 0xe76   :  { %1368 = vtanh.f32 %v803_v35  ;;  %v1257_v37 = vpop.f32.mrf.mxu0 }
 0xe77   :  { %1370 = vpow2.f32 %v1167_v41 }
 0xe78   :  { %1372 = vpow2.f32 %v1168_v42 }
 0xe82   :  { %v1367_v38 = vpop.eup %1366 }
 0xe83   :  { %v1369_v0 = vpop.eup %1368  ;;  %831 = vrot.lane.b32.xlu0 %v1367_v38, %s1418_s29 }
 0xe84   :  { %833 = vrot.lane.b32.xlu1 %v1369_v0, %s1418_s29  ;;  %v1371_v43 = vpop.eup %1370 }
 0xe85   :  { %v1373_v44 = vpop.eup %1372  ;;  %v810_v46 = vadd.f32 1.0, %v1371_v43 }
 0xe86   :  { %v811_v47 = vadd.f32 1.0, %v1373_v44 }
 0xe87   :  { %821 = vrot.lane.b32.xlu0 %v819_v5, %s1418_s29  ;;  %1374 = vrcp.f32 %v810_v46 }
 0xe88   :  { %823 = vrot.lane.b32.xlu1 %v820_v40, %s1418_s29  ;;  %1376 = vrcp.f32 %v811_v47 }
 0xe94   :  { %v1375_v48 = vpop.eup %1374 }
 0xe95   :  { %v1377_v50 = vpop.eup %1376 }
 0xef5   :  { %v832_v49 = vpop.permute.xlu0 %831 }
 0xef6   :  { %v834_v51 = vpop.permute.xlu1 %833  ;;  %v837_v52 = vmul.f32 %v1375_v48, %v832_v49 }
 0xef7   :  { %v838_v54 = vmul.f32 %v1377_v50, %v834_v51 }
 0xef8   :  { %841 = vrot.lane.b32.xlu0 %v837_v52, %s1418_s29 }
 0xef9   :  { %843 = vrot.lane.b32.xlu1 %v838_v54, %s1418_s29  ;;  %v822_v53 = vpop.permute.xlu0 %821 }
 0xefa   :  { %v824_v55 = vpop.permute.xlu1 %823  ;;  %v827_v56 = vmul.f32 %v1375_v48, %v822_v53 }
 0xefb   :  { %v828_v57 = vmul.f32 %v1377_v50, %v824_v55  ;;  %v994_v55 = vsel %vm993_vm15, 1, %v1417_v4 }
 0xf6a   :  { %v842_v58 = vpop.permute.xlu0 %841 }
 0xf6b   :  { %v844_v60 = vpop.permute.xlu1 %843  ;;  %v847_v59 = vadd.f32 %v842_v58, %v827_v56 }
 0xf6c   :  { %v848_v61 = vadd.f32 %v844_v60, %v828_v57 }
 0xf6d   :  { %1378 = vtanh.f32 %v847_v59  ;;  %v869_v6 = vrot.slane %v847_v59, 5 }
 0xf6e   :  { %1380 = vtanh.f32 %v848_v61  ;;  %v870_v3 = vrot.slane %v848_v61, 4 }
 0xf70   :  { %v871_v7 = vsel %vm215_vm2, %v870_v3, %v869_v6 }
 0xf7a   :  { %v1379_v62 = vpop.eup %1378 }
 0xf7b   :  { %v1381_v63 = vpop.eup %1380  ;;  %853 = vrot.lane.b32.xlu0 %v1379_v62, %s1418_s29 }
 0xf7c   :  { %855 = vrot.lane.b32.xlu1 %v1381_v63, %s1418_s29 }
 0xf7f   :  { %864 = vperm.xlu0 %1280, %v862_v1  }
 0xf83   :  { %872 = vrot.lane.b32.xlu0 %v871_v7, %s1420_s7 }
 0xfed   :  { %v854_v8 = vpop.permute.xlu0 %853 }
 0xfee   :  { %v856_v9 = vpop.permute.xlu1 %855  ;;  %v859_v10 = vmul.f32 %v1375_v48, %v854_v8 }
 0xfef   :  { %v860_v11 = vmul.f32 %v1377_v50, %v856_v9 }
 0xff0   :  { %v878_v12 = vrot.slane %v859_v10, 5 }
 0xff1   :  { %v879_v13 = vrot.slane %v860_v11, 4 }
 0xff3   :  { %v880_v14 = vsel %vm215_vm2, %v879_v13, %v878_v12 }
 0xff4   :  { %881 = vrot.lane.b32.xlu1 %v880_v14, %s1419_s6 }
 0xffa   :  { %v865_v15 = vpop.permute.xlu0 %864 }
 0xffb   :  { %vm866_vm14 = vcmp.eq.s32.totalorder %v865_v15, 1 }
 0xffe   :  { %v873_v30 = vpop.permute.xlu0 %872 }
 0xfff   :  { %v1709_v31 = vsel %vm866_vm14, %v873_v30, %v1680_v39 }
0x1000   :  { %v951_v33 = vrot.slane %v1709_v31, 2  ;;  %v952_v34 = vrot.slane %v1709_v31, 3 }
0x1066   :  { %v882_v18 = vpop.permute.xlu1 %881 }
0x1067   :  { %v1700_v19 = vsel %vm866_vm14, %v882_v18, %v1666_v28 }
0x1068   :  { %v885_v20 = vpack.c.bf16 %v1700_v19, %v1700_v19 }
0x106a   :  { %1263 = vmatmul.mubr.msk.bf16.vlgmr.msra.gmra.mxu1 %vm47_vm1, %v885_v20 }
0x112a   :  { %v923_v21 = vpop.f32.mrf.mxu1 }
0x112b   :  { %v930_v22 = vrot.slane %v923_v21, 2  ;;  %v931_v23 = vrot.slane %v923_v21, 3 }
0x112c   :  { %v1264_v24 = vpop.f32.mrf.mxu1 }
0x112d   :  { %v934_v25 = vadd.f32 %v930_v22, %v1504_v16  ;;  %v935_v26 = vadd.f32 %v931_v23, %v1506_v17 }
0x112e   :  { %v926_v27 = vpop.f32.mrf.mxu1 }
0x112f   :  { %1382 = vtanh.f32 %v934_v25  ;;  %v1170_v35 = vmul.f32 -1.442695, %v934_v25  ;;  %v1171_v36 = vmul.f32 -1.442695, %v935_v26 }
0x1130   :  { %1384 = vtanh.f32 %v935_v26  ;;  %v1265_v29 = vpop.f32.mrf.mxu1 }
0x1131   :  { %1386 = vpow2.f32 %v1170_v35 }
0x1132   :  { %1388 = vpow2.f32 %v1171_v36 }
0x113c   :  { %v1383_v28 = vpop.eup %1382 }
0x113d   :  { %v1385_v32 = vpop.eup %1384  ;;  %963 = vrot.lane.b32.xlu1 %v1383_v28, %s1418_s29 }
0x113e   :  { %965 = vrot.lane.b32.xlu0 %v1385_v32, %s1418_s29  ;;  %v1387_v37 = vpop.eup %1386 }
0x113f   :  { %v1389_v2 = vpop.eup %1388  ;;  %v942_v38 = vadd.f32 1.0, %v1387_v37 }
0x1140   :  { %v943_v39 = vadd.f32 1.0, %v1389_v2 }
0x1141   :  { %953 = vrot.lane.b32.xlu1 %v951_v33, %s1418_s29  ;;  %1390 = vrcp.f32 %v942_v38 }
0x1142   :  { %955 = vrot.lane.b32.xlu0 %v952_v34, %s1418_s29  ;;  %1392 = vrcp.f32 %v943_v39 }
0x114e   :  { %v1391_v0 = vpop.eup %1390 }
0x114f   :  { %v1393_v40 = vpop.eup %1392 }
0x11af   :  { %v964_v5 = vpop.permute.xlu1 %963 }
0x11b0   :  { %v969_v41 = vmul.f32 %v1391_v0, %v964_v5  ;;  %v966_v42 = vpop.permute.xlu0 %965 }
0x11b1   :  { %v970_v43 = vmul.f32 %v1393_v40, %v966_v42 }
0x11b2   :  { %973 = vrot.lane.b32.xlu1 %v969_v41, %s1418_s29 }
0x11b3   :  { %975 = vrot.lane.b32.xlu0 %v970_v43, %s1418_s29  ;;  %v954_v44 = vpop.permute.xlu1 %953 }
0x11b4   :  { %v956_v46 = vpop.permute.xlu0 %955  ;;  %v959_v47 = vmul.f32 %v1391_v0, %v954_v44 }
0x11b5   :  { %v960_v48 = vmul.f32 %v1393_v40, %v956_v46 }
0x1224   :  { %v974_v49 = vpop.permute.xlu1 %973 }
0x1225   :  { %v979_v50 = vadd.f32 %v974_v49, %v959_v47  ;;  %v976_v51 = vpop.permute.xlu0 %975 }
0x1226   :  { %v980_v52 = vadd.f32 %v976_v51, %v960_v48 }
0x1227   :  { %1394 = vtanh.f32 %v979_v50  ;;  %v1001_v56 = vrot.slane %v979_v50, 6 }
0x1228   :  { %1396 = vtanh.f32 %v980_v52  ;;  %v1002_v57 = vrot.slane %v980_v52, 5 }
0x122a   :  { %v1003_v58 = vsel %vm215_vm2, %v1002_v57, %v1001_v56 }
0x1234   :  { %v1395_v54 = vpop.eup %1394 }
0x1235   :  { %v1397_v53 = vpop.eup %1396  ;;  %985 = vrot.lane.b32.xlu1 %v1395_v54, %s1418_s29 }
0x1236   :  { %987 = vrot.lane.b32.xlu0 %v1397_v53, %s1418_s29 }
0x1239   :  { %996 = vperm.xlu1 %1281, %v994_v55  }
0x123d   :  { %1004 = vrot.lane.b32.xlu1 %v1003_v58, %s1420_s7 }
0x12a7   :  { %v986_v60 = vpop.permute.xlu1 %985 }
0x12a8   :  { %v991_v59 = vmul.f32 %v1391_v0, %v986_v60  ;;  %v988_v61 = vpop.permute.xlu0 %987 }
0x12a9   :  { %v992_v62 = vmul.f32 %v1393_v40, %v988_v61  ;;  %v1414_v40 = vld [vmem:[%s1760_s1] sm:$0x3] }
0x12aa   :  { %v1010_v45 = vrot.slane %v991_v59, 6 }
0x12ab   :  { %v1011_v63 = vrot.slane %v992_v62, 5 }
0x12ad   :  { %v1012_v1 = vsel %vm215_vm2, %v1011_v63, %v1010_v45 }
0x12ae   :  { %1013 = vrot.lane.b32.xlu0 %v1012_v1, %s1419_s6 }
0x12b4   :  { %v997_v3 = vpop.permute.xlu1 %996 }
0x12b5   :  { %vm998_vm0 = vcmp.eq.s32.totalorder %v997_v3, 1 }
0x12b8   :  { %v1005_v20 = vpop.permute.xlu1 %1004 }
0x12b9   :  { %v1007_v21 = vsel %vm998_vm0, %v1005_v20, %v1709_v31 }
0x12ba   :  { %v1083_v23 = vrot.slane %v1007_v21, 1  ;;  %v1084_v24 = vrot.slane %v1007_v21, 2 }
0x1320   :  { %v1014_v6 = vpop.permute.xlu0 %1013 }
0x1321   :  { %v1729_v7 = vsel %vm998_vm0, %v1014_v6, %v1700_v19 }
0x1322   :  { %v1017_v8 = vpack.c.bf16 %v1729_v7, %v1729_v7 }
0x1324   :  { %1271 = vmatmul.mubr.msk.bf16.vlgmr.msra.gmra.mxu0 %vm47_vm1, %v1017_v8  ;;  %vm1125_vm1 = vcmp.gt.s32.totalorder %v1414_v40, 7 }
0x1325   :  { %v1126_v43 = vsel %vm1125_vm1, 1, %v1417_v4 }
0x13e4   :  { %v1055_v9 = vpop.f32.mrf.mxu0 }
0x13e5   :  { %v1062_v10 = vrot.slane %v1055_v9, 1  ;;  %v1063_v11 = vrot.slane %v1055_v9, 2 }
0x13e6   :  { %v1272_v12 = vpop.f32.mrf.mxu0 }
0x13e7   :  { %v1066_v13 = vadd.f32 %v1062_v10, %v1504_v16  ;;  %v1067_v14 = vadd.f32 %v1063_v11, %v1506_v17 }
0x13e8   :  { %v1058_v15 = vpop.f32.mrf.mxu0 }
0x13e9   :  { %1398 = vtanh.f32 %v1066_v13  ;;  %v1173_v16 = vmul.f32 -1.442695, %v1066_v13  ;;  %v1174_v17 = vmul.f32 -1.442695, %v1067_v14 }
0x13ea   :  { %1400 = vtanh.f32 %v1067_v14  ;;  %v1273_v18 = vpop.f32.mrf.mxu0 }
0x13eb   :  { %1402 = vpow2.f32 %v1173_v16 }
0x13ec   :  { %1404 = vpow2.f32 %v1174_v17 }
0x13f6   :  { %v1399_v19 = vpop.eup %1398 }
0x13f7   :  { %v1401_v22 = vpop.eup %1400  ;;  %1095 = vrot.lane.b32.xlu0 %v1399_v19, %s1418_s29 }
0x13f8   :  { %1097 = vrot.lane.b32.xlu1 %v1401_v22, %s1418_s29  ;;  %v1403_v25 = vpop.eup %1402 }
0x13f9   :  { %v1405_v26 = vpop.eup %1404  ;;  %v1074_v27 = vadd.f32 1.0, %v1403_v25 }
0x13fa   :  { %v1075_v29 = vadd.f32 1.0, %v1405_v26 }
0x13fb   :  { %1085 = vrot.lane.b32.xlu0 %v1083_v23, %s1418_s29  ;;  %1406 = vrcp.f32 %v1074_v27 }
0x13fc   :  { %1087 = vrot.lane.b32.xlu1 %v1084_v24, %s1418_s29  ;;  %1408 = vrcp.f32 %v1075_v29 }
0x1408   :  { %v1407_v30 = vpop.eup %1406 }
0x1409   :  { %v1409_v31 = vpop.eup %1408 }
0x1469   :  { %v1096_v28 = vpop.permute.xlu0 %1095 }
0x146a   :  { %v1098_v32 = vpop.permute.xlu1 %1097  ;;  %v1101_v33 = vmul.f32 %v1407_v30, %v1096_v28 }
0x146b   :  { %v1102_v34 = vmul.f32 %v1409_v31, %v1098_v32 }
0x146c   :  { %1105 = vrot.lane.b32.xlu0 %v1101_v33, %s1418_s29 }
0x146d   :  { %1107 = vrot.lane.b32.xlu1 %v1102_v34, %s1418_s29  ;;  %v1086_v35 = vpop.permute.xlu0 %1085 }
0x146e   :  { %v1088_v36 = vpop.permute.xlu1 %1087  ;;  %v1091_v37 = vmul.f32 %v1407_v30, %v1086_v35 }
0x146f   :  { %v1092_v2 = vmul.f32 %v1409_v31, %v1088_v36 }
0x14de   :  { %v1106_v38 = vpop.permute.xlu0 %1105 }
0x14df   :  { %v1108_v39 = vpop.permute.xlu1 %1107  ;;  %v1111_v0 = vadd.f32 %v1106_v38, %v1091_v37 }
0x14e0   :  { %v1112_v5 = vadd.f32 %v1108_v39, %v1092_v2 }
0x14e1   :  { %1410 = vtanh.f32 %v1111_v0 }
0x14e2   :  { %1412 = vtanh.f32 %v1112_v5 }
0x14ee   :  { %v1411_v41 = vpop.eup %1410 }
0x14ef   :  { %v1413_v42 = vpop.eup %1412  ;;  %1117 = vrot.lane.b32.xlu0 %v1411_v41, %s1418_s29 }
0x14f0   :  { %1119 = vrot.lane.b32.xlu1 %v1413_v42, %s1418_s29 }
0x14f3   :  { %1128 = vperm.xlu0 %1280, %v1126_v43  }
0x1561   :  { %v1118_v44 = vpop.permute.xlu0 %1117 }
0x1562   :  { %v1120_v46 = vpop.permute.xlu1 %1119  ;;  %v1123_v47 = vmul.f32 %v1407_v30, %v1118_v44 }
0x1563   :  { %v1124_v48 = vmul.f32 %v1409_v31, %v1120_v46 }
0x1564   :  { %v1133_v49 = vrot.slane %v1123_v47, 7 }
0x1565   :  { %v1134_v50 = vrot.slane %v1124_v48, 6 }
0x1567   :  { %v1135_v51 = vsel %vm215_vm2, %v1134_v50, %v1133_v49 }
0x1568   :  { %1136 = vrot.lane.b32.xlu1 %v1135_v51, %s1419_s6 }
0x156e   :  { %v1129_v52 = vpop.permute.xlu0 %1128 }
0x156f   :  { %vm1130_vm4 = vcmp.eq.s32.totalorder %v1129_v52, 1 }
0x15da   :  { %v1137_v54 = vpop.permute.xlu1 %1136 }
0x15db   :  { %v1139_v53 = vsel %vm1130_vm4, %v1137_v54, %v1729_v7 }
0x15dc   :  { %1141 = vst.msk [vmem:[%s1761_s5] sm:$0x3] %vm1140_vm3, %v1139_v53 }

// kernel: text_embedding_forward.4
= control target key start
LH: loop header
LB: loop body
LE: loop exit
PB: predicated region body
PF: predicated region fallthrough
CT: control target
= control target key end

     0   :  { %s1834_s18 = smov 0   ;;  %s2204_s0 = inlined_call_operand.vmem [shape: f32[2,8,32], index: 0, kind: input, shape index: {}]   ;;  %s2205_s1 = inlined_call_operand.vmem [shape: s32[2,1], index: 1, kind: input, shape index: {}]   ;;  %s2206_s2 = inlined_call_operand.vmem [shape: bf16[2,32,128], index: 2, kind: input, shape index: {}]   ;;  %s2207_s3 = inlined_call_operand.vmem [shape: bf16[2,32,128], index: 3, kind: input, shape index: {}]   ;;  %s2208_s4 = inlined_call_operand.vmem [shape: f32[2,1,128], index: 4, kind: input, shape index: {}]   ;;  %s2209_s5 = inlined_call_operand.vmem [shape: f32[2,2,32], index: 5, kind: output, shape index: {}]  }
   0x1 LB: > { %s1840_s19 = sadd.s32 4294967295, %s1796_s18   ;;  %p1503_p0 = scmp.ge.s32.totalorder %s1796_s18, 1  ;;  %s1796_s18 = sphi %s1834_s18, %s15_s18  }
   0x2   : > { %p205_p1 = scmp.lt.s32.totalorder %s1796_s18, 3 }
   0x4   : > { %p206_p2 = pnand %p1503_p0, %p205_p1 }
   0x5   : > { %p240_p3 = scmp.lt.s32.totalorder (!%p206_p2), %s1840_s19, 1  ;;  %p330_p4 = scmp.eq.s32.totalorder (!%p206_p2), %s1840_s19, 1 }
   0x6   : > { %209 = sbr.rel (%p206_p2) target bundleno = 5610 (0x15ea), region = 40  ;;  %s1801_s11 = smov (!%p206_p2), 32  }
   0x7   : > { %s1802_s15 = smov (!%p206_p2), 64   ;;  %s1803_s16 = smov (!%p206_p2), 96  }
   0xb   : > { %v1798_v0 = vmov 0.0   ;;  %s1848_s20 = scalar_select %p240_p3, %s1840_s19, 1  ;;  %vm1799_vm0 = vmmov 0   ;;  %v1800_v1 = vmov 0   ;;  %v258_v3 = vld [vmem:[%s2204_s0] sm:$0xff]  ;;  %v259_v5 = vld [vmem:[%s2204_s0 + $0x8] sm:$0xff] }
   0xc   : > { %1569 = vmatprep.subr.bf16.mxu0 %v1798_v0  ;;  %1577 = vmatprep.subr.bf16.mxu1 %v1798_v0  ;;  %v260_v8 = vpack.c.bf16 %v259_v5, %v258_v3  ;;  %vm284_vm1 = vcmask 261120   ;;  %s331_s10 = scalar_select %p330_p4, 1, 0  ;;  %vm468_vm3 = vcmask 1041409   ;;  %v1948_v3 = vld [vmem:[%s2205_s1] sm:$0x3] }
   0xd   : > { %1573 = vmatprep.mubr.msk.bf16.mxu0 %vm1799_vm0, %v1798_v0  ;;  %1581 = vmatprep.mubr.msk.bf16.mxu1 %vm1799_vm0, %v1798_v0  ;;  %s1540_s21 = sshll.u32 %s1848_s20, 4  ;;  %s252_s9 = scalar_lea.vmem %s2208_s4, %s1848_s20 }
   0xe   : > { %1655 = vset.pattern.permute.xlu0 %v1800_v1  ;;  %1656 = vset.pattern.permute.xlu1 %v1800_v1  ;;  %s244_s24 = scalar_lea.vmem %s2206_s2, %s1540_s21  ;;  %s249_s27 = scalar_lea.vmem %s2207_s3, %s1540_s21  ;;  %v1509_v9 = vld [vmem:[%s252_s9] ss:$0 sm:$0xff]  ;;  %v332_v10 = vstv %s331_s10 }
   0xf   : > { %v1657_v2 = vld [vmem:[%s244_s24 + $0x8] sm:$0xff]   ;;  %v1660_v6 = vld [vmem:[%s244_s24] sm:$0xff]   ;;  %vm1900_vm2 = vcmp.eq.s32.totalorder %v332_v10, 1  ;;  %s342_s12 = scalar_select %p330_p4, 7, 0 }
  0x10   : > { %1570 = vmatpush3.bf16.msra.mxu0 %v1657_v2  ;;  %v1866_v4 = vld [vmem:[%s249_s27 + $0x8] sm:$0xff]   ;;  %v1872_v7 = vld [vmem:[%s249_s27] sm:$0xff]   ;;  %s489_s17 = scalar_select %p330_p4, 6, 1 }
  0x11   : > { %1571 = vmatprep.subr.bf16.mxu0 %v1798_v0  ;;  %1578 = vmatpush3.bf16.msra.mxu1 %v1866_v4  ;;  %v457_v5 = vstv %s342_s12  ;;  %s629_s21 = scalar_select %p330_p4, 5, 2 }
  0x12   : > { %1579 = vmatprep.subr.bf16.mxu1 %v1798_v0  ;;  %vm458_vm4 = vcmp.lt.s32.totalorder %v457_v5, %v1948_v3  ;;  %s769_s22 = scalar_select %p330_p4, 4, 3 }
  0x13   : > { %s903_s23 = scalar_select %p330_p4, 3, 4 }
  0x14   : > { %1572 = vmatpush3.bf16.msra.mxu0 %v1660_v6  ;;  %s1037_s24 = scalar_select %p330_p4, 2, 5 }
  0x15   : > { %1585 = vmatprep.subr.bf16.mxu0 %v1798_v0  ;;  %1580 = vmatpush3.bf16.msra.mxu1 %v1872_v7  ;;  %s1171_s25 = scalar_select %p330_p4, 1, 6 }
  0x16   : > { %1593 = vmatprep.subr.bf16.mxu1 %v1798_v0  ;;  %s1301_s26 = scalar_select %p330_p4, 0, 7 }
  0x17   : > { %1574 = vmatmul.mubr.msk.bf16.vlgmr.msra.gmra.mxu0 %vm284_vm1, %v260_v8  ;;  %v459_v8 = vsel %vm458_vm4, 1, %v1800_v1  ;;  %s1508_s19 = sshll.u32 %s1848_s20, 1  ;;  %vm1423_vm4 = vcmask 254976  }
  0x18   : > { %1586 = vmatpush3.bf16.msra.mxu0 %v1866_v4  ;;  %1589 = vmatprep.mubr.msk.bf16.mxu0 %vm1799_vm0, %v1798_v0  ;;  %s256_s6 = scalar_lea.vmem %s2209_s5, %s1508_s19 }
  0x19   : > { %1582 = vmatmul.mubr.bf16.vlgmr.msra.gmra.mxu1 %v1800_v1  ;;  %1587 = vmatprep.subr.bf16.mxu0 %v1798_v0 }
  0x1a   : > { %1594 = vmatpush3.bf16.msra.mxu1 %v1866_v4  ;;  %1597 = vmatprep.mubr.msk.bf16.mxu1 %vm1799_vm0, %v1798_v0 }
  0x1b   : > { %1595 = vmatprep.subr.bf16.mxu1 %v1798_v0 }
  0x1c   : > { %1588 = vmatpush3.bf16.msra.mxu0 %v1872_v7 }
  0x1d   : > { %1601 = vmatprep.subr.bf16.mxu0 %v1798_v0 }
  0x1e   : > { %1596 = vmatpush3.bf16.msra.mxu1 %v1872_v7 }
  0x1f   : > { %1609 = vmatprep.subr.bf16.mxu1 %v1798_v0 }
  0xd7   : > { %v322_v11 = vpop.f32.mrf.mxu0 }
  0xd8   : > { %v323_v12 = vadd.f32 %v1509_v9, %v322_v11 }
  0xd9   : > { %v396_v14 = vpop.f32.mrf.mxu1  ;;  %v1575_v15 = vpop.f32.mrf.mxu0 }
  0xda   : > { %v336_v16 = vrot.slane %v323_v12, 1  ;;  %v403_v17 = vrot.slane %v396_v14, 1  ;;  %v483_v18 = vrot.slane %v323_v12, 3  ;;  %v623_v21 = vrot.slane %v323_v12, 5 }
  0xdb   : > { %v1583_v19 = vpop.f32.mrf.mxu1  ;;  %v325_v20 = vpop.f32.mrf.mxu0  ;;  %v763_v22 = vrot.slane %v323_v12, 7  ;;  %v404_v35 = vrot.slane %v396_v14, 2 }
  0xdc   : > { %v1906_v23 = vsel %vm1900_vm2, %v323_v12, %v336_v16  ;;  %v326_v24 = vadd.f32 %v1509_v9, %v325_v20  ;;  %v1910_v25 = vsel %vm1900_vm2, %v323_v12, %v483_v18  ;;  %v1915_v29 = vsel %vm1900_vm2, %v323_v12, %v623_v21 }
  0xdd   : > { %v407_v26 = vadd.f32 %v403_v17, %v1906_v23  ;;  %v399_v27 = vpop.f32.mrf.mxu1  ;;  %v1576_v28 = vpop.f32.mrf.mxu0  ;;  %v1919_v30 = vsel %vm1900_vm2, %v323_v12, %v763_v22 }
  0xde   : > { %v337_v31 = vrot.slane %v326_v24, 1  ;;  %v484_v32 = vrot.slane %v326_v24, 3  ;;  %v624_v33 = vrot.slane %v326_v24, 5  ;;  %v764_v34 = vrot.slane %v326_v24, 7 }
  0xdf   : > { %1661 = vtanh.f32 %v407_v26  ;;  %v1584_v36 = vpop.f32.mrf.mxu1  ;;  %v1515_v44 = vmul.f32 -1.442695, %v407_v26 }
  0xe0   : > { %v1923_v37 = vsel %vm1900_vm2, %v326_v24, %v337_v31  ;;  %v1927_v38 = vsel %vm1900_vm2, %v326_v24, %v484_v32  ;;  %v1931_v39 = vsel %vm1900_vm2, %v326_v24, %v624_v33  ;;  %v1935_v40 = vsel %vm1900_vm2, %v326_v24, %v764_v34 }
  0xe1   : > { %v408_v41 = vadd.f32 %v404_v35, %v1923_v37 }
  0xe3   : > { %1663 = vtanh.f32 %v408_v41  ;;  %v1516_v45 = vmul.f32 -1.442695, %v408_v41 }
  0xe4   : > { %1665 = vpow2.f32 %v1515_v44 }
  0xe5   : > { %1667 = vpow2.f32 %v1516_v45 }
  0xec   : > { %v1662_v42 = vpop.eup %1661 }
  0xed   : > { %427 = vrot.lane.b32.xlu0 %v1662_v42, %s1801_s11 }
  0xf0   : > { %v1664_v43 = vpop.eup %1663 }
  0xf1   : > { %429 = vrot.lane.b32.xlu0 %v1664_v43, %s1801_s11  ;;  %v1666_v46 = vpop.eup %1665 }
  0xf2   : > { %v415_v47 = vadd.f32 1.0, %v1666_v46  ;;  %v1668_v48 = vpop.eup %1667 }
  0xf3   : > { %v416_v49 = vadd.f32 1.0, %v1668_v48 }
  0xf4   : > { %1669 = vrcp.f32 %v415_v47 }
  0xf5   : > { %1671 = vrcp.f32 %v416_v49 }
 0x101   : > { %v1670_v50 = vpop.eup %1669 }
 0x102   : > { %v1672_v53 = vpop.eup %1671  ;;  %v423_v56 = vmul.f32 0.0, %v1670_v50 }
 0x103   : > { %v424_v59 = vmul.f32 0.0, %v1672_v53 }
 0x15f   : > { %v428_v51 = vpop.permute.xlu0 %427 }
 0x160   : > { %v433_v52 = vmul.f32 %v1670_v50, %v428_v51 }
 0x162   : > { %437 = vrot.lane.b32.xlu1 %v433_v52, %s1801_s11 }
 0x163   : > { %v430_v54 = vpop.permute.xlu0 %429 }
 0x164   : > { %v434_v55 = vmul.f32 %v1672_v53, %v430_v54 }
 0x166   : > { %439 = vrot.lane.b32.xlu1 %v434_v55, %s1801_s11 }
 0x1d4   : > { %v438_v57 = vpop.permute.xlu1 %437 }
 0x1d5   : > { %v443_v58 = vadd.f32 %v438_v57, %v423_v56 }
 0x1d7   : > { %1673 = vtanh.f32 %v443_v58  ;;  %v466_v62 = vrot.slane %v443_v58, 7 }
 0x1d8   : > { %v440_v60 = vpop.permute.xlu1 %439 }
 0x1d9   : > { %v444_v61 = vadd.f32 %v440_v60, %v424_v59 }
 0x1db   : > { %1675 = vtanh.f32 %v444_v61  ;;  %v467_v63 = vrot.slane %v444_v61, 6 }
 0x1dd   : > { %v469_v2 = vsel %vm468_vm3, %v467_v63, %v466_v62  ;;  %v598_v63 = vstv %s489_s17 }
 0x1de   : > { %vm599_vm6 = vcmp.lt.s32.totalorder %v598_v63, %v1948_v3 }
 0x1e4   : > { %v1674_v6 = vpop.eup %1673 }
 0x1e5   : > { %449 = vrot.lane.b32.xlu0 %v1674_v6, %s1801_s11  ;;  %v600_v6 = vsel %vm599_vm6, 1, %v1800_v1 }
 0x1e8   : > { %v1676_v9 = vpop.eup %1675 }
 0x1e9   : > { %451 = vrot.lane.b32.xlu1 %v1676_v9, %s1801_s11  ;;  %461 = vperm.xlu0 %1655, %v459_v8  }
 0x257   : > { %v450_v10 = vpop.permute.xlu0 %449 }
 0x258   : > { %v455_v11 = vmul.f32 %v1670_v50, %v450_v10 }
 0x25a   : > { %v476_v14 = vrot.slane %v455_v11, 7 }
 0x25b   : > { %v452_v12 = vpop.permute.xlu1 %451 }
 0x25c   : > { %v456_v13 = vmul.f32 %v1672_v53, %v452_v12 }
 0x25e   : > { %v477_v15 = vrot.slane %v456_v13, 6 }
 0x260   : > { %v478_v16 = vsel %vm468_vm3, %v477_v15, %v476_v14 }
 0x261   : > { %479 = vrot.lane.b32.xlu1 %v478_v16, %s1802_s15 }
 0x264   : > { %v462_v17 = vpop.permute.xlu0 %461 }
 0x265   : > { %470 = vrot.lane.b32.xlu1 %v469_v2, %s1803_s16  ;;  %vm463_vm5 = vcmp.eq.s32.totalorder %v462_v17, 1 }
 0x2d3   : > { %v480_v18 = vpop.permute.xlu1 %479 }
 0x2d4   : > { %v1958_v19 = vsel %vm463_vm5, %v480_v18, 0.0 }
 0x2d5   : > { %v490_v20 = vpack.c.bf16 %v1958_v19, %v1958_v19 }
 0x2d7   : > { %1590 = vmatmul.mubr.msk.bf16.vlgmr.msra.gmra.mxu0 %vm284_vm1, %v490_v20  ;;  %v471_v33 = vpop.permute.xlu1 %470 }
 0x2d8   : > { %1602 = vmatpush3.bf16.msra.mxu0 %v1866_v4  ;;  %1605 = vmatprep.mubr.msk.bf16.mxu0 %vm1799_vm0, %v1798_v0  ;;  %v1972_v35 = vsel %vm463_vm5, %v471_v33, 0.0 }
 0x2d9   : > { %1603 = vmatprep.subr.bf16.mxu0 %v1798_v0  ;;  %v556_v41 = vrot.slane %v1972_v35, 2  ;;  %v557_v42 = vrot.slane %v1972_v35, 3 }
 0x2dc   : > { %1604 = vmatpush3.bf16.msra.mxu0 %v1872_v7 }
 0x2dd   : > { %1617 = vmatprep.subr.bf16.mxu0 %v1798_v0 }
 0x397   : > { %v528_v21 = vpop.f32.mrf.mxu0 }
 0x398   : > { %v535_v22 = vrot.slane %v528_v21, 2  ;;  %v536_v24 = vrot.slane %v528_v21, 3 }
 0x399   : > { %v1591_v26 = vpop.f32.mrf.mxu0 }
 0x39a   : > { %v539_v27 = vadd.f32 %v535_v22, %v1910_v25  ;;  %v540_v28 = vadd.f32 %v536_v24, %v1927_v38 }
 0x39b   : > { %v531_v31 = vpop.f32.mrf.mxu0 }
 0x39c   : > { %1677 = vtanh.f32 %v539_v27  ;;  %v1518_v43 = vmul.f32 -1.442695, %v539_v27  ;;  %v1519_v44 = vmul.f32 -1.442695, %v540_v28 }
 0x39d   : > { %1679 = vtanh.f32 %v540_v28  ;;  %v1592_v32 = vpop.f32.mrf.mxu0 }
 0x39e   : > { %1681 = vpow2.f32 %v1518_v43 }
 0x39f   : > { %1683 = vpow2.f32 %v1519_v44 }
 0x3a9   : > { %v1678_v34 = vpop.eup %1677 }
 0x3aa   : > { %v1680_v36 = vpop.eup %1679  ;;  %568 = vrot.lane.b32.xlu0 %v1678_v34, %s1801_s11 }
 0x3ab   : > { %570 = vrot.lane.b32.xlu1 %v1680_v36, %s1801_s11  ;;  %v1682_v45 = vpop.eup %1681 }
 0x3ac   : > { %v1684_v46 = vpop.eup %1683  ;;  %v547_v47 = vadd.f32 1.0, %v1682_v45 }
 0x3ad   : > { %v548_v48 = vadd.f32 1.0, %v1684_v46 }
 0x3ae   : > { %558 = vrot.lane.b32.xlu0 %v556_v41, %s1801_s11  ;;  %1685 = vrcp.f32 %v547_v47 }
 0x3af   : > { %560 = vrot.lane.b32.xlu1 %v557_v42, %s1801_s11  ;;  %1687 = vrcp.f32 %v548_v48 }
 0x3bb   : > { %v1686_v49 = vpop.eup %1685 }
 0x3bc   : > { %v1688_v51 = vpop.eup %1687 }
 0x41c   : > { %v569_v50 = vpop.permute.xlu0 %568 }
 0x41d   : > { %v571_v52 = vpop.permute.xlu1 %570  ;;  %v574_v53 = vmul.f32 %v1686_v49, %v569_v50 }
 0x41e   : > { %v575_v54 = vmul.f32 %v1688_v51, %v571_v52 }
 0x41f   : > { %578 = vrot.lane.b32.xlu0 %v574_v53, %s1801_s11 }
 0x420   : > { %580 = vrot.lane.b32.xlu1 %v575_v54, %s1801_s11  ;;  %v559_v55 = vpop.permute.xlu0 %558 }
 0x421   : > { %v561_v56 = vpop.permute.xlu1 %560  ;;  %v564_v57 = vmul.f32 %v1686_v49, %v559_v55 }
 0x422   : > { %v565_v58 = vmul.f32 %v1688_v51, %v561_v56 }
 0x491   : > { %v579_v59 = vpop.permute.xlu0 %578 }
 0x492   : > { %v581_v60 = vpop.permute.xlu1 %580  ;;  %v584_v61 = vadd.f32 %v579_v59, %v564_v57 }
 0x493   : > { %v585_v62 = vadd.f32 %v581_v60, %v565_v58 }
 0x494   : > { %1689 = vtanh.f32 %v584_v61  ;;  %v607_v9 = vrot.slane %v584_v61, 6 }
 0x495   : > { %1691 = vtanh.f32 %v585_v62  ;;  %v608_v8 = vrot.slane %v585_v62, 5 }
 0x497   : > { %v609_v10 = vsel %vm468_vm3, %v608_v8, %v607_v9 }
 0x4a1   : > { %v1690_v2 = vpop.eup %1689 }
 0x4a2   : > { %v1692_v5 = vpop.eup %1691  ;;  %590 = vrot.lane.b32.xlu0 %v1690_v2, %s1801_s11  ;;  %v738_v2 = vstv %s629_s21 }
 0x4a3   : > { %592 = vrot.lane.b32.xlu1 %v1692_v5, %s1801_s11  ;;  %vm739_vm8 = vcmp.lt.s32.totalorder %v738_v2, %v1948_v3 }
 0x4a4   : > { %v740_v8 = vsel %vm739_vm8, 1, %v1800_v1 }
 0x4a6   : > { %602 = vperm.xlu0 %1655, %v600_v6  }
 0x4aa   : > { %610 = vrot.lane.b32.xlu0 %v609_v10, %s1803_s16 }
 0x514   : > { %v591_v11 = vpop.permute.xlu0 %590 }
 0x515   : > { %v593_v12 = vpop.permute.xlu1 %592  ;;  %v596_v13 = vmul.f32 %v1686_v49, %v591_v11 }
 0x516   : > { %v597_v14 = vmul.f32 %v1688_v51, %v593_v12 }
 0x517   : > { %v616_v15 = vrot.slane %v596_v13, 6 }
 0x518   : > { %v617_v16 = vrot.slane %v597_v14, 5 }
 0x51a   : > { %v618_v17 = vsel %vm468_vm3, %v617_v16, %v616_v15 }
 0x51b   : > { %619 = vrot.lane.b32.xlu1 %v618_v17, %s1802_s15 }
 0x521   : > { %v603_v18 = vpop.permute.xlu0 %602 }
 0x522   : > { %vm604_vm7 = vcmp.eq.s32.totalorder %v603_v18, 1 }
 0x525   : > { %v611_v34 = vpop.permute.xlu0 %610 }
 0x526   : > { %v2009_v41 = vsel %vm604_vm7, %v611_v34, %v1972_v35 }
 0x527   : > { %v696_v43 = vrot.slane %v2009_v41, 3  ;;  %v697_v44 = vrot.slane %v2009_v41, 4 }
 0x58d   : > { %v620_v20 = vpop.permute.xlu1 %619 }
 0x58e   : > { %v1994_v21 = vsel %vm604_vm7, %v620_v20, %v1958_v19 }
 0x58f   : > { %v630_v22 = vpack.c.bf16 %v1994_v21, %v1994_v21 }
 0x591   : > { %1598 = vmatmul.mubr.msk.bf16.vlgmr.msra.gmra.mxu1 %vm284_vm1, %v630_v22 }
 0x592   : > { %1610 = vmatpush3.bf16.msra.mxu1 %v1866_v4  ;;  %1613 = vmatprep.mubr.msk.bf16.mxu1 %vm1799_vm0, %v1798_v0 }
 0x593   : > { %1611 = vmatprep.subr.bf16.mxu1 %v1798_v0 }
 0x596   : > { %1612 = vmatpush3.bf16.msra.mxu1 %v1872_v7 }
 0x597   : > { %1625 = vmatprep.subr.bf16.mxu1 %v1798_v0 }
 0x651   : > { %v668_v24 = vpop.f32.mrf.mxu1 }
 0x652   : > { %v675_v26 = vrot.slane %v668_v24, 3  ;;  %v676_v19 = vrot.slane %v668_v24, 4 }
 0x653   : > { %v1599_v27 = vpop.f32.mrf.mxu1 }
 0x654   : > { %v679_v28 = vadd.f32 %v675_v26, %v1915_v29  ;;  %v680_v31 = vadd.f32 %v676_v19, %v1931_v39 }
 0x655   : > { %v671_v32 = vpop.f32.mrf.mxu1 }
 0x656   : > { %1693 = vtanh.f32 %v679_v28  ;;  %v1521_v45 = vmul.f32 -1.442695, %v679_v28  ;;  %v1522_v46 = vmul.f32 -1.442695, %v680_v31 }
 0x657   : > { %1695 = vtanh.f32 %v680_v31  ;;  %v1600_v33 = vpop.f32.mrf.mxu1 }
 0x658   : > { %1697 = vpow2.f32 %v1521_v45 }
 0x659   : > { %1699 = vpow2.f32 %v1522_v46 }
 0x663   : > { %v1694_v36 = vpop.eup %1693 }
 0x664   : > { %v1696_v42 = vpop.eup %1695  ;;  %708 = vrot.lane.b32.xlu1 %v1694_v36, %s1801_s11 }
 0x665   : > { %710 = vrot.lane.b32.xlu0 %v1696_v42, %s1801_s11  ;;  %v1698_v47 = vpop.eup %1697 }
 0x666   : > { %v1700_v35 = vpop.eup %1699  ;;  %v687_v48 = vadd.f32 1.0, %v1698_v47 }
 0x667   : > { %v688_v49 = vadd.f32 1.0, %v1700_v35 }
 0x668   : > { %698 = vrot.lane.b32.xlu1 %v696_v43, %s1801_s11  ;;  %1701 = vrcp.f32 %v687_v48 }
 0x669   : > { %700 = vrot.lane.b32.xlu0 %v697_v44, %s1801_s11  ;;  %1703 = vrcp.f32 %v688_v49 }
 0x675   : > { %v1702_v50 = vpop.eup %1701 }
 0x676   : > { %v1704_v52 = vpop.eup %1703 }
 0x6d6   : > { %v709_v51 = vpop.permute.xlu1 %708 }
 0x6d7   : > { %v714_v53 = vmul.f32 %v1702_v50, %v709_v51  ;;  %v711_v54 = vpop.permute.xlu0 %710 }
 0x6d8   : > { %v715_v55 = vmul.f32 %v1704_v52, %v711_v54 }
 0x6d9   : > { %718 = vrot.lane.b32.xlu1 %v714_v53, %s1801_s11 }
 0x6da   : > { %720 = vrot.lane.b32.xlu0 %v715_v55, %s1801_s11  ;;  %v699_v56 = vpop.permute.xlu1 %698 }
 0x6db   : > { %v701_v57 = vpop.permute.xlu0 %700  ;;  %v704_v58 = vmul.f32 %v1702_v50, %v699_v56 }
 0x6dc   : > { %v705_v59 = vmul.f32 %v1704_v52, %v701_v57 }
 0x74b   : > { %v719_v60 = vpop.permute.xlu1 %718 }
 0x74c   : > { %v724_v61 = vadd.f32 %v719_v60, %v704_v58  ;;  %v721_v62 = vpop.permute.xlu0 %720 }
 0x74d   : > { %v725_v63 = vadd.f32 %v721_v62, %v705_v59 }
 0x74e   : > { %1705 = vtanh.f32 %v724_v61  ;;  %v747_v9 = vrot.slane %v724_v61, 5 }
 0x74f   : > { %1707 = vtanh.f32 %v725_v63  ;;  %v748_v10 = vrot.slane %v725_v63, 4 }
 0x751   : > { %v749_v11 = vsel %vm468_vm3, %v748_v10, %v747_v9 }
 0x75b   : > { %v1706_v5 = vpop.eup %1705 }
 0x75c   : > { %v1708_v6 = vpop.eup %1707  ;;  %730 = vrot.lane.b32.xlu1 %v1706_v5, %s1801_s11  ;;  %v878_v5 = vstv %s769_s22 }
 0x75d   : > { %732 = vrot.lane.b32.xlu0 %v1708_v6, %s1801_s11  ;;  %vm879_vm10 = vcmp.lt.s32.totalorder %v878_v5, %v1948_v3 }
 0x75e   : > { %v880_v9 = vsel %vm879_vm10, 1, %v1800_v1 }
 0x760   : > { %742 = vperm.xlu1 %1656, %v740_v8  }
 0x764   : > { %750 = vrot.lane.b32.xlu1 %v749_v11, %s1803_s16 }
 0x7ce   : > { %v731_v12 = vpop.permute.xlu1 %730 }
 0x7cf   : > { %v736_v13 = vmul.f32 %v1702_v50, %v731_v12  ;;  %v733_v14 = vpop.permute.xlu0 %732 }
 0x7d0   : > { %v737_v15 = vmul.f32 %v1704_v52, %v733_v14 }
 0x7d1   : > { %v756_v16 = vrot.slane %v736_v13, 5 }
 0x7d2   : > { %v757_v17 = vrot.slane %v737_v15, 4 }
 0x7d4   : > { %v758_v18 = vsel %vm468_vm3, %v757_v17, %v756_v16 }
 0x7d5   : > { %759 = vrot.lane.b32.xlu0 %v758_v18, %s1802_s15 }
 0x7db   : > { %v743_v20 = vpop.permute.xlu1 %742 }
 0x7dc   : > { %vm744_vm9 = vcmp.eq.s32.totalorder %v743_v20, 1 }
 0x7df   : > { %v751_v36 = vpop.permute.xlu1 %750 }
 0x7e0   : > { %v2046_v43 = vsel %vm744_vm9, %v751_v36, %v2009_v41 }
 0x7e1   : > { %v836_v45 = vrot.slane %v2046_v43, 4  ;;  %v837_v46 = vrot.slane %v2046_v43, 5 }
 0x847   : > { %v760_v22 = vpop.permute.xlu0 %759 }
 0x848   : > { %v2031_v24 = vsel %vm744_vm9, %v760_v22, %v1994_v21 }
 0x849   : > { %v770_v26 = vpack.c.bf16 %v2031_v24, %v2031_v24 }
 0x84b   : > { %1606 = vmatmul.mubr.msk.bf16.vlgmr.msra.gmra.mxu0 %vm284_vm1, %v770_v26 }
 0x84c   : > { %1618 = vmatpush3.bf16.msra.mxu0 %v1866_v4  ;;  %1621 = vmatprep.mubr.msk.bf16.mxu0 %vm1799_vm0, %v1798_v0 }
 0x84d   : > { %1619 = vmatprep.subr.bf16.mxu0 %v1798_v0 }
 0x850   : > { %1620 = vmatpush3.bf16.msra.mxu0 %v1872_v7 }
 0x851   : > { %1633 = vmatprep.subr.bf16.mxu0 %v1798_v0 }
 0x90b   : > { %v808_v19 = vpop.f32.mrf.mxu0 }
 0x90c   : > { %v815_v27 = vrot.slane %v808_v19, 4  ;;  %v816_v21 = vrot.slane %v808_v19, 5 }
 0x90d   : > { %v1607_v28 = vpop.f32.mrf.mxu0 }
 0x90e   : > { %v819_v31 = vadd.f32 %v815_v27, %v1919_v30  ;;  %v820_v32 = vadd.f32 %v816_v21, %v1935_v40 }
 0x90f   : > { %v811_v33 = vpop.f32.mrf.mxu0 }
 0x910   : > { %1709 = vtanh.f32 %v819_v31  ;;  %v1524_v47 = vmul.f32 -1.442695, %v819_v31  ;;  %v1525_v35 = vmul.f32 -1.442695, %v820_v32 }
 0x911   : > { %1711 = vtanh.f32 %v820_v32  ;;  %v1608_v34 = vpop.f32.mrf.mxu0 }
 0x912   : > { %1713 = vpow2.f32 %v1524_v47 }
 0x913   : > { %1715 = vpow2.f32 %v1525_v35 }
 0x91d   : > { %v1710_v42 = vpop.eup %1709 }
 0x91e   : > { %v1712_v44 = vpop.eup %1711  ;;  %848 = vrot.lane.b32.xlu0 %v1710_v42, %s1801_s11 }
 0x91f   : > { %850 = vrot.lane.b32.xlu1 %v1712_v44, %s1801_s11  ;;  %v1714_v48 = vpop.eup %1713 }
 0x920   : > { %v1716_v41 = vpop.eup %1715  ;;  %v827_v49 = vadd.f32 1.0, %v1714_v48 }
 0x921   : > { %v828_v50 = vadd.f32 1.0, %v1716_v41 }
 0x922   : > { %838 = vrot.lane.b32.xlu0 %v836_v45, %s1801_s11  ;;  %1717 = vrcp.f32 %v827_v49 }
 0x923   : > { %840 = vrot.lane.b32.xlu1 %v837_v46, %s1801_s11  ;;  %1719 = vrcp.f32 %v828_v50 }
 0x92f   : > { %v1718_v51 = vpop.eup %1717 }
 0x930   : > { %v1720_v53 = vpop.eup %1719 }
 0x990   : > { %v849_v52 = vpop.permute.xlu0 %848 }
 0x991   : > { %v851_v54 = vpop.permute.xlu1 %850  ;;  %v854_v55 = vmul.f32 %v1718_v51, %v849_v52 }
 0x992   : > { %v855_v56 = vmul.f32 %v1720_v53, %v851_v54 }
 0x993   : > { %858 = vrot.lane.b32.xlu0 %v854_v55, %s1801_s11 }
 0x994   : > { %860 = vrot.lane.b32.xlu1 %v855_v56, %s1801_s11  ;;  %v839_v57 = vpop.permute.xlu0 %838 }
 0x995   : > { %v841_v58 = vpop.permute.xlu1 %840  ;;  %v844_v59 = vmul.f32 %v1718_v51, %v839_v57 }
 0x996   : > { %v845_v60 = vmul.f32 %v1720_v53, %v841_v58 }
 0xa05   : > { %v859_v61 = vpop.permute.xlu0 %858 }
 0xa06   : > { %v861_v62 = vpop.permute.xlu1 %860  ;;  %v864_v63 = vadd.f32 %v859_v61, %v844_v59 }
 0xa07   : > { %v865_v2 = vadd.f32 %v861_v62, %v845_v60 }
 0xa08   : > { %1721 = vtanh.f32 %v864_v63  ;;  %v887_v11 = vrot.slane %v864_v63, 4 }
 0xa09   : > { %1723 = vtanh.f32 %v865_v2  ;;  %v888_v10 = vrot.slane %v865_v2, 3  ;;  %v1012_v2 = vstv %s903_s23 }
 0xa0a   : > { %vm1013_vm12 = vcmp.lt.s32.totalorder %v1012_v2, %v1948_v3 }
 0xa0b   : > { %v889_v12 = vsel %vm468_vm3, %v888_v10, %v887_v11 }
 0xa15   : > { %v1722_v6 = vpop.eup %1721 }
 0xa16   : > { %v1724_v8 = vpop.eup %1723  ;;  %870 = vrot.lane.b32.xlu0 %v1722_v6, %s1801_s11 }
 0xa17   : > { %872 = vrot.lane.b32.xlu1 %v1724_v8, %s1801_s11  ;;  %v1014_v8 = vsel %vm1013_vm12, 1, %v1800_v1 }
 0xa1a   : > { %882 = vperm.xlu0 %1655, %v880_v9  }
 0xa1e   : > { %890 = vrot.lane.b32.xlu0 %v889_v12, %s1803_s16 }
 0xa88   : > { %v871_v13 = vpop.permute.xlu0 %870 }
 0xa89   : > { %v873_v14 = vpop.permute.xlu1 %872  ;;  %v876_v15 = vmul.f32 %v1718_v51, %v871_v13 }
 0xa8a   : > { %v877_v16 = vmul.f32 %v1720_v53, %v873_v14 }
 0xa8b   : > { %v896_v17 = vrot.slane %v876_v15, 4 }
 0xa8c   : > { %v897_v18 = vrot.slane %v877_v16, 3 }
 0xa8e   : > { %v898_v20 = vsel %vm468_vm3, %v897_v18, %v896_v17 }
 0xa8f   : > { %899 = vrot.lane.b32.xlu1 %v898_v20, %s1802_s15 }
 0xa95   : > { %v883_v22 = vpop.permute.xlu0 %882 }
 0xa96   : > { %vm884_vm11 = vcmp.eq.s32.totalorder %v883_v22, 1 }
 0xa99   : > { %v891_v42 = vpop.permute.xlu0 %890 }
 0xa9a   : > { %v2082_v45 = vsel %vm884_vm11, %v891_v42, %v2046_v43 }
 0xa9b   : > { %v970_v47 = vrot.slane %v2082_v45, 5 }
 0xb01   : > { %v900_v26 = vpop.permute.xlu1 %899 }
 0xb02   : > { %v2068_v19 = vsel %vm884_vm11, %v900_v26, %v2031_v24 }
 0xb03   : > { %v904_v27 = vpack.c.bf16 %v2068_v19, %v2068_v19 }
 0xb05   : > { %1614 = vmatmul.mubr.msk.bf16.vlgmr.msra.gmra.mxu1 %vm284_vm1, %v904_v27 }
 0xb06   : > { %1626 = vmatpush3.bf16.msra.mxu1 %v1866_v4  ;;  %1629 = vmatprep.mubr.msk.bf16.mxu1 %vm1799_vm0, %v1798_v0 }
 0xb07   : > { %1627 = vmatprep.subr.bf16.mxu1 %v1798_v0 }
 0xb0a   : > { %1628 = vmatpush3.bf16.msra.mxu1 %v1872_v7 }
 0xbc5   : > { %v942_v21 = vpop.f32.mrf.mxu1 }
 0xbc6   : > { %v949_v28 = vrot.slane %v942_v21, 5  ;;  %v950_v31 = vrot.slane %v942_v21, 6 }
 0xbc7   : > { %v1615_v32 = vpop.f32.mrf.mxu1 }
 0xbc8   : > { %v953_v24 = vadd.f32 %v949_v28, %v1906_v23  ;;  %v954_v33 = vadd.f32 %v950_v31, %v1923_v37  ;;  %v971_v23 = vrot.slane %v2082_v45, 6 }
 0xbc9   : > { %v945_v34 = vpop.f32.mrf.mxu1 }
 0xbca   : > { %1725 = vtanh.f32 %v953_v24  ;;  %v1527_v37 = vmul.f32 -1.442695, %v953_v24  ;;  %v1528_v35 = vmul.f32 -1.442695, %v954_v33 }
 0xbcb   : > { %1727 = vtanh.f32 %v954_v33  ;;  %v1616_v36 = vpop.f32.mrf.mxu1 }
 0xbcc   : > { %1729 = vpow2.f32 %v1527_v37 }
 0xbcd   : > { %1731 = vpow2.f32 %v1528_v35 }
 0xbd7   : > { %v1726_v44 = vpop.eup %1725 }
 0xbd8   : > { %v1728_v46 = vpop.eup %1727  ;;  %982 = vrot.lane.b32.xlu1 %v1726_v44, %s1801_s11 }
 0xbd9   : > { %984 = vrot.lane.b32.xlu0 %v1728_v46, %s1801_s11  ;;  %v1730_v48 = vpop.eup %1729 }
 0xbda   : > { %v1732_v43 = vpop.eup %1731  ;;  %v961_v41 = vadd.f32 1.0, %v1730_v48 }
 0xbdb   : > { %v962_v49 = vadd.f32 1.0, %v1732_v43 }
 0xbdc   : > { %972 = vrot.lane.b32.xlu1 %v970_v47, %s1801_s11  ;;  %1733 = vrcp.f32 %v961_v41 }
 0xbdd   : > { %974 = vrot.lane.b32.xlu0 %v971_v23, %s1801_s11  ;;  %1735 = vrcp.f32 %v962_v49 }
 0xbe9   : > { %v1734_v50 = vpop.eup %1733 }
 0xbea   : > { %v1736_v52 = vpop.eup %1735 }
 0xc4a   : > { %v983_v51 = vpop.permute.xlu1 %982 }
 0xc4b   : > { %v988_v53 = vmul.f32 %v1734_v50, %v983_v51  ;;  %v985_v54 = vpop.permute.xlu0 %984 }
 0xc4c   : > { %v989_v55 = vmul.f32 %v1736_v52, %v985_v54 }
 0xc4d   : > { %992 = vrot.lane.b32.xlu1 %v988_v53, %s1801_s11 }
 0xc4e   : > { %994 = vrot.lane.b32.xlu0 %v989_v55, %s1801_s11  ;;  %v973_v56 = vpop.permute.xlu1 %972 }
 0xc4f   : > { %v975_v57 = vpop.permute.xlu0 %974  ;;  %v978_v58 = vmul.f32 %v1734_v50, %v973_v56 }
 0xc50   : > { %v979_v59 = vmul.f32 %v1736_v52, %v975_v57 }
 0xcbf   : > { %v993_v60 = vpop.permute.xlu1 %992 }
 0xcc0   : > { %v998_v61 = vadd.f32 %v993_v60, %v978_v58  ;;  %v995_v62 = vpop.permute.xlu0 %994  ;;  %v1146_v58 = vstv %s1037_s24 }
 0xcc1   : > { %v999_v63 = vadd.f32 %v995_v62, %v979_v59  ;;  %vm1147_vm14 = vcmp.lt.s32.totalorder %v1146_v58, %v1948_v3 }
 0xcc2   : > { %1737 = vtanh.f32 %v998_v61  ;;  %v1021_v9 = vrot.slane %v998_v61, 3  ;;  %v1148_v61 = vsel %vm1147_vm14, 1, %v1800_v1 }
 0xcc3   : > { %1739 = vtanh.f32 %v999_v63  ;;  %v1022_v10 = vrot.slane %v999_v63, 2 }
 0xcc5   : > { %v1023_v11 = vsel %vm468_vm3, %v1022_v10, %v1021_v9 }
 0xccf   : > { %v1738_v5 = vpop.eup %1737 }
 0xcd0   : > { %v1740_v6 = vpop.eup %1739  ;;  %1004 = vrot.lane.b32.xlu1 %v1738_v5, %s1801_s11 }
 0xcd1   : > { %1006 = vrot.lane.b32.xlu0 %v1740_v6, %s1801_s11 }
 0xcd4   : > { %1016 = vperm.xlu1 %1656, %v1014_v8  }
 0xcd8   : > { %1024 = vrot.lane.b32.xlu1 %v1023_v11, %s1803_s16 }
 0xd42   : > { %v1005_v12 = vpop.permute.xlu1 %1004 }
 0xd43   : > { %v1010_v13 = vmul.f32 %v1734_v50, %v1005_v12  ;;  %v1007_v14 = vpop.permute.xlu0 %1006 }
 0xd44   : > { %v1011_v15 = vmul.f32 %v1736_v52, %v1007_v14 }
 0xd45   : > { %v1030_v16 = vrot.slane %v1010_v13, 3 }
 0xd46   : > { %v1031_v17 = vrot.slane %v1011_v15, 2 }
 0xd48   : > { %v1032_v18 = vsel %vm468_vm3, %v1031_v17, %v1030_v16 }
 0xd49   : > { %1033 = vrot.lane.b32.xlu0 %v1032_v18, %s1802_s15 }
 0xd4f   : > { %v1017_v20 = vpop.permute.xlu1 %1016 }
 0xd50   : > { %vm1018_vm13 = vcmp.eq.s32.totalorder %v1017_v20, 1 }
 0xdbb   : > { %v1034_v22 = vpop.permute.xlu0 %1033 }
 0xdbc   : > { %v2104_v26 = vsel %vm1018_vm13, %v1034_v22, %v2068_v19 }
 0xdbd   : > { %v1038_v27 = vpack.c.bf16 %v2104_v26, %v2104_v26 }
 0xdbf   : > { %1622 = vmatmul.mubr.msk.bf16.vlgmr.msra.gmra.mxu0 %vm284_vm1, %v1038_v27 }
 0xdc0   : > { %1634 = vmatpush3.bf16.msra.mxu0 %v1866_v4  ;;  %1637 = vmatprep.mubr.msk.bf16.mxu0 %vm1799_vm0, %v1798_v0  ;;  %v1025_v4 = vpop.permute.xlu1 %1024 }
 0xdc1   : > { %1635 = vmatprep.subr.bf16.mxu0 %v1798_v0  ;;  %v2118_v42 = vsel %vm1018_vm13, %v1025_v4, %v2082_v45 }
 0xdc4   : > { %1636 = vmatpush3.bf16.msra.mxu0 %v1872_v7  ;;  %v1104_v7 = vrot.slane %v2118_v42, 6 }
 0xe7f   : > { %v1076_v21 = vpop.f32.mrf.mxu0 }
 0xe80   : > { %v1083_v28 = vrot.slane %v1076_v21, 6  ;;  %v1084_v31 = vrot.slane %v1076_v21, 7 }
 0xe81   : > { %v1623_v32 = vpop.f32.mrf.mxu0 }
 0xe82   : > { %v1087_v19 = vadd.f32 %v1083_v28, %v1910_v25  ;;  %v1088_v24 = vadd.f32 %v1084_v31, %v1927_v38  ;;  %v1105_v25 = vrot.slane %v2118_v42, 7 }
 0xe83   : > { %v1079_v33 = vpop.f32.mrf.mxu0 }
 0xe84   : > { %1741 = vtanh.f32 %v1087_v19  ;;  %v1530_v38 = vmul.f32 -1.442695, %v1087_v19  ;;  %v1531_v44 = vmul.f32 -1.442695, %v1088_v24 }
 0xe85   : > { %1743 = vtanh.f32 %v1088_v24  ;;  %v1624_v34 = vpop.f32.mrf.mxu0 }
 0xe86   : > { %1745 = vpow2.f32 %v1530_v38 }
 0xe87   : > { %1747 = vpow2.f32 %v1531_v44 }
 0xe91   : > { %v1742_v36 = vpop.eup %1741 }
 0xe92   : > { %v1744_v0 = vpop.eup %1743  ;;  %1116 = vrot.lane.b32.xlu0 %v1742_v36, %s1801_s11 }
 0xe93   : > { %1118 = vrot.lane.b32.xlu1 %v1744_v0, %s1801_s11  ;;  %v1746_v46 = vpop.eup %1745 }
 0xe94   : > { %v1748_v45 = vpop.eup %1747  ;;  %v1095_v47 = vadd.f32 1.0, %v1746_v46 }
 0xe95   : > { %v1096_v23 = vadd.f32 1.0, %v1748_v45 }
 0xe96   : > { %1106 = vrot.lane.b32.xlu0 %v1104_v7, %s1801_s11  ;;  %1749 = vrcp.f32 %v1095_v47 }
 0xe97   : > { %1108 = vrot.lane.b32.xlu1 %v1105_v25, %s1801_s11  ;;  %1751 = vrcp.f32 %v1096_v23 }
 0xea3   : > { %v1750_v37 = vpop.eup %1749 }
 0xea4   : > { %v1752_v48 = vpop.eup %1751 }
 0xf04   : > { %v1117_v35 = vpop.permute.xlu0 %1116 }
 0xf05   : > { %v1119_v43 = vpop.permute.xlu1 %1118  ;;  %v1122_v41 = vmul.f32 %v1750_v37, %v1117_v35 }
 0xf06   : > { %v1123_v49 = vmul.f32 %v1752_v48, %v1119_v43 }
 0xf07   : > { %1126 = vrot.lane.b32.xlu0 %v1122_v41, %s1801_s11  ;;  %v1278_v41 = vstv %s1171_s25 }
 0xf08   : > { %1128 = vrot.lane.b32.xlu1 %v1123_v49, %s1801_s11  ;;  %v1107_v50 = vpop.permute.xlu0 %1106  ;;  %vm1279_vm0 = vcmp.lt.s32.totalorder %v1278_v41, %v1948_v3 }
 0xf09   : > { %v1109_v51 = vpop.permute.xlu1 %1108  ;;  %v1112_v52 = vmul.f32 %v1750_v37, %v1107_v50 }
 0xf0a   : > { %v1113_v53 = vmul.f32 %v1752_v48, %v1109_v51  ;;  %v1280_v51 = vsel %vm1279_vm0, 1, %v1800_v1 }
 0xf79   : > { %v1127_v54 = vpop.permute.xlu0 %1126 }
 0xf7a   : > { %v1129_v55 = vpop.permute.xlu1 %1128  ;;  %v1132_v56 = vadd.f32 %v1127_v54, %v1112_v52 }
 0xf7b   : > { %v1133_v57 = vadd.f32 %v1129_v55, %v1113_v53 }
 0xf7c   : > { %1753 = vtanh.f32 %v1132_v56  ;;  %v1155_v63 = vrot.slane %v1132_v56, 2 }
 0xf7d   : > { %1755 = vtanh.f32 %v1133_v57  ;;  %v1156_v62 = vrot.slane %v1133_v57, 1 }
 0xf7f   : > { %v1157_v2 = vsel %vm468_vm3, %v1156_v62, %v1155_v63 }
 0xf89   : > { %v1754_v59 = vpop.eup %1753 }
 0xf8a   : > { %v1756_v60 = vpop.eup %1755  ;;  %1138 = vrot.lane.b32.xlu0 %v1754_v59, %s1801_s11 }
 0xf8b   : > { %1140 = vrot.lane.b32.xlu1 %v1756_v60, %s1801_s11 }
 0xf8e   : > { %1150 = vperm.xlu0 %1655, %v1148_v61  }
 0xf92   : > { %1158 = vrot.lane.b32.xlu0 %v1157_v2, %s1803_s16 }
 0xffc   : > { %v1139_v5 = vpop.permute.xlu0 %1138 }
 0xffd   : > { %v1141_v6 = vpop.permute.xlu1 %1140  ;;  %v1144_v8 = vmul.f32 %v1750_v37, %v1139_v5 }
 0xffe   : > { %v1145_v9 = vmul.f32 %v1752_v48, %v1141_v6 }
 0xfff   : > { %v1164_v10 = vrot.slane %v1144_v8, 2 }
0x1000   : > { %v1165_v11 = vrot.slane %v1145_v9, 1 }
0x1002   : > { %v1166_v12 = vsel %vm468_vm3, %v1165_v11, %v1164_v10 }
0x1003   : > { %1167 = vrot.lane.b32.xlu1 %v1166_v12, %s1802_s15 }
0x1009   : > { %v1151_v13 = vpop.permute.xlu0 %1150 }
0x100a   : > { %vm1152_vm15 = vcmp.eq.s32.totalorder %v1151_v13, 1 }
0x100d   : > { %v1159_v32 = vpop.permute.xlu0 %1158 }
0x100e   : > { %v2150_v19 = vsel %vm1152_vm15, %v1159_v32, %v2118_v42 }
0x1075   : > { %v1168_v14 = vpop.permute.xlu1 %1167 }
0x1076   : > { %v2140_v15 = vsel %vm1152_vm15, %v1168_v14, %v2104_v26 }
0x1077   : > { %v1172_v16 = vpack.c.bf16 %v2140_v15, %v2140_v15 }
0x1079   : > { %1630 = vmatmul.mubr.msk.bf16.vlgmr.msra.gmra.mxu1 %vm284_vm1, %v1172_v16 }
0x1139   : > { %v1210_v17 = vpop.f32.mrf.mxu1 }
0x113a   : > { %v1217_v18 = vrot.slane %v1210_v17, 7  ;;  %v1221_v20 = vadd.f32 %v1210_v17, %v1931_v39 }
0x113b   : > { %v1631_v22 = vpop.f32.mrf.mxu1 }
0x113c   : > { %v1220_v27 = vadd.f32 %v1217_v18, %v1915_v29  ;;  %1757 = vtanh.f32 %v1221_v20  ;;  %v1237_v29 = vrot.slane %v2150_v19, 7  ;;  %v1534_v39 = vmul.f32 -1.442695, %v1221_v20 }
0x113d   : > { %v1213_v21 = vpop.f32.mrf.mxu1 }
0x113e   : > { %1759 = vtanh.f32 %v1220_v27  ;;  %v1533_v24 = vmul.f32 -1.442695, %v1220_v27 }
0x113f   : > { %v1632_v28 = vpop.f32.mrf.mxu1  ;;  %1761 = vpow2.f32 %v1534_v39 }
0x1140   : > { %1763 = vpow2.f32 %v1533_v24 }
0x1149   : > { %v1758_v31 = vpop.eup %1757 }
0x114a   : > { %1250 = vrot.lane.b32.xlu0 %v1758_v31, %s1801_s11 }
0x114b   : > { %v1760_v26 = vpop.eup %1759 }
0x114c   : > { %1248 = vrot.lane.b32.xlu1 %v1760_v26, %s1801_s11  ;;  %v1762_v33 = vpop.eup %1761 }
0x114d   : > { %v1764_v34 = vpop.eup %1763  ;;  %v1229_v4 = vadd.f32 1.0, %v1762_v33 }
0x114e   : > { %1240 = vrot.lane.b32.xlu0 %v2150_v19, %s1801_s11  ;;  %v1228_v36 = vadd.f32 1.0, %v1764_v34 }
0x114f   : > { %1765 = vrcp.f32 %v1229_v4 }
0x1150   : > { %1238 = vrot.lane.b32.xlu1 %v1237_v29, %s1801_s11  ;;  %1767 = vrcp.f32 %v1228_v36  ;;  %v1408_v36 = vstv %s1301_s26 }
0x115c   : > { %v1766_v42 = vpop.eup %1765 }
0x115d   : > { %v1768_v25 = vpop.eup %1767 }
0x11bc   : > { %v1251_v0 = vpop.permute.xlu0 %1250 }
0x11bd   : > { %v1255_v7 = vmul.f32 %v1766_v42, %v1251_v0  ;;  %v1789_v0 = vld [vmem:[%s2205_s1] sm:$0x3] }
0x11be   : > { %v1249_v38 = vpop.permute.xlu1 %1248 }
0x11bf   : > { %1260 = vrot.lane.b32.xlu0 %v1255_v7, %s1801_s11  ;;  %v1254_v44 = vmul.f32 %v1768_v25, %v1249_v38 }
0x11c0   : > { %v1241_v46 = vpop.permute.xlu0 %1240 }
0x11c1   : > { %1258 = vrot.lane.b32.xlu1 %v1254_v44, %s1801_s11  ;;  %v1245_v45 = vmul.f32 %v1766_v42, %v1241_v46 }
0x11c2   : > { %v1239_v47 = vpop.permute.xlu1 %1238 }
0x11c3   : > { %v1244_v35 = vmul.f32 %v1768_v25, %v1239_v47 }
0x1231   : > { %v1261_v23 = vpop.permute.xlu0 %1260 }
0x1232   : > { %v1265_v37 = vadd.f32 %v1261_v23, %v1245_v45 }
0x1233   : > { %v1259_v48 = vpop.permute.xlu1 %1258 }
0x1234   : > { %1769 = vtanh.f32 %v1265_v37  ;;  %v1264_v43 = vadd.f32 %v1259_v48, %v1244_v35 }
0x1236   : > { %1771 = vtanh.f32 %v1264_v43  ;;  %v1287_v52 = vrot.slane %v1264_v43, 1 }
0x1238   : > { %v1288_v53 = vsel %vm468_vm3, %v1265_v37, %v1287_v52 }
0x1241   : > { %v1770_v49 = vpop.eup %1769 }
0x1242   : > { %1272 = vrot.lane.b32.xlu0 %v1770_v49, %s1801_s11 }
0x1243   : > { %v1772_v50 = vpop.eup %1771 }
0x1244   : > { %1270 = vrot.lane.b32.xlu1 %v1772_v50, %s1801_s11 }
0x1248   : > { %1282 = vperm.xlu1 %1656, %v1280_v51  }
0x124c   : > { %1289 = vrot.lane.b32.xlu1 %v1288_v53, %s1803_s16 }
0x12b4   : > { %v1273_v54 = vpop.permute.xlu0 %1272 }
0x12b5   : > { %v1277_v57 = vmul.f32 %v1766_v42, %v1273_v54 }
0x12b6   : > { %v1271_v55 = vpop.permute.xlu1 %1270 }
0x12b7   : > { %v1276_v56 = vmul.f32 %v1768_v25, %v1271_v55 }
0x12b9   : > { %v1295_v58 = vrot.slane %v1276_v56, 1 }
0x12bb   : > { %v1296_v59 = vsel %vm468_vm3, %v1277_v57, %v1295_v58 }
0x12bc   : > { %1297 = vrot.lane.b32.xlu0 %v1296_v59, %s1802_s15 }
0x12c3   : > { %v1283_v3 = vpop.permute.xlu1 %1282 }
0x12c4   : > { %vm1284_vm2 = vcmp.eq.s32.totalorder %v1283_v3, 1 }
0x12c7   : > { %v1290_v12 = vpop.permute.xlu1 %1289 }
0x12c8   : > { %v1292_v14 = vsel %vm1284_vm2, %v1290_v12, %v2150_v19 }
0x132e   : > { %v1298_v60 = vpop.permute.xlu0 %1297 }
0x132f   : > { %v2171_v61 = vsel %vm1284_vm2, %v1298_v60, %v2140_v15 }
0x1330   : > { %v1302_v62 = vpack.c.bf16 %v2171_v61, %v2171_v61 }
0x1332   : > { %1638 = vmatmul.mubr.msk.bf16.vlgmr.msra.gmra.mxu0 %vm284_vm1, %v1302_v62  ;;  %vm1409_vm1 = vcmp.lt.s32.totalorder %v1408_v36, %v1789_v0 }
0x1333   : > { %v1410_v25 = vsel %vm1409_vm1, 1, %v1800_v1 }
0x13f2   : > { %v1340_v63 = vpop.f32.mrf.mxu0 }
0x13f3   : > { %v1347_v2 = vrot.slane %v1340_v63, 1  ;;  %v1350_v5 = vadd.f32 %v1340_v63, %v1919_v30  ;;  %v1367_v30 = vrot.slane %v1292_v14, 1 }
0x13f4   : > { %v1639_v6 = vpop.f32.mrf.mxu0 }
0x13f5   : > { %v1351_v8 = vadd.f32 %v1347_v2, %v1935_v40  ;;  %1773 = vtanh.f32 %v1350_v5  ;;  %v1536_v40 = vmul.f32 -1.442695, %v1350_v5 }
0x13f6   : > { %v1343_v9 = vpop.f32.mrf.mxu0 }
0x13f7   : > { %1775 = vtanh.f32 %v1351_v8  ;;  %v1537_v15 = vmul.f32 -1.442695, %v1351_v8 }
0x13f8   : > { %v1640_v10 = vpop.f32.mrf.mxu0  ;;  %1777 = vpow2.f32 %v1536_v40 }
0x13f9   : > { %1779 = vpow2.f32 %v1537_v15 }
0x1402   : > { %v1774_v11 = vpop.eup %1773 }
0x1403   : > { %1378 = vrot.lane.b32.xlu1 %v1774_v11, %s1801_s11 }
0x1404   : > { %v1776_v13 = vpop.eup %1775 }
0x1405   : > { %1380 = vrot.lane.b32.xlu0 %v1776_v13, %s1801_s11  ;;  %v1778_v16 = vpop.eup %1777 }
0x1406   : > { %v1780_v17 = vpop.eup %1779  ;;  %v1358_v18 = vadd.f32 1.0, %v1778_v16 }
0x1407   : > { %1368 = vrot.lane.b32.xlu1 %v1292_v14, %s1801_s11  ;;  %v1359_v20 = vadd.f32 1.0, %v1780_v17 }
0x1408   : > { %1781 = vrcp.f32 %v1358_v18 }
0x1409   : > { %1370 = vrot.lane.b32.xlu0 %v1367_v30, %s1801_s11  ;;  %1783 = vrcp.f32 %v1359_v20 }
0x1415   : > { %v1782_v22 = vpop.eup %1781 }
0x1416   : > { %v1784_v28 = vpop.eup %1783 }
0x1475   : > { %v1379_v27 = vpop.permute.xlu1 %1378 }
0x1476   : > { %v1384_v21 = vmul.f32 %v1782_v22, %v1379_v27 }
0x1477   : > { %v1381_v31 = vpop.permute.xlu0 %1380 }
0x1478   : > { %1388 = vrot.lane.b32.xlu1 %v1384_v21, %s1801_s11  ;;  %v1385_v32 = vmul.f32 %v1784_v28, %v1381_v31 }
0x1479   : > { %v1369_v26 = vpop.permute.xlu1 %1368 }
0x147a   : > { %1390 = vrot.lane.b32.xlu0 %v1385_v32, %s1801_s11  ;;  %v1374_v19 = vmul.f32 %v1782_v22, %v1369_v26 }
0x147b   : > { %v1371_v29 = vpop.permute.xlu0 %1370 }
0x147c   : > { %v1375_v33 = vmul.f32 %v1784_v28, %v1371_v29 }
0x14ea   : > { %v1389_v39 = vpop.permute.xlu1 %1388 }
0x14eb   : > { %v1394_v24 = vadd.f32 %v1389_v39, %v1374_v19 }
0x14ec   : > { %v1391_v34 = vpop.permute.xlu0 %1390 }
0x14ed   : > { %1785 = vtanh.f32 %v1394_v24  ;;  %v1395_v4 = vadd.f32 %v1391_v34, %v1375_v33 }
0x14ef   : > { %1787 = vtanh.f32 %v1395_v4 }
0x14fa   : > { %v1786_v42 = vpop.eup %1785 }
0x14fb   : > { %1400 = vrot.lane.b32.xlu1 %v1786_v42, %s1801_s11 }
0x14fc   : > { %v1788_v7 = vpop.eup %1787 }
0x14fd   : > { %1402 = vrot.lane.b32.xlu0 %v1788_v7, %s1801_s11 }
0x1501   : > { %1412 = vperm.xlu0 %1655, %v1410_v25  }
0x156d   : > { %v1401_v38 = vpop.permute.xlu1 %1400 }
0x156e   : > { %v1406_v45 = vmul.f32 %v1782_v22, %v1401_v38 }
0x156f   : > { %v1403_v44 = vpop.permute.xlu0 %1402 }
0x1570   : > { %v1407_v46 = vmul.f32 %v1784_v28, %v1403_v44 }
0x1572   : > { %v1417_v47 = vrot.slane %v1407_v46, 7 }
0x1574   : > { %v1418_v23 = vsel %vm468_vm3, %v1417_v47, %v1406_v45 }
0x1575   : > { %1419 = vrot.lane.b32.xlu1 %v1418_v23, %s1802_s15 }
0x157c   : > { %v1413_v37 = vpop.permute.xlu0 %1412 }
0x157d   : > { %vm1414_vm5 = vcmp.eq.s32.totalorder %v1413_v37, 1 }
0x15e7   : > { %v1420_v35 = vpop.permute.xlu1 %1419 }
0x15e8   : > { %v1422_v1 = vsel %vm1414_vm5, %v1420_v35, %v2171_v61 }
0x15e9   : > { %1424 = vst.msk [vmem:[%s256_s6] sm:$0x3] %vm1423_vm4, %v1422_v1 }
0x15ea PF: > { %s15_s18 = sadd.s32 1, %s1796_s18  }
0x15eb   : > { %p12_p5 = scmp.ge.s32.totalorder %s15_s18, 4  }
0x15ed   :  { %14 = sbr.rel (!%p12_p5) target bundleno = 1 (0x1), region = 76 }

</bundles_post_ra>
